<compile_context>
chip_gen: v7x
topology: tpu7x:2x2x1
jax: 0.10.0
libtpu: 0.0.40
codegen_flags: <defaults>
</compile_context>

<pallas_src>
import jax
import jax.numpy as jnp
from jax.experimental import pallas as pl
from jax.experimental.pallas import tpu as pltpu


_VMEM_TILE_BUDGET = 8 * 1024 * 1024   # per-step working-set budget (conservative across v5e/v6e/v7x)
_VMEM_LIMIT = 32 * 1024 * 1024        # explicit scoped-VMEM limit (<= v7x physical 64 MiB)


def _pick_row_tile(n_rows, per_row_bytes, budget=_VMEM_TILE_BUDGET, cap=256):
    """Largest divisor of n_rows (<= cap) whose per-tile working set fits the VMEM budget."""
    tile = 1
    for t in range(1, min(n_rows, cap) + 1):
        if n_rows % t == 0 and t * per_row_bytes <= budget:
            tile = t
    return tile


# ---------------------------------------------------------------------------
# Kernel 1: ConvTranspose2d(C1, C1, kernel_size=2, stride=2)
# ---------------------------------------------------------------------------

def conv_transpose_2x2_s2(x1, w, b):
    """x1: (N, H, W, C1) NHWC; w: torch layout (Cin=C1, Cout=C1, 2, 2); b: (C1,).

    Returns (N, 2H, 2W, C1).
    """
    N, H, W, C1 = x1.shape
    dtype = x1.dtype

    # single merged weight matrix: wk[ci, ((kh*2 + kw)*C1 + co)] = w[ci, co, kh, kw]
    wk = jnp.transpose(w, (0, 2, 3, 1)).reshape(C1, 4 * C1).astype(dtype)
    b2 = jnp.tile(b, 2).reshape(1, 2 * C1).astype(jnp.float32)   # per (kw, co) column bias

    per_row = 4 * 2 * (W * C1 + 2 * W * 2 * C1)   # double-buffered in + out blocks
    th = _pick_row_tile(H, per_row)

    def kernel(x_ref, w_ref, b_ref, o_ref):
        xf = x_ref[0].reshape(th * W, C1)
        # one GEMM produces both output-row phases; columns ordered (kh, kw, co)
        y = jnp.dot(xf, w_ref[...], preferred_element_type=jnp.float32)
        for kh in range(2):
            yk = y[:, kh * 2 * C1:(kh + 1) * 2 * C1] + b_ref[...]
            o_ref[0, :, kh, :, :] = yk.reshape(th, W, 2 * C1).astype(o_ref.dtype)

    out = pl.pallas_call(
        kernel,
        grid=(N, H // th),
        in_specs=[
            pl.BlockSpec((1, th, W, C1), lambda n, r: (n, r, 0, 0)),
            pl.BlockSpec((C1, 4 * C1), lambda n, r: (0, 0)),   # weights stay resident
            pl.BlockSpec((1, 2 * C1), lambda n, r: (0, 0)),
        ],
        out_specs=pl.BlockSpec((1, th, 2, W, 2 * C1), lambda n, r: (n, r, 0, 0, 0)),
        out_shape=jax.ShapeDtypeStruct((N, H, 2, W, 2 * C1), dtype),
        compiler_params=pltpu.CompilerParams(
            dimension_semantics=("parallel", "parallel"),
            vmem_limit_bytes=_VMEM_LIMIT),
    )(x1, wk, b2)

    # (N, H, 2, W, 2*C1) -> (N, 2H, 2W, C1): pure metadata reshape, no HBM shuffle pass.
    return out.reshape(N, 2 * H, 2 * W, C1)


# ---------------------------------------------------------------------------
# Kernel 2: fused [concat -> Conv3x3 -> BN -> ReLU -> Conv3x3 -> BN -> ReLU]
# ---------------------------------------------------------------------------

def double_conv_fused(x2, x1u, w1, s1v, t1v, w2, s2v, t2v):
    """x2: (N, H, W, C2); x1u: (N, H, W, C1) (already spatially matched).

    w1: torch (Cmid, C2+C1, 3, 3); w2: torch (Cout, Cmid, 3, 3); s*/t*: folded BN scale/shift.
    Returns (N, H, W, Cout).
    """
    N, H, W, C2 = x2.shape
    C1 = x1u.shape[-1]
    Cmid = w1.shape[0]
    Cout = w2.shape[0]
    dtype = x2.dtype

    # channel concat fused as a weight split: conv1(cat([x2, x1u])) == conv1a(x2) + conv1b(x1u)
    w1a = jnp.transpose(w1[:, :C2], (2, 3, 1, 0)).astype(dtype)   # (3,3,C2,Cmid)
    w1b = jnp.transpose(w1[:, C2:], (2, 3, 1, 0)).astype(dtype)   # (3,3,C1,Cmid)
    w2m = jnp.transpose(w2, (2, 3, 1, 0)).astype(dtype)           # (3,3,Cmid,Cout)
    s1 = s1v.reshape(1, Cmid).astype(jnp.float32)
    t1 = t1v.reshape(1, Cmid).astype(jnp.float32)
    s2 = s2v.reshape(1, Cout).astype(jnp.float32)
    t2 = t2v.reshape(1, Cout).astype(jnp.float32)

    # spatial zero-pad: +-2 rows (row halo of the fused two-conv stencil), +-1 cols (conv pad)
    x2p = jnp.pad(x2, ((0, 0), (2, 2), (1, 1), (0, 0)))
    x1p = jnp.pad(x1u, ((0, 0), (2, 2), (1, 1), (0, 0)))

    # VMEM budget: subtract resident activation/weight blocks, then tile the per-row leftovers.
    resident = 4 * (2 * (H + 4) * (W + 2) * (C1 + C2)                       # dbl-buffered acts
                    + 2 * (9 * (C1 + C2) * Cmid + 9 * Cmid * Cout           # weights
                           + 2 * Cmid + 2 * Cout))                          # scale/shift
    per_row = 4 * (2 * W * Cout                  # double-buffered out tile
                   + (W + 2) * Cmid              # mid VMEM scratch
                   + 2 * W * (Cmid + Cout)       # live accumulators / temporaries (rough)
                   )
    budget = max(_VMEM_TILE_BUDGET - resident, per_row)
    tr = _pick_row_tile(H, per_row, budget=budget)   # output rows per grid step
    hw = tr + 2                                      # mid rows computed per step (with halo)

    def kernel(x2_ref, x1_ref, w1a_ref, w1b_ref, s1_ref, t1_ref,
               w2_ref, s2_ref, t2_ref, o_ref, mid_ref):
        r0 = pl.multiple_of(pl.program_id(1) * tr, tr)

        # ---- conv1 (+ folded BN + ReLU): im2col fused as 9 shifted GEMMs per input
        acc = jnp.zeros((hw * W, Cmid), jnp.float32)
        for kh in range(3):
            for kw in range(3):
                a2 = x2_ref[0, pl.ds(r0 + kh, hw), pl.ds(kw, W), :]
                acc = acc + jnp.dot(a2.reshape(hw * W, C2), w1a_ref[kh, kw],
                                    preferred_element_type=jnp.float32)
                a1 = x1_ref[0, pl.ds(r0 + kh, hw), pl.ds(kw, W), :]
                acc = acc + jnp.dot(a1.reshape(hw * W, C1), w1b_ref[kh, kw],
                                    preferred_element_type=jnp.float32)
        mid = jnp.maximum(acc * s1_ref[...] + t1_ref[...], 0.0).reshape(hw, W, Cmid)

        # halo rows outside the image act as conv2's zero padding
        gi = r0 - 1 + jax.lax.broadcasted_iota(jnp.int32, (hw, 1, 1), 0)
        valid = jnp.logical_and(gi >= 0, gi < H).astype(jnp.float32)
        mid = mid * valid

        # stage into a column-padded VMEM scratch (mid never leaves VMEM)
        mid_ref[...] = jnp.zeros((hw, W + 2, Cmid), jnp.float32)
        mid_ref[:, 1:W + 1, :] = mid

        # ---- conv2 (+ folded BN + ReLU)
        acc2 = jnp.zeros((tr * W, Cout), jnp.float32)
        for kh in range(3):
            for kw in range(3):
                m = mid_ref[pl.ds(kh, tr), pl.ds(kw, W), :]
                acc2 = acc2 + jnp.dot(m.reshape(tr * W, Cmid), w2_ref[kh, kw],
                                      preferred_element_type=jnp.float32)
        y = jnp.maximum(acc2 * s2_ref[...] + t2_ref[...], 0.0)
        o_ref[0] = y.reshape(tr, W, Cout).astype(o_ref.dtype)

    return pl.pallas_call(
        kernel,
        grid=(N, H // tr),
        in_specs=[
            # activations stay resident across the row-tile axis (constant block index on r)
            pl.BlockSpec((1, H + 4, W + 2, C2), lambda n, r: (n, 0, 0, 0)),
            pl.BlockSpec((1, H + 4, W + 2, C1), lambda n, r: (n, 0, 0, 0)),
            pl.BlockSpec((3, 3, C2, Cmid), lambda n, r: (0, 0, 0, 0)),
            pl.BlockSpec((3, 3, C1, Cmid), lambda n, r: (0, 0, 0, 0)),
            pl.BlockSpec((1, Cmid), lambda n, r: (0, 0)),
            pl.BlockSpec((1, Cmid), lambda n, r: (0, 0)),
            pl.BlockSpec((3, 3, Cmid, Cout), lambda n, r: (0, 0, 0, 0)),
            pl.BlockSpec((1, Cout), lambda n, r: (0, 0)),
            pl.BlockSpec((1, Cout), lambda n, r: (0, 0)),
        ],
        out_specs=pl.BlockSpec((1, tr, W, Cout), lambda n, r: (n, r, 0, 0)),
        out_shape=jax.ShapeDtypeStruct((N, H, W, Cout), dtype),
        scratch_shapes=[pltpu.VMEM((hw, W + 2, Cmid), jnp.float32)],
        compiler_params=pltpu.CompilerParams(
            dimension_semantics=("parallel", "parallel"),
            vmem_limit_bytes=_VMEM_LIMIT),
    )(x2p, x1p, w1a, w1b, s1, t1, w2m, s2, t2)


# ---------------------------------------------------------------------------
# UpResNet forward
# ---------------------------------------------------------------------------

def upresnet_forward(params, x1_nchw, x2_nchw):
    # NCHW (PyTorch interface) -> NHWC (channels on TPU lanes)
    x1 = jnp.transpose(x1_nchw, (0, 2, 3, 1))
    x2 = jnp.transpose(x2_nchw, (0, 2, 3, 1))

    # self.up = ConvTranspose2d(C1, C1, k=2, s=2)
    x1 = conv_transpose_2x2_s2(x1, params["up_w"], params["up_b"])

    # F.pad to x2's spatial size (no-op for the canonical 2x UNet shapes)
    dY = x2.shape[1] - x1.shape[1]
    dX = x2.shape[2] - x1.shape[2]
    if dY != 0 or dX != 0:
        # TODO(synk): fold this (rare) pad into the conv-transpose kernel's output writes.
        x1 = jnp.pad(x1, ((0, 0), (dY // 2, dY - dY // 2), (dX // 2, dX - dX // 2), (0, 0)))

    # concat + DoubleConv fused into a single pallas_call.
    # TODO(synk): Dropout2d omitted (stochastic; identity in eval mode).
    y = double_conv_fused(x2, x1,
                          params["c1_w"], params["c1_scale"], params["c1_shift"],
                          params["c2_w"], params["c2_scale"], params["c2_shift"])
    return jnp.transpose(y, (0, 3, 1, 2))


# ---------------------------------------------------------------------------
# Pure-JAX reference (for a loose numerical sanity check) + deterministic init
# ---------------------------------------------------------------------------

def _reference_forward(params, x1_nchw, x2_nchw):
    x1 = jnp.transpose(x1_nchw, (0, 2, 3, 1))
    x2 = jnp.transpose(x2_nchw, (0, 2, 3, 1))
    N, H, W, C1 = x1.shape
    up = jnp.einsum("nijc,cohw->nihjwo", x1, params["up_w"]).reshape(N, 2 * H, 2 * W, C1)
    up = up + params["up_b"]
    dY = x2.shape[1] - up.shape[1]
    dX = x2.shape[2] - up.shape[2]
    if dY != 0 or dX != 0:
        up = jnp.pad(up, ((0, 0), (dY // 2, dY - dY // 2), (dX // 2, dX - dX // 2), (0, 0)))
    x = jnp.concatenate([x2, up], axis=-1)

    def conv_bn_relu(x, w, s, t):
        w_hwio = jnp.transpose(w, (2, 3, 1, 0))
        y = jax.lax.conv_general_dilated(x, w_hwio, (1, 1), "SAME",
                                         dimension_numbers=("NHWC", "HWIO", "NHWC"))
        return jnp.maximum(y * s + t, 0.0)

    x = conv_bn_relu(x, params["c1_w"], params["c1_scale"], params["c1_shift"])
    x = conv_bn_relu(x, params["c2_w"], params["c2_scale"], params["c2_shift"])
    return jnp.transpose(x, (0, 3, 1, 2))


def init_params(key, in_channels_1, in_channels_2, out_channels):
    eps = 1e-5
    mid = out_channels
    cin = in_channels_1 + in_channels_2
    ks = jax.random.split(key, 12)

    def bn_fold(kg, kb, km, kv, c):
        gamma = 1.0 + 0.1 * jax.random.normal(kg, (c,), jnp.float32)
        beta = 0.1 * jax.random.normal(kb, (c,), jnp.float32)
        mean = 0.1 * jax.random.normal(km, (c,), jnp.float32)
        var = jnp.abs(jax.random.normal(kv, (c,), jnp.float32)) + 0.5
        scale = gamma / jnp.sqrt(var + eps)
        shift = beta - mean * scale
        return scale, shift

    c1_scale, c1_shift = bn_fold(ks[4], ks[5], ks[6], ks[7], mid)
    c2_scale, c2_shift = bn_fold(ks[8], ks[9], ks[10], ks[11], out_channels)

    return {
        # ConvTranspose2d weight layout: (in, out, kh, kw); bias=True by default
        "up_w": 0.1 * jax.random.normal(ks[0], (in_channels_1, in_channels_1, 2, 2), jnp.float32),
        "up_b": 0.1 * jax.random.normal(ks[1], (in_channels_1,), jnp.float32),
        # Conv2d weight layout: (out, in, kh, kw), bias=False
        "c1_w": 0.1 * jax.random.normal(ks[2], (mid, cin, 3, 3), jnp.float32),
        "c1_scale": c1_scale,
        "c1_shift": c1_shift,
        "c2_w": 0.1 * jax.random.normal(ks[3], (out_channels, mid, 3, 3), jnp.float32),
        "c2_scale": c2_scale,
        "c2_shift": c2_shift,
    }


# ---------------------------------------------------------------------------

if __name__ == "__main__":
    key = jax.random.PRNGKey(0)
    k_params, k_x1, k_x2 = jax.random.split(key, 3)

    in_channels_1, in_channels_2, out_channels = 4, 4, 8
    # x1 is the low-resolution feature map; x2 is the skip connection at 2x resolution.
    x1 = jax.random.normal(k_x1, (2, in_channels_1, 8, 8), jnp.float32)     # NCHW
    x2 = jax.random.normal(k_x2, (2, in_channels_2, 16, 16), jnp.float32)   # NCHW

    params = init_params(k_params, in_channels_1, in_channels_2, out_channels)

    out = jax.jit(upresnet_forward)(params, x1, x2)
    out = jax.block_until_ready(out)
    assert out.shape == (2, out_channels, 16, 16), out.shape
    assert bool(jnp.all(jnp.isfinite(out)))

    # Loose sanity check vs a pure-JAX reference (both sides use default MXU precision).
    ref = _reference_forward(params, x1, x2)
    err = float(jnp.max(jnp.abs(out - ref)))
    assert err < 5e-2, f"max abs err vs reference: {err}"

    print("KERNEL_OK")
</pallas_src>

<mosaic_0001>
module attributes {stable_mosaic.version = 11 : i64} {
  func.func @kernel(%arg0: i32, %arg1: i32, %arg2: memref<1x20x18x4xf32, #tpu.memory_space<vmem>>, %arg3: memref<1x20x18x4xf32, #tpu.memory_space<vmem>>, %arg4: memref<3x3x4x8xf32, #tpu.memory_space<vmem>>, %arg5: memref<3x3x4x8xf32, #tpu.memory_space<vmem>>, %arg6: memref<1x8xf32, #tpu.memory_space<vmem>>, %arg7: memref<1x8xf32, #tpu.memory_space<vmem>>, %arg8: memref<3x3x8x8xf32, #tpu.memory_space<vmem>>, %arg9: memref<1x8xf32, #tpu.memory_space<vmem>>, %arg10: memref<1x8xf32, #tpu.memory_space<vmem>>, %arg11: memref<1x16x16x8xf32, #tpu.memory_space<vmem>>, %arg12: memref<18x18x8xf32, #tpu.memory_space<vmem>>) attributes {dimension_semantics = [#tpu.dimension_semantics<parallel>, #tpu.dimension_semantics<parallel>], iteration_bounds = array<i64: 2, 1>, scalar_prefetch = 0 : i64, scratch_operands = 1 : i64, tpu.core_type = #tpu.core_type<tc>, window_params = [{transform_indices = @transform_0, window_bounds = array<i64: 1, 20, 18, 4>}, {transform_indices = @transform_1, window_bounds = array<i64: 1, 20, 18, 4>}, {pipeline_mode = #tpu.pipeline_mode<synchronous>, transform_indices = @transform_2, window_bounds = array<i64: 3, 3, 4, 8>}, {pipeline_mode = #tpu.pipeline_mode<synchronous>, transform_indices = @transform_3, window_bounds = array<i64: 3, 3, 4, 8>}, {pipeline_mode = #tpu.pipeline_mode<synchronous>, transform_indices = @transform_4, window_bounds = array<i64: 1, 8>}, {pipeline_mode = #tpu.pipeline_mode<synchronous>, transform_indices = @transform_5, window_bounds = array<i64: 1, 8>}, {pipeline_mode = #tpu.pipeline_mode<synchronous>, transform_indices = @transform_6, window_bounds = array<i64: 3, 3, 8, 8>}, {pipeline_mode = #tpu.pipeline_mode<synchronous>, transform_indices = @transform_7, window_bounds = array<i64: 1, 8>}, {pipeline_mode = #tpu.pipeline_mode<synchronous>, transform_indices = @transform_8, window_bounds = array<i64: 1, 8>}, {transform_indices = @transform_9, window_bounds = array<i64: 1, 16, 16, 8>}]} {
    %c16_i32 = arith.constant 16 : i32
    %0 = arith.muli %arg1, %c16_i32 : i32
    %1 = tpu.assume_multiple %0, 16 : i32
    %cst = arith.constant 0.000000e+00 : f32
    %2 = vector.broadcast %cst : f32 to vector<288x8xf32>
    %c0_i32 = arith.constant 0 : i32
    %3 = arith.addi %1, %c0_i32 : i32
    %c0 = arith.constant 0 : index
    %4 = arith.index_cast %3 : i32 to index
    %c0_0 = arith.constant 0 : index
    %c0_1 = arith.constant 0 : index
    %5 = vector.load %arg2[%c0, %4, %c0_0, %c0_1] : memref<1x20x18x4xf32, #tpu.memory_space<vmem>>, vector<1x18x16x4xf32>
    %6 = vector.shape_cast %5 : vector<1x18x16x4xf32> to vector<18x16x4xf32>
    %7 = vector.shape_cast %6 : vector<18x16x4xf32> to vector<288x4xf32>
    %c0_2 = arith.constant 0 : index
    %c0_3 = arith.constant 0 : index
    %c0_4 = arith.constant 0 : index
    %c0_5 = arith.constant 0 : index
    %8 = vector.load %arg4[%c0_2, %c0_3, %c0_4, %c0_5] : memref<3x3x4x8xf32, #tpu.memory_space<vmem>>, vector<1x1x4x8xf32>
    %9 = vector.shape_cast %8 : vector<1x1x4x8xf32> to vector<4x8xf32>
    %cst_6 = arith.constant dense<0.000000e+00> : vector<288x8xf32>
    %10 = tpu.matmul %7, %9, %cst_6 {dimension_numbers = #tpu.dot_dimension_numbers<[1], [0], [0], [1], [0, 0, 1, 1], [], []>} : vector<288x4xf32>, vector<4x8xf32>, vector<288x8xf32> -> vector<288x8xf32>
    %11 = arith.addf %2, %10 : vector<288x8xf32>
    %c0_i32_7 = arith.constant 0 : i32
    %12 = arith.addi %1, %c0_i32_7 : i32
    %c0_8 = arith.constant 0 : index
    %13 = arith.index_cast %12 : i32 to index
    %c0_9 = arith.constant 0 : index
    %c0_10 = arith.constant 0 : index
    %14 = vector.load %arg3[%c0_8, %13, %c0_9, %c0_10] : memref<1x20x18x4xf32, #tpu.memory_space<vmem>>, vector<1x18x16x4xf32>
    %15 = vector.shape_cast %14 : vector<1x18x16x4xf32> to vector<18x16x4xf32>
    %16 = vector.shape_cast %15 : vector<18x16x4xf32> to vector<288x4xf32>
    %c0_11 = arith.constant 0 : index
    %c0_12 = arith.constant 0 : index
    %c0_13 = arith.constant 0 : index
    %c0_14 = arith.constant 0 : index
    %17 = vector.load %arg5[%c0_11, %c0_12, %c0_13, %c0_14] : memref<3x3x4x8xf32, #tpu.memory_space<vmem>>, vector<1x1x4x8xf32>
    %18 = vector.shape_cast %17 : vector<1x1x4x8xf32> to vector<4x8xf32>
    %cst_15 = arith.constant dense<0.000000e+00> : vector<288x8xf32>
    %19 = tpu.matmul %16, %18, %cst_15 {dimension_numbers = #tpu.dot_dimension_numbers<[1], [0], [0], [1], [0, 0, 1, 1], [], []>} : vector<288x4xf32>, vector<4x8xf32>, vector<288x8xf32> -> vector<288x8xf32>
    %20 = arith.addf %11, %19 : vector<288x8xf32>
    %c0_i32_16 = arith.constant 0 : i32
    %21 = arith.addi %1, %c0_i32_16 : i32
    %c0_17 = arith.constant 0 : index
    %22 = arith.index_cast %21 : i32 to index
    %c1 = arith.constant 1 : index
    %c0_18 = arith.constant 0 : index
    %23 = vector.load %arg2[%c0_17, %22, %c1, %c0_18] : memref<1x20x18x4xf32, #tpu.memory_space<vmem>>, vector<1x18x16x4xf32>
    %24 = vector.shape_cast %23 : vector<1x18x16x4xf32> to vector<18x16x4xf32>
    %25 = vector.shape_cast %24 : vector<18x16x4xf32> to vector<288x4xf32>
    %c0_19 = arith.constant 0 : index
    %c1_20 = arith.constant 1 : index
    %c0_21 = arith.constant 0 : index
    %c0_22 = arith.constant 0 : index
    %26 = vector.load %arg4[%c0_19, %c1_20, %c0_21, %c0_22] : memref<3x3x4x8xf32, #tpu.memory_space<vmem>>, vector<1x1x4x8xf32>
    %27 = vector.shape_cast %26 : vector<1x1x4x8xf32> to vector<4x8xf32>
    %cst_23 = arith.constant dense<0.000000e+00> : vector<288x8xf32>
    %28 = tpu.matmul %25, %27, %cst_23 {dimension_numbers = #tpu.dot_dimension_numbers<[1], [0], [0], [1], [0, 0, 1, 1], [], []>} : vector<288x4xf32>, vector<4x8xf32>, vector<288x8xf32> -> vector<288x8xf32>
    %29 = arith.addf %20, %28 : vector<288x8xf32>
    %c0_i32_24 = arith.constant 0 : i32
    %30 = arith.addi %1, %c0_i32_24 : i32
    %c0_25 = arith.constant 0 : index
    %31 = arith.index_cast %30 : i32 to index
    %c1_26 = arith.constant 1 : index
    %c0_27 = arith.constant 0 : index
    %32 = vector.load %arg3[%c0_25, %31, %c1_26, %c0_27] : memref<1x20x18x4xf32, #tpu.memory_space<vmem>>, vector<1x18x16x4xf32>
    %33 = vector.shape_cast %32 : vector<1x18x16x4xf32> to vector<18x16x4xf32>
    %34 = vector.shape_cast %33 : vector<18x16x4xf32> to vector<288x4xf32>
    %c0_28 = arith.constant 0 : index
    %c1_29 = arith.constant 1 : index
    %c0_30 = arith.constant 0 : index
    %c0_31 = arith.constant 0 : index
    %35 = vector.load %arg5[%c0_28, %c1_29, %c0_30, %c0_31] : memref<3x3x4x8xf32, #tpu.memory_space<vmem>>, vector<1x1x4x8xf32>
    %36 = vector.shape_cast %35 : vector<1x1x4x8xf32> to vector<4x8xf32>
    %cst_32 = arith.constant dense<0.000000e+00> : vector<288x8xf32>
    %37 = tpu.matmul %34, %36, %cst_32 {dimension_numbers = #tpu.dot_dimension_numbers<[1], [0], [0], [1], [0, 0, 1, 1], [], []>} : vector<288x4xf32>, vector<4x8xf32>, vector<288x8xf32> -> vector<288x8xf32>
    %38 = arith.addf %29, %37 : vector<288x8xf32>
    %c0_i32_33 = arith.constant 0 : i32
    %39 = arith.addi %1, %c0_i32_33 : i32
    %c0_34 = arith.constant 0 : index
    %40 = arith.index_cast %39 : i32 to index
    %c2 = arith.constant 2 : index
    %c0_35 = arith.constant 0 : index
    %41 = vector.load %arg2[%c0_34, %40, %c2, %c0_35] : memref<1x20x18x4xf32, #tpu.memory_space<vmem>>, vector<1x18x16x4xf32>
    %42 = vector.shape_cast %41 : vector<1x18x16x4xf32> to vector<18x16x4xf32>
    %43 = vector.shape_cast %42 : vector<18x16x4xf32> to vector<288x4xf32>
    %c0_36 = arith.constant 0 : index
    %c2_37 = arith.constant 2 : index
    %c0_38 = arith.constant 0 : index
    %c0_39 = arith.constant 0 : index
    %44 = vector.load %arg4[%c0_36, %c2_37, %c0_38, %c0_39] : memref<3x3x4x8xf32, #tpu.memory_space<vmem>>, vector<1x1x4x8xf32>
    %45 = vector.shape_cast %44 : vector<1x1x4x8xf32> to vector<4x8xf32>
    %cst_40 = arith.constant dense<0.000000e+00> : vector<288x8xf32>
    %46 = tpu.matmul %43, %45, %cst_40 {dimension_numbers = #tpu.dot_dimension_numbers<[1], [0], [0], [1], [0, 0, 1, 1], [], []>} : vector<288x4xf32>, vector<4x8xf32>, vector<288x8xf32> -> vector<288x8xf32>
    %47 = arith.addf %38, %46 : vector<288x8xf32>
    %c0_i32_41 = arith.constant 0 : i32
    %48 = arith.addi %1, %c0_i32_41 : i32
    %c0_42 = arith.constant 0 : index
    %49 = arith.index_cast %48 : i32 to index
    %c2_43 = arith.constant 2 : index
    %c0_44 = arith.constant 0 : index
    %50 = vector.load %arg3[%c0_42, %49, %c2_43, %c0_44] : memref<1x20x18x4xf32, #tpu.memory_space<vmem>>, vector<1x18x16x4xf32>
    %51 = vector.shape_cast %50 : vector<1x18x16x4xf32> to vector<18x16x4xf32>
    %52 = vector.shape_cast %51 : vector<18x16x4xf32> to vector<288x4xf32>
    %c0_45 = arith.constant 0 : index
    %c2_46 = arith.constant 2 : index
    %c0_47 = arith.constant 0 : index
    %c0_48 = arith.constant 0 : index
    %53 = vector.load %arg5[%c0_45, %c2_46, %c0_47, %c0_48] : memref<3x3x4x8xf32, #tpu.memory_space<vmem>>, vector<1x1x4x8xf32>
    %54 = vector.shape_cast %53 : vector<1x1x4x8xf32> to vector<4x8xf32>
    %cst_49 = arith.constant dense<0.000000e+00> : vector<288x8xf32>
    %55 = tpu.matmul %52, %54, %cst_49 {dimension_numbers = #tpu.dot_dimension_numbers<[1], [0], [0], [1], [0, 0, 1, 1], [], []>} : vector<288x4xf32>, vector<4x8xf32>, vector<288x8xf32> -> vector<288x8xf32>
    %56 = arith.addf %47, %55 : vector<288x8xf32>
    %c1_i32 = arith.constant 1 : i32
    %57 = arith.addi %1, %c1_i32 : i32
    %c0_50 = arith.constant 0 : index
    %58 = arith.index_cast %57 : i32 to index
    %c0_51 = arith.constant 0 : index
    %c0_52 = arith.constant 0 : index
    %59 = vector.load %arg2[%c0_50, %58, %c0_51, %c0_52] : memref<1x20x18x4xf32, #tpu.memory_space<vmem>>, vector<1x18x16x4xf32>
    %60 = vector.shape_cast %59 : vector<1x18x16x4xf32> to vector<18x16x4xf32>
    %61 = vector.shape_cast %60 : vector<18x16x4xf32> to vector<288x4xf32>
    %c1_53 = arith.constant 1 : index
    %c0_54 = arith.constant 0 : index
    %c0_55 = arith.constant 0 : index
    %c0_56 = arith.constant 0 : index
    %62 = vector.load %arg4[%c1_53, %c0_54, %c0_55, %c0_56] : memref<3x3x4x8xf32, #tpu.memory_space<vmem>>, vector<1x1x4x8xf32>
    %63 = vector.shape_cast %62 : vector<1x1x4x8xf32> to vector<4x8xf32>
    %cst_57 = arith.constant dense<0.000000e+00> : vector<288x8xf32>
    %64 = tpu.matmul %61, %63, %cst_57 {dimension_numbers = #tpu.dot_dimension_numbers<[1], [0], [0], [1], [0, 0, 1, 1], [], []>} : vector<288x4xf32>, vector<4x8xf32>, vector<288x8xf32> -> vector<288x8xf32>
    %65 = arith.addf %56, %64 : vector<288x8xf32>
    %c1_i32_58 = arith.constant 1 : i32
    %66 = arith.addi %1, %c1_i32_58 : i32
    %c0_59 = arith.constant 0 : index
    %67 = arith.index_cast %66 : i32 to index
    %c0_60 = arith.constant 0 : index
    %c0_61 = arith.constant 0 : index
    %68 = vector.load %arg3[%c0_59, %67, %c0_60, %c0_61] : memref<1x20x18x4xf32, #tpu.memory_space<vmem>>, vector<1x18x16x4xf32>
    %69 = vector.shape_cast %68 : vector<1x18x16x4xf32> to vector<18x16x4xf32>
    %70 = vector.shape_cast %69 : vector<18x16x4xf32> to vector<288x4xf32>
    %c1_62 = arith.constant 1 : index
    %c0_63 = arith.constant 0 : index
    %c0_64 = arith.constant 0 : index
    %c0_65 = arith.constant 0 : index
    %71 = vector.load %arg5[%c1_62, %c0_63, %c0_64, %c0_65] : memref<3x3x4x8xf32, #tpu.memory_space<vmem>>, vector<1x1x4x8xf32>
    %72 = vector.shape_cast %71 : vector<1x1x4x8xf32> to vector<4x8xf32>
    %cst_66 = arith.constant dense<0.000000e+00> : vector<288x8xf32>
    %73 = tpu.matmul %70, %72, %cst_66 {dimension_numbers = #tpu.dot_dimension_numbers<[1], [0], [0], [1], [0, 0, 1, 1], [], []>} : vector<288x4xf32>, vector<4x8xf32>, vector<288x8xf32> -> vector<288x8xf32>
    %74 = arith.addf %65, %73 : vector<288x8xf32>
    %c1_i32_67 = arith.constant 1 : i32
    %75 = arith.addi %1, %c1_i32_67 : i32
    %c0_68 = arith.constant 0 : index
    %76 = arith.index_cast %75 : i32 to index
    %c1_69 = arith.constant 1 : index
    %c0_70 = arith.constant 0 : index
    %77 = vector.load %arg2[%c0_68, %76, %c1_69, %c0_70] : memref<1x20x18x4xf32, #tpu.memory_space<vmem>>, vector<1x18x16x4xf32>
    %78 = vector.shape_cast %77 : vector<1x18x16x4xf32> to vector<18x16x4xf32>
    %79 = vector.shape_cast %78 : vector<18x16x4xf32> to vector<288x4xf32>
    %c1_71 = arith.constant 1 : index
    %c1_72 = arith.constant 1 : index
    %c0_73 = arith.constant 0 : index
    %c0_74 = arith.constant 0 : index
    %80 = vector.load %arg4[%c1_71, %c1_72, %c0_73, %c0_74] : memref<3x3x4x8xf32, #tpu.memory_space<vmem>>, vector<1x1x4x8xf32>
    %81 = vector.shape_cast %80 : vector<1x1x4x8xf32> to vector<4x8xf32>
    %cst_75 = arith.constant dense<0.000000e+00> : vector<288x8xf32>
    %82 = tpu.matmul %79, %81, %cst_75 {dimension_numbers = #tpu.dot_dimension_numbers<[1], [0], [0], [1], [0, 0, 1, 1], [], []>} : vector<288x4xf32>, vector<4x8xf32>, vector<288x8xf32> -> vector<288x8xf32>
    %83 = arith.addf %74, %82 : vector<288x8xf32>
    %c1_i32_76 = arith.constant 1 : i32
    %84 = arith.addi %1, %c1_i32_76 : i32
    %c0_77 = arith.constant 0 : index
    %85 = arith.index_cast %84 : i32 to index
    %c1_78 = arith.constant 1 : index
    %c0_79 = arith.constant 0 : index
    %86 = vector.load %arg3[%c0_77, %85, %c1_78, %c0_79] : memref<1x20x18x4xf32, #tpu.memory_space<vmem>>, vector<1x18x16x4xf32>
    %87 = vector.shape_cast %86 : vector<1x18x16x4xf32> to vector<18x16x4xf32>
    %88 = vector.shape_cast %87 : vector<18x16x4xf32> to vector<288x4xf32>
    %c1_80 = arith.constant 1 : index
    %c1_81 = arith.constant 1 : index
    %c0_82 = arith.constant 0 : index
    %c0_83 = arith.constant 0 : index
    %89 = vector.load %arg5[%c1_80, %c1_81, %c0_82, %c0_83] : memref<3x3x4x8xf32, #tpu.memory_space<vmem>>, vector<1x1x4x8xf32>
    %90 = vector.shape_cast %89 : vector<1x1x4x8xf32> to vector<4x8xf32>
    %cst_84 = arith.constant dense<0.000000e+00> : vector<288x8xf32>
    %91 = tpu.matmul %88, %90, %cst_84 {dimension_numbers = #tpu.dot_dimension_numbers<[1], [0], [0], [1], [0, 0, 1, 1], [], []>} : vector<288x4xf32>, vector<4x8xf32>, vector<288x8xf32> -> vector<288x8xf32>
    %92 = arith.addf %83, %91 : vector<288x8xf32>
    %c1_i32_85 = arith.constant 1 : i32
    %93 = arith.addi %1, %c1_i32_85 : i32
    %c0_86 = arith.constant 0 : index
    %94 = arith.index_cast %93 : i32 to index
    %c2_87 = arith.constant 2 : index
    %c0_88 = arith.constant 0 : index
    %95 = vector.load %arg2[%c0_86, %94, %c2_87, %c0_88] : memref<1x20x18x4xf32, #tpu.memory_space<vmem>>, vector<1x18x16x4xf32>
    %96 = vector.shape_cast %95 : vector<1x18x16x4xf32> to vector<18x16x4xf32>
    %97 = vector.shape_cast %96 : vector<18x16x4xf32> to vector<288x4xf32>
    %c1_89 = arith.constant 1 : index
    %c2_90 = arith.constant 2 : index
    %c0_91 = arith.constant 0 : index
    %c0_92 = arith.constant 0 : index
    %98 = vector.load %arg4[%c1_89, %c2_90, %c0_91, %c0_92] : memref<3x3x4x8xf32, #tpu.memory_space<vmem>>, vector<1x1x4x8xf32>
    %99 = vector.shape_cast %98 : vector<1x1x4x8xf32> to vector<4x8xf32>
    %cst_93 = arith.constant dense<0.000000e+00> : vector<288x8xf32>
    %100 = tpu.matmul %97, %99, %cst_93 {dimension_numbers = #tpu.dot_dimension_numbers<[1], [0], [0], [1], [0, 0, 1, 1], [], []>} : vector<288x4xf32>, vector<4x8xf32>, vector<288x8xf32> -> vector<288x8xf32>
    %101 = arith.addf %92, %100 : vector<288x8xf32>
    %c1_i32_94 = arith.constant 1 : i32
    %102 = arith.addi %1, %c1_i32_94 : i32
    %c0_95 = arith.constant 0 : index
    %103 = arith.index_cast %102 : i32 to index
    %c2_96 = arith.constant 2 : index
    %c0_97 = arith.constant 0 : index
    %104 = vector.load %arg3[%c0_95, %103, %c2_96, %c0_97] : memref<1x20x18x4xf32, #tpu.memory_space<vmem>>, vector<1x18x16x4xf32>
    %105 = vector.shape_cast %104 : vector<1x18x16x4xf32> to vector<18x16x4xf32>
    %106 = vector.shape_cast %105 : vector<18x16x4xf32> to vector<288x4xf32>
    %c1_98 = arith.constant 1 : index
    %c2_99 = arith.constant 2 : index
    %c0_100 = arith.constant 0 : index
    %c0_101 = arith.constant 0 : index
    %107 = vector.load %arg5[%c1_98, %c2_99, %c0_100, %c0_101] : memref<3x3x4x8xf32, #tpu.memory_space<vmem>>, vector<1x1x4x8xf32>
    %108 = vector.shape_cast %107 : vector<1x1x4x8xf32> to vector<4x8xf32>
    %cst_102 = arith.constant dense<0.000000e+00> : vector<288x8xf32>
    %109 = tpu.matmul %106, %108, %cst_102 {dimension_numbers = #tpu.dot_dimension_numbers<[1], [0], [0], [1], [0, 0, 1, 1], [], []>} : vector<288x4xf32>, vector<4x8xf32>, vector<288x8xf32> -> vector<288x8xf32>
    %110 = arith.addf %101, %109 : vector<288x8xf32>
    %c2_i32 = arith.constant 2 : i32
    %111 = arith.addi %1, %c2_i32 : i32
    %c0_103 = arith.constant 0 : index
    %112 = arith.index_cast %111 : i32 to index
    %c0_104 = arith.constant 0 : index
    %c0_105 = arith.constant 0 : index
    %113 = vector.load %arg2[%c0_103, %112, %c0_104, %c0_105] : memref<1x20x18x4xf32, #tpu.memory_space<vmem>>, vector<1x18x16x4xf32>
    %114 = vector.shape_cast %113 : vector<1x18x16x4xf32> to vector<18x16x4xf32>
    %115 = vector.shape_cast %114 : vector<18x16x4xf32> to vector<288x4xf32>
    %c2_106 = arith.constant 2 : index
    %c0_107 = arith.constant 0 : index
    %c0_108 = arith.constant 0 : index
    %c0_109 = arith.constant 0 : index
    %116 = vector.load %arg4[%c2_106, %c0_107, %c0_108, %c0_109] : memref<3x3x4x8xf32, #tpu.memory_space<vmem>>, vector<1x1x4x8xf32>
    %117 = vector.shape_cast %116 : vector<1x1x4x8xf32> to vector<4x8xf32>
    %cst_110 = arith.constant dense<0.000000e+00> : vector<288x8xf32>
    %118 = tpu.matmul %115, %117, %cst_110 {dimension_numbers = #tpu.dot_dimension_numbers<[1], [0], [0], [1], [0, 0, 1, 1], [], []>} : vector<288x4xf32>, vector<4x8xf32>, vector<288x8xf32> -> vector<288x8xf32>
    %119 = arith.addf %110, %118 : vector<288x8xf32>
    %c2_i32_111 = arith.constant 2 : i32
    %120 = arith.addi %1, %c2_i32_111 : i32
    %c0_112 = arith.constant 0 : index
    %121 = arith.index_cast %120 : i32 to index
    %c0_113 = arith.constant 0 : index
    %c0_114 = arith.constant 0 : index
    %122 = vector.load %arg3[%c0_112, %121, %c0_113, %c0_114] : memref<1x20x18x4xf32, #tpu.memory_space<vmem>>, vector<1x18x16x4xf32>
    %123 = vector.shape_cast %122 : vector<1x18x16x4xf32> to vector<18x16x4xf32>
    %124 = vector.shape_cast %123 : vector<18x16x4xf32> to vector<288x4xf32>
    %c2_115 = arith.constant 2 : index
    %c0_116 = arith.constant 0 : index
    %c0_117 = arith.constant 0 : index
    %c0_118 = arith.constant 0 : index
    %125 = vector.load %arg5[%c2_115, %c0_116, %c0_117, %c0_118] : memref<3x3x4x8xf32, #tpu.memory_space<vmem>>, vector<1x1x4x8xf32>
    %126 = vector.shape_cast %125 : vector<1x1x4x8xf32> to vector<4x8xf32>
    %cst_119 = arith.constant dense<0.000000e+00> : vector<288x8xf32>
    %127 = tpu.matmul %124, %126, %cst_119 {dimension_numbers = #tpu.dot_dimension_numbers<[1], [0], [0], [1], [0, 0, 1, 1], [], []>} : vector<288x4xf32>, vector<4x8xf32>, vector<288x8xf32> -> vector<288x8xf32>
    %128 = arith.addf %119, %127 : vector<288x8xf32>
    %c2_i32_120 = arith.constant 2 : i32
    %129 = arith.addi %1, %c2_i32_120 : i32
    %c0_121 = arith.constant 0 : index
    %130 = arith.index_cast %129 : i32 to index
    %c1_122 = arith.constant 1 : index
    %c0_123 = arith.constant 0 : index
    %131 = vector.load %arg2[%c0_121, %130, %c1_122, %c0_123] : memref<1x20x18x4xf32, #tpu.memory_space<vmem>>, vector<1x18x16x4xf32>
    %132 = vector.shape_cast %131 : vector<1x18x16x4xf32> to vector<18x16x4xf32>
    %133 = vector.shape_cast %132 : vector<18x16x4xf32> to vector<288x4xf32>
    %c2_124 = arith.constant 2 : index
    %c1_125 = arith.constant 1 : index
    %c0_126 = arith.constant 0 : index
    %c0_127 = arith.constant 0 : index
    %134 = vector.load %arg4[%c2_124, %c1_125, %c0_126, %c0_127] : memref<3x3x4x8xf32, #tpu.memory_space<vmem>>, vector<1x1x4x8xf32>
    %135 = vector.shape_cast %134 : vector<1x1x4x8xf32> to vector<4x8xf32>
    %cst_128 = arith.constant dense<0.000000e+00> : vector<288x8xf32>
    %136 = tpu.matmul %133, %135, %cst_128 {dimension_numbers = #tpu.dot_dimension_numbers<[1], [0], [0], [1], [0, 0, 1, 1], [], []>} : vector<288x4xf32>, vector<4x8xf32>, vector<288x8xf32> -> vector<288x8xf32>
    %137 = arith.addf %128, %136 : vector<288x8xf32>
    %c2_i32_129 = arith.constant 2 : i32
    %138 = arith.addi %1, %c2_i32_129 : i32
    %c0_130 = arith.constant 0 : index
    %139 = arith.index_cast %138 : i32 to index
    %c1_131 = arith.constant 1 : index
    %c0_132 = arith.constant 0 : index
    %140 = vector.load %arg3[%c0_130, %139, %c1_131, %c0_132] : memref<1x20x18x4xf32, #tpu.memory_space<vmem>>, vector<1x18x16x4xf32>
    %141 = vector.shape_cast %140 : vector<1x18x16x4xf32> to vector<18x16x4xf32>
    %142 = vector.shape_cast %141 : vector<18x16x4xf32> to vector<288x4xf32>
    %c2_133 = arith.constant 2 : index
    %c1_134 = arith.constant 1 : index
    %c0_135 = arith.constant 0 : index
    %c0_136 = arith.constant 0 : index
    %143 = vector.load %arg5[%c2_133, %c1_134, %c0_135, %c0_136] : memref<3x3x4x8xf32, #tpu.memory_space<vmem>>, vector<1x1x4x8xf32>
    %144 = vector.shape_cast %143 : vector<1x1x4x8xf32> to vector<4x8xf32>
    %cst_137 = arith.constant dense<0.000000e+00> : vector<288x8xf32>
    %145 = tpu.matmul %142, %144, %cst_137 {dimension_numbers = #tpu.dot_dimension_numbers<[1], [0], [0], [1], [0, 0, 1, 1], [], []>} : vector<288x4xf32>, vector<4x8xf32>, vector<288x8xf32> -> vector<288x8xf32>
    %146 = arith.addf %137, %145 : vector<288x8xf32>
    %c2_i32_138 = arith.constant 2 : i32
    %147 = arith.addi %1, %c2_i32_138 : i32
    %c0_139 = arith.constant 0 : index
    %148 = arith.index_cast %147 : i32 to index
    %c2_140 = arith.constant 2 : index
    %c0_141 = arith.constant 0 : index
    %149 = vector.load %arg2[%c0_139, %148, %c2_140, %c0_141] : memref<1x20x18x4xf32, #tpu.memory_space<vmem>>, vector<1x18x16x4xf32>
    %150 = vector.shape_cast %149 : vector<1x18x16x4xf32> to vector<18x16x4xf32>
    %151 = vector.shape_cast %150 : vector<18x16x4xf32> to vector<288x4xf32>
    %c2_142 = arith.constant 2 : index
    %c2_143 = arith.constant 2 : index
    %c0_144 = arith.constant 0 : index
    %c0_145 = arith.constant 0 : index
    %152 = vector.load %arg4[%c2_142, %c2_143, %c0_144, %c0_145] : memref<3x3x4x8xf32, #tpu.memory_space<vmem>>, vector<1x1x4x8xf32>
    %153 = vector.shape_cast %152 : vector<1x1x4x8xf32> to vector<4x8xf32>
    %cst_146 = arith.constant dense<0.000000e+00> : vector<288x8xf32>
    %154 = tpu.matmul %151, %153, %cst_146 {dimension_numbers = #tpu.dot_dimension_numbers<[1], [0], [0], [1], [0, 0, 1, 1], [], []>} : vector<288x4xf32>, vector<4x8xf32>, vector<288x8xf32> -> vector<288x8xf32>
    %155 = arith.addf %146, %154 : vector<288x8xf32>
    %c2_i32_147 = arith.constant 2 : i32
    %156 = arith.addi %1, %c2_i32_147 : i32
    %c0_148 = arith.constant 0 : index
    %157 = arith.index_cast %156 : i32 to index
    %c2_149 = arith.constant 2 : index
    %c0_150 = arith.constant 0 : index
    %158 = vector.load %arg3[%c0_148, %157, %c2_149, %c0_150] : memref<1x20x18x4xf32, #tpu.memory_space<vmem>>, vector<1x18x16x4xf32>
    %159 = vector.shape_cast %158 : vector<1x18x16x4xf32> to vector<18x16x4xf32>
    %160 = vector.shape_cast %159 : vector<18x16x4xf32> to vector<288x4xf32>
    %c2_151 = arith.constant 2 : index
    %c2_152 = arith.constant 2 : index
    %c0_153 = arith.constant 0 : index
    %c0_154 = arith.constant 0 : index
    %161 = vector.load %arg5[%c2_151, %c2_152, %c0_153, %c0_154] : memref<3x3x4x8xf32, #tpu.memory_space<vmem>>, vector<1x1x4x8xf32>
    %162 = vector.shape_cast %161 : vector<1x1x4x8xf32> to vector<4x8xf32>
    %cst_155 = arith.constant dense<0.000000e+00> : vector<288x8xf32>
    %163 = tpu.matmul %160, %162, %cst_155 {dimension_numbers = #tpu.dot_dimension_numbers<[1], [0], [0], [1], [0, 0, 1, 1], [], []>} : vector<288x4xf32>, vector<4x8xf32>, vector<288x8xf32> -> vector<288x8xf32>
    %164 = arith.addf %155, %163 : vector<288x8xf32>
    %c0_156 = arith.constant 0 : index
    %c0_157 = arith.constant 0 : index
    %165 = vector.load %arg6[%c0_156, %c0_157] : memref<1x8xf32, #tpu.memory_space<vmem>>, vector<1x8xf32>
    %166 = vector.broadcast %165 : vector<1x8xf32> to vector<288x8xf32>
    %167 = arith.mulf %164, %166 : vector<288x8xf32>
    %c0_158 = arith.constant 0 : index
    %c0_159 = arith.constant 0 : index
    %168 = vector.load %arg7[%c0_158, %c0_159] : memref<1x8xf32, #tpu.memory_space<vmem>>, vector<1x8xf32>
    %169 = vector.broadcast %168 : vector<1x8xf32> to vector<288x8xf32>
    %170 = arith.addf %167, %169 : vector<288x8xf32>
    %cst_160 = arith.constant 0.000000e+00 : f32
    %171 = vector.broadcast %cst_160 : f32 to vector<288x8xf32>
    %172 = arith.maximumf %170, %171 : vector<288x8xf32>
    %173 = vector.shape_cast %172 : vector<288x8xf32> to vector<18x16x8xf32>
    %c1_i32_161 = arith.constant 1 : i32
    %174 = arith.subi %1, %c1_i32_161 : i32
    %175 = tpu.iota {dimensions = array<i32: 0>} : vector<18x1x1xi32>
    %176 = vector.broadcast %174 : i32 to vector<18x1x1xi32>
    %177 = arith.addi %176, %175 : vector<18x1x1xi32>
    %c0_i32_162 = arith.constant 0 : i32
    %178 = vector.broadcast %c0_i32_162 : i32 to vector<18x1x1xi32>
    %179 = arith.cmpi sge, %177, %178 : vector<18x1x1xi32>
    %c16_i32_163 = arith.constant 16 : i32
    %180 = vector.broadcast %c16_i32_163 : i32 to vector<18x1x1xi32>
    %181 = arith.cmpi slt, %177, %180 : vector<18x1x1xi32>
    %182 = arith.andi %179, %181 : vector<18x1x1xi1>
    %183 = arith.extui %182 : vector<18x1x1xi1> to vector<18x1x1xi32>
    %184 = arith.sitofp %183 : vector<18x1x1xi32> to vector<18x1x1xf32>
    %185 = vector.broadcast %184 : vector<18x1x1xf32> to vector<18x16x8xf32>
    %186 = arith.mulf %173, %185 : vector<18x16x8xf32>
    %cst_164 = arith.constant 0.000000e+00 : f32
    %187 = vector.broadcast %cst_164 : f32 to vector<18x18x8xf32>
    %c0_165 = arith.constant 0 : index
    %c0_166 = arith.constant 0 : index
    %c0_167 = arith.constant 0 : index
    %188 = vector.load %arg12[%c0_165, %c0_166, %c0_167] : memref<18x18x8xf32, #tpu.memory_space<vmem>>, vector<18x18x8xf32>
    tpu.vector_store %arg12[%c0_165, %c0_166, %c0_167], %187 {strides = array<i32>} : memref<18x18x8xf32, #tpu.memory_space<vmem>>, vector<18x18x8xf32>,
    %c0_168 = arith.constant 0 : index
    %c1_169 = arith.constant 1 : index
    %c0_170 = arith.constant 0 : index
    %189 = vector.load %arg12[%c0_168, %c1_169, %c0_170] : memref<18x18x8xf32, #tpu.memory_space<vmem>>, vector<18x16x8xf32>
    tpu.vector_store %arg12[%c0_168, %c1_169, %c0_170], %186 {strides = array<i32>} : memref<18x18x8xf32, #tpu.memory_space<vmem>>, vector<18x16x8xf32>,
    %cst_171 = arith.constant 0.000000e+00 : f32
    %190 = vector.broadcast %cst_171 : f32 to vector<256x8xf32>
    %c0_172 = arith.constant 0 : index
    %c0_173 = arith.constant 0 : index
    %c0_174 = arith.constant 0 : index
    %191 = vector.load %arg12[%c0_172, %c0_173, %c0_174] : memref<18x18x8xf32, #tpu.memory_space<vmem>>, vector<16x16x8xf32>
    %192 = vector.shape_cast %191 : vector<16x16x8xf32> to vector<256x8xf32>
    %c0_175 = arith.constant 0 : index
    %c0_176 = arith.constant 0 : index
    %c0_177 = arith.constant 0 : index
    %c0_178 = arith.constant 0 : index
    %193 = vector.load %arg8[%c0_175, %c0_176, %c0_177, %c0_178] : memref<3x3x8x8xf32, #tpu.memory_space<vmem>>, vector<1x1x8x8xf32>
    %194 = vector.shape_cast %193 : vector<1x1x8x8xf32> to vector<8x8xf32>
    %cst_179 = arith.constant dense<0.000000e+00> : vector<256x8xf32>
    %195 = tpu.matmul %192, %194, %cst_179 {dimension_numbers = #tpu.dot_dimension_numbers<[1], [0], [0], [1], [0, 0, 1, 1], [], []>} : vector<256x8xf32>, vector<8x8xf32>, vector<256x8xf32> -> vector<256x8xf32>
    %196 = arith.addf %190, %195 : vector<256x8xf32>
    %c0_180 = arith.constant 0 : index
    %c1_181 = arith.constant 1 : index
    %c0_182 = arith.constant 0 : index
    %197 = vector.load %arg12[%c0_180, %c1_181, %c0_182] : memref<18x18x8xf32, #tpu.memory_space<vmem>>, vector<16x16x8xf32>
    %198 = vector.shape_cast %197 : vector<16x16x8xf32> to vector<256x8xf32>
    %c0_183 = arith.constant 0 : index
    %c1_184 = arith.constant 1 : index
    %c0_185 = arith.constant 0 : index
    %c0_186 = arith.constant 0 : index
    %199 = vector.load %arg8[%c0_183, %c1_184, %c0_185, %c0_186] : memref<3x3x8x8xf32, #tpu.memory_space<vmem>>, vector<1x1x8x8xf32>
    %200 = vector.shape_cast %199 : vector<1x1x8x8xf32> to vector<8x8xf32>
    %cst_187 = arith.constant dense<0.000000e+00> : vector<256x8xf32>
    %201 = tpu.matmul %198, %200, %cst_187 {dimension_numbers = #tpu.dot_dimension_numbers<[1], [0], [0], [1], [0, 0, 1, 1], [], []>} : vector<256x8xf32>, vector<8x8xf32>, vector<256x8xf32> -> vector<256x8xf32>
    %202 = arith.addf %196, %201 : vector<256x8xf32>
    %c0_188 = arith.constant 0 : index
    %c2_189 = arith.constant 2 : index
    %c0_190 = arith.constant 0 : index
    %203 = vector.load %arg12[%c0_188, %c2_189, %c0_190] : memref<18x18x8xf32, #tpu.memory_space<vmem>>, vector<16x16x8xf32>
    %204 = vector.shape_cast %203 : vector<16x16x8xf32> to vector<256x8xf32>
    %c0_191 = arith.constant 0 : index
    %c2_192 = arith.constant 2 : index
    %c0_193 = arith.constant 0 : index
    %c0_194 = arith.constant 0 : index
    %205 = vector.load %arg8[%c0_191, %c2_192, %c0_193, %c0_194] : memref<3x3x8x8xf32, #tpu.memory_space<vmem>>, vector<1x1x8x8xf32>
    %206 = vector.shape_cast %205 : vector<1x1x8x8xf32> to vector<8x8xf32>
    %cst_195 = arith.constant dense<0.000000e+00> : vector<256x8xf32>
    %207 = tpu.matmul %204, %206, %cst_195 {dimension_numbers = #tpu.dot_dimension_numbers<[1], [0], [0], [1], [0, 0, 1, 1], [], []>} : vector<256x8xf32>, vector<8x8xf32>, vector<256x8xf32> -> vector<256x8xf32>
    %208 = arith.addf %202, %207 : vector<256x8xf32>
    %c1_196 = arith.constant 1 : index
    %c0_197 = arith.constant 0 : index
    %c0_198 = arith.constant 0 : index
    %209 = vector.load %arg12[%c1_196, %c0_197, %c0_198] : memref<18x18x8xf32, #tpu.memory_space<vmem>>, vector<16x16x8xf32>
    %210 = vector.shape_cast %209 : vector<16x16x8xf32> to vector<256x8xf32>
    %c1_199 = arith.constant 1 : index
    %c0_200 = arith.constant 0 : index
    %c0_201 = arith.constant 0 : index
    %c0_202 = arith.constant 0 : index
    %211 = vector.load %arg8[%c1_199, %c0_200, %c0_201, %c0_202] : memref<3x3x8x8xf32, #tpu.memory_space<vmem>>, vector<1x1x8x8xf32>
    %212 = vector.shape_cast %211 : vector<1x1x8x8xf32> to vector<8x8xf32>
    %cst_203 = arith.constant dense<0.000000e+00> : vector<256x8xf32>
    %213 = tpu.matmul %210, %212, %cst_203 {dimension_numbers = #tpu.dot_dimension_numbers<[1], [0], [0], [1], [0, 0, 1, 1], [], []>} : vector<256x8xf32>, vector<8x8xf32>, vector<256x8xf32> -> vector<256x8xf32>
    %214 = arith.addf %208, %213 : vector<256x8xf32>
    %c1_204 = arith.constant 1 : index
    %c1_205 = arith.constant 1 : index
    %c0_206 = arith.constant 0 : index
    %215 = vector.load %arg12[%c1_204, %c1_205, %c0_206] : memref<18x18x8xf32, #tpu.memory_space<vmem>>, vector<16x16x8xf32>
    %216 = vector.shape_cast %215 : vector<16x16x8xf32> to vector<256x8xf32>
    %c1_207 = arith.constant 1 : index
    %c1_208 = arith.constant 1 : index
    %c0_209 = arith.constant 0 : index
    %c0_210 = arith.constant 0 : index
    %217 = vector.load %arg8[%c1_207, %c1_208, %c0_209, %c0_210] : memref<3x3x8x8xf32, #tpu.memory_space<vmem>>, vector<1x1x8x8xf32>
    %218 = vector.shape_cast %217 : vector<1x1x8x8xf32> to vector<8x8xf32>
    %cst_211 = arith.constant dense<0.000000e+00> : vector<256x8xf32>
    %219 = tpu.matmul %216, %218, %cst_211 {dimension_numbers = #tpu.dot_dimension_numbers<[1], [0], [0], [1], [0, 0, 1, 1], [], []>} : vector<256x8xf32>, vector<8x8xf32>, vector<256x8xf32> -> vector<256x8xf32>
    %220 = arith.addf %214, %219 : vector<256x8xf32>
    %c1_212 = arith.constant 1 : index
    %c2_213 = arith.constant 2 : index
    %c0_214 = arith.constant 0 : index
    %221 = vector.load %arg12[%c1_212, %c2_213, %c0_214] : memref<18x18x8xf32, #tpu.memory_space<vmem>>, vector<16x16x8xf32>
    %222 = vector.shape_cast %221 : vector<16x16x8xf32> to vector<256x8xf32>
    %c1_215 = arith.constant 1 : index
    %c2_216 = arith.constant 2 : index
    %c0_217 = arith.constant 0 : index
    %c0_218 = arith.constant 0 : index
    %223 = vector.load %arg8[%c1_215, %c2_216, %c0_217, %c0_218] : memref<3x3x8x8xf32, #tpu.memory_space<vmem>>, vector<1x1x8x8xf32>
    %224 = vector.shape_cast %223 : vector<1x1x8x8xf32> to vector<8x8xf32>
    %cst_219 = arith.constant dense<0.000000e+00> : vector<256x8xf32>
    %225 = tpu.matmul %222, %224, %cst_219 {dimension_numbers = #tpu.dot_dimension_numbers<[1], [0], [0], [1], [0, 0, 1, 1], [], []>} : vector<256x8xf32>, vector<8x8xf32>, vector<256x8xf32> -> vector<256x8xf32>
    %226 = arith.addf %220, %225 : vector<256x8xf32>
    %c2_220 = arith.constant 2 : index
    %c0_221 = arith.constant 0 : index
    %c0_222 = arith.constant 0 : index
    %227 = vector.load %arg12[%c2_220, %c0_221, %c0_222] : memref<18x18x8xf32, #tpu.memory_space<vmem>>, vector<16x16x8xf32>
    %228 = vector.shape_cast %227 : vector<16x16x8xf32> to vector<256x8xf32>
    %c2_223 = arith.constant 2 : index
    %c0_224 = arith.constant 0 : index
    %c0_225 = arith.constant 0 : index
    %c0_226 = arith.constant 0 : index
    %229 = vector.load %arg8[%c2_223, %c0_224, %c0_225, %c0_226] : memref<3x3x8x8xf32, #tpu.memory_space<vmem>>, vector<1x1x8x8xf32>
    %230 = vector.shape_cast %229 : vector<1x1x8x8xf32> to vector<8x8xf32>
    %cst_227 = arith.constant dense<0.000000e+00> : vector<256x8xf32>
    %231 = tpu.matmul %228, %230, %cst_227 {dimension_numbers = #tpu.dot_dimension_numbers<[1], [0], [0], [1], [0, 0, 1, 1], [], []>} : vector<256x8xf32>, vector<8x8xf32>, vector<256x8xf32> -> vector<256x8xf32>
    %232 = arith.addf %226, %231 : vector<256x8xf32>
    %c2_228 = arith.constant 2 : index
    %c1_229 = arith.constant 1 : index
    %c0_230 = arith.constant 0 : index
    %233 = vector.load %arg12[%c2_228, %c1_229, %c0_230] : memref<18x18x8xf32, #tpu.memory_space<vmem>>, vector<16x16x8xf32>
    %234 = vector.shape_cast %233 : vector<16x16x8xf32> to vector<256x8xf32>
    %c2_231 = arith.constant 2 : index
    %c1_232 = arith.constant 1 : index
    %c0_233 = arith.constant 0 : index
    %c0_234 = arith.constant 0 : index
    %235 = vector.load %arg8[%c2_231, %c1_232, %c0_233, %c0_234] : memref<3x3x8x8xf32, #tpu.memory_space<vmem>>, vector<1x1x8x8xf32>
    %236 = vector.shape_cast %235 : vector<1x1x8x8xf32> to vector<8x8xf32>
    %cst_235 = arith.constant dense<0.000000e+00> : vector<256x8xf32>
    %237 = tpu.matmul %234, %236, %cst_235 {dimension_numbers = #tpu.dot_dimension_numbers<[1], [0], [0], [1], [0, 0, 1, 1], [], []>} : vector<256x8xf32>, vector<8x8xf32>, vector<256x8xf32> -> vector<256x8xf32>
    %238 = arith.addf %232, %237 : vector<256x8xf32>
    %c2_236 = arith.constant 2 : index
    %c2_237 = arith.constant 2 : index
    %c0_238 = arith.constant 0 : index
    %239 = vector.load %arg12[%c2_236, %c2_237, %c0_238] : memref<18x18x8xf32, #tpu.memory_space<vmem>>, vector<16x16x8xf32>
    %240 = vector.shape_cast %239 : vector<16x16x8xf32> to vector<256x8xf32>
    %c2_239 = arith.constant 2 : index
    %c2_240 = arith.constant 2 : index
    %c0_241 = arith.constant 0 : index
    %c0_242 = arith.constant 0 : index
    %241 = vector.load %arg8[%c2_239, %c2_240, %c0_241, %c0_242] : memref<3x3x8x8xf32, #tpu.memory_space<vmem>>, vector<1x1x8x8xf32>
    %242 = vector.shape_cast %241 : vector<1x1x8x8xf32> to vector<8x8xf32>
    %cst_243 = arith.constant dense<0.000000e+00> : vector<256x8xf32>
    %243 = tpu.matmul %240, %242, %cst_243 {dimension_numbers = #tpu.dot_dimension_numbers<[1], [0], [0], [1], [0, 0, 1, 1], [], []>} : vector<256x8xf32>, vector<8x8xf32>, vector<256x8xf32> -> vector<256x8xf32>
    %244 = arith.addf %238, %243 : vector<256x8xf32>
    %c0_244 = arith.constant 0 : index
    %c0_245 = arith.constant 0 : index
    %245 = vector.load %arg9[%c0_244, %c0_245] : memref<1x8xf32, #tpu.memory_space<vmem>>, vector<1x8xf32>
    %246 = vector.broadcast %245 : vector<1x8xf32> to vector<256x8xf32>
    %247 = arith.mulf %244, %246 : vector<256x8xf32>
    %c0_246 = arith.constant 0 : index
    %c0_247 = arith.constant 0 : index
    %248 = vector.load %arg10[%c0_246, %c0_247] : memref<1x8xf32, #tpu.memory_space<vmem>>, vector<1x8xf32>
    %249 = vector.broadcast %248 : vector<1x8xf32> to vector<256x8xf32>
    %250 = arith.addf %247, %249 : vector<256x8xf32>
    %cst_248 = arith.constant 0.000000e+00 : f32
    %251 = vector.broadcast %cst_248 : f32 to vector<256x8xf32>
    %252 = arith.maximumf %250, %251 : vector<256x8xf32>
    %253 = vector.shape_cast %252 : vector<256x8xf32> to vector<16x16x8xf32>
    %c0_249 = arith.constant 0 : index
    %c0_250 = arith.constant 0 : index
    %c0_251 = arith.constant 0 : index
    %c0_252 = arith.constant 0 : index
    %254 = vector.load %arg11[%c0_249, %c0_250, %c0_251, %c0_252] : memref<1x16x16x8xf32, #tpu.memory_space<vmem>>, vector<1x16x16x8xf32>
    %255 = vector.shape_cast %254 : vector<1x16x16x8xf32> to vector<16x16x8xf32>
    %256 = vector.shape_cast %253 : vector<16x16x8xf32> to vector<1x16x16x8xf32>
    tpu.vector_store %arg11[%c0_249, %c0_250, %c0_251, %c0_252], %256 {strides = array<i32>} : memref<1x16x16x8xf32, #tpu.memory_space<vmem>>, vector<1x16x16x8xf32>,
    return
  }
  func.func @transform_0(%arg0: i32, %arg1: i32) -> (i32, i32, i32, i32) {
    %c0_i32 = arith.constant 0 : i32
    %c0_i32_0 = arith.constant 0 : i32
    %c0_i32_1 = arith.constant 0 : i32
    %c0_i32_2 = arith.constant 0 : i32
    return %arg0, %c0_i32, %c0_i32_0, %c0_i32_1 : i32, i32, i32, i32
  }
  func.func @transform_1(%arg0: i32, %arg1: i32) -> (i32, i32, i32, i32) {
    %c0_i32 = arith.constant 0 : i32
    %c0_i32_0 = arith.constant 0 : i32
    %c0_i32_1 = arith.constant 0 : i32
    %c0_i32_2 = arith.constant 0 : i32
    return %arg0, %c0_i32, %c0_i32_0, %c0_i32_1 : i32, i32, i32, i32
  }
  func.func @transform_2(%arg0: i32, %arg1: i32) -> (i32, i32, i32, i32) {
    %c0_i32 = arith.constant 0 : i32
    %c0_i32_0 = arith.constant 0 : i32
    %c0_i32_1 = arith.constant 0 : i32
    %c0_i32_2 = arith.constant 0 : i32
    %c0_i32_3 = arith.constant 0 : i32
    return %c0_i32, %c0_i32_0, %c0_i32_1, %c0_i32_2 : i32, i32, i32, i32
  }
  func.func @transform_3(%arg0: i32, %arg1: i32) -> (i32, i32, i32, i32) {
    %c0_i32 = arith.constant 0 : i32
    %c0_i32_0 = arith.constant 0 : i32
    %c0_i32_1 = arith.constant 0 : i32
    %c0_i32_2 = arith.constant 0 : i32
    %c0_i32_3 = arith.constant 0 : i32
    return %c0_i32, %c0_i32_0, %c0_i32_1, %c0_i32_2 : i32, i32, i32, i32
  }
  func.func @transform_4(%arg0: i32, %arg1: i32) -> (i32, i32) {
    %c0_i32 = arith.constant 0 : i32
    %c0_i32_0 = arith.constant 0 : i32
    %c0_i32_1 = arith.constant 0 : i32
    return %c0_i32, %c0_i32_0 : i32, i32
  }
  func.func @transform_5(%arg0: i32, %arg1: i32) -> (i32, i32) {
    %c0_i32 = arith.constant 0 : i32
    %c0_i32_0 = arith.constant 0 : i32
    %c0_i32_1 = arith.constant 0 : i32
    return %c0_i32, %c0_i32_0 : i32, i32
  }
  func.func @transform_6(%arg0: i32, %arg1: i32) -> (i32, i32, i32, i32) {
    %c0_i32 = arith.constant 0 : i32
    %c0_i32_0 = arith.constant 0 : i32
    %c0_i32_1 = arith.constant 0 : i32
    %c0_i32_2 = arith.constant 0 : i32
    %c0_i32_3 = arith.constant 0 : i32
    return %c0_i32, %c0_i32_0, %c0_i32_1, %c0_i32_2 : i32, i32, i32, i32
  }
  func.func @transform_7(%arg0: i32, %arg1: i32) -> (i32, i32) {
    %c0_i32 = arith.constant 0 : i32
    %c0_i32_0 = arith.constant 0 : i32
    %c0_i32_1 = arith.constant 0 : i32
    return %c0_i32, %c0_i32_0 : i32, i32
  }
  func.func @transform_8(%arg0: i32, %arg1: i32) -> (i32, i32) {
    %c0_i32 = arith.constant 0 : i32
    %c0_i32_0 = arith.constant 0 : i32
    %c0_i32_1 = arith.constant 0 : i32
    return %c0_i32, %c0_i32_0 : i32, i32
  }
  func.func @transform_9(%arg0: i32, %arg1: i32) -> (i32, i32, i32, i32) {
    %c0_i32 = arith.constant 0 : i32
    %c0_i32_0 = arith.constant 0 : i32
    %c0_i32_1 = arith.constant 0 : i32
    return %arg0, %arg1, %c0_i32, %c0_i32_0 : i32, i32, i32, i32
  }
}

module attributes {stable_mosaic.version = 11 : i64} {
  func.func @kernel(%arg0: i32, %arg1: i32, %arg2: memref<1x8x8x4xf32, #tpu.memory_space<vmem>>, %arg3: memref<4x16xf32, #tpu.memory_space<vmem>>, %arg4: memref<1x8xf32, #tpu.memory_space<vmem>>, %arg5: memref<1x8x2x8x8xf32, #tpu.memory_space<vmem>>) attributes {dimension_semantics = [#tpu.dimension_semantics<parallel>, #tpu.dimension_semantics<parallel>], iteration_bounds = array<i64: 2, 1>, scalar_prefetch = 0 : i64, scratch_operands = 0 : i64, tpu.core_type = #tpu.core_type<tc>, window_params = [{transform_indices = @transform_0, window_bounds = array<i64: 1, 8, 8, 4>}, {pipeline_mode = #tpu.pipeline_mode<synchronous>, transform_indices = @transform_1, window_bounds = array<i64: 4, 16>}, {pipeline_mode = #tpu.pipeline_mode<synchronous>, transform_indices = @transform_2, window_bounds = array<i64: 1, 8>}, {transform_indices = @transform_3, window_bounds = array<i64: 1, 8, 2, 8, 8>}]} {
    %c0 = arith.constant 0 : index
    %c0_0 = arith.constant 0 : index
    %c0_1 = arith.constant 0 : index
    %c0_2 = arith.constant 0 : index
    %0 = vector.load %arg2[%c0, %c0_0, %c0_1, %c0_2] : memref<1x8x8x4xf32, #tpu.memory_space<vmem>>, vector<1x8x8x4xf32>
    %1 = vector.shape_cast %0 : vector<1x8x8x4xf32> to vector<8x8x4xf32>
    %2 = vector.shape_cast %1 : vector<8x8x4xf32> to vector<64x4xf32>
    %c0_3 = arith.constant 0 : index
    %c0_4 = arith.constant 0 : index
    %3 = vector.load %arg3[%c0_3, %c0_4] : memref<4x16xf32, #tpu.memory_space<vmem>>, vector<4x16xf32>
    %cst = arith.constant dense<0.000000e+00> : vector<64x16xf32>
    %4 = tpu.matmul %2, %3, %cst {dimension_numbers = #tpu.dot_dimension_numbers<[1], [0], [0], [1], [0, 0, 1, 1], [], []>} : vector<64x4xf32>, vector<4x16xf32>, vector<64x16xf32> -> vector<64x16xf32>
    %5 = vector.extract_strided_slice %4 {offsets = [0, 0], sizes = [64, 8], strides = [1, 1]} : vector<64x16xf32> to vector<64x8xf32>
    %c0_5 = arith.constant 0 : index
    %c0_6 = arith.constant 0 : index
    %6 = vector.load %arg4[%c0_5, %c0_6] : memref<1x8xf32, #tpu.memory_space<vmem>>, vector<1x8xf32>
    %7 = vector.broadcast %6 : vector<1x8xf32> to vector<64x8xf32>
    %8 = arith.addf %5, %7 : vector<64x8xf32>
    %9 = vector.shape_cast %8 : vector<64x8xf32> to vector<8x8x8xf32>
    %c0_7 = arith.constant 0 : index
    %c0_8 = arith.constant 0 : index
    %c0_9 = arith.constant 0 : index
    %c0_10 = arith.constant 0 : index
    %c0_11 = arith.constant 0 : index
    %10 = vector.load %arg5[%c0_7, %c0_8, %c0_9, %c0_10, %c0_11] : memref<1x8x2x8x8xf32, #tpu.memory_space<vmem>>, vector<1x8x1x8x8xf32>
    %11 = vector.shape_cast %10 : vector<1x8x1x8x8xf32> to vector<8x8x8xf32>
    %12 = vector.shape_cast %9 : vector<8x8x8xf32> to vector<1x8x1x8x8xf32>
    tpu.vector_store %arg5[%c0_7, %c0_8, %c0_9, %c0_10, %c0_11], %12 {strides = array<i32>} : memref<1x8x2x8x8xf32, #tpu.memory_space<vmem>>, vector<1x8x1x8x8xf32>,
    %13 = vector.extract_strided_slice %4 {offsets = [0, 8], sizes = [64, 8], strides = [1, 1]} : vector<64x16xf32> to vector<64x8xf32>
    %c0_12 = arith.constant 0 : index
    %c0_13 = arith.constant 0 : index
    %14 = vector.load %arg4[%c0_12, %c0_13] : memref<1x8xf32, #tpu.memory_space<vmem>>, vector<1x8xf32>
    %15 = vector.broadcast %14 : vector<1x8xf32> to vector<64x8xf32>
    %16 = arith.addf %13, %15 : vector<64x8xf32>
    %17 = vector.shape_cast %16 : vector<64x8xf32> to vector<8x8x8xf32>
    %c0_14 = arith.constant 0 : index
    %c0_15 = arith.constant 0 : index
    %c1 = arith.constant 1 : index
    %c0_16 = arith.constant 0 : index
    %c0_17 = arith.constant 0 : index
    %18 = vector.load %arg5[%c0_14, %c0_15, %c1, %c0_16, %c0_17] : memref<1x8x2x8x8xf32, #tpu.memory_space<vmem>>, vector<1x8x1x8x8xf32>
    %19 = vector.shape_cast %18 : vector<1x8x1x8x8xf32> to vector<8x8x8xf32>
    %20 = vector.shape_cast %17 : vector<8x8x8xf32> to vector<1x8x1x8x8xf32>
    tpu.vector_store %arg5[%c0_14, %c0_15, %c1, %c0_16, %c0_17], %20 {strides = array<i32>} : memref<1x8x2x8x8xf32, #tpu.memory_space<vmem>>, vector<1x8x1x8x8xf32>,
    return
  }
  func.func @transform_0(%arg0: i32, %arg1: i32) -> (i32, i32, i32, i32) {
    %c0_i32 = arith.constant 0 : i32
    %c0_i32_0 = arith.constant 0 : i32
    %c0_i32_1 = arith.constant 0 : i32
    return %arg0, %arg1, %c0_i32, %c0_i32_0 : i32, i32, i32, i32
  }
  func.func @transform_1(%arg0: i32, %arg1: i32) -> (i32, i32) {
    %c0_i32 = arith.constant 0 : i32
    %c0_i32_0 = arith.constant 0 : i32
    %c0_i32_1 = arith.constant 0 : i32
    return %c0_i32, %c0_i32_0 : i32, i32
  }
  func.func @transform_2(%arg0: i32, %arg1: i32) -> (i32, i32) {
    %c0_i32 = arith.constant 0 : i32
    %c0_i32_0 = arith.constant 0 : i32
    %c0_i32_1 = arith.constant 0 : i32
    return %c0_i32, %c0_i32_0 : i32, i32
  }
  func.func @transform_3(%arg0: i32, %arg1: i32) -> (i32, i32, i32, i32, i32) {
    %c0_i32 = arith.constant 0 : i32
    %c0_i32_0 = arith.constant 0 : i32
    %c0_i32_1 = arith.constant 0 : i32
    %c0_i32_2 = arith.constant 0 : i32
    return %arg0, %arg1, %c0_i32, %c0_i32_0, %c0_i32_1 : i32, i32, i32, i32, i32
  }
}

</mosaic_0001>

<bundles_post_ra>
// kernel: tile.9
= control target key start
LH: loop header
LB: loop body
LE: loop exit
PB: predicated region body
PF: predicated region fallthrough
CT: control target
= control target key end

     0   :  { %vm7_vm0 = vcmask 31744   ;;  %vm13_vm1 = vcmask 64544   ;;  %s39_s0 = inlined_call_operand.vmem [shape: f32[2,4], index: 0, kind: input, shape index: {}]   ;;  %s40_s1 = inlined_call_operand.vmem [shape: f32[1,8], index: 1, kind: output, shape index: {}]  }
   0x1   :  { %v4_v0 = vld [vmem:[%s39_s0] sm:$0x3]  ;;  %s22_s0 = smov 4  }
   0x2   :  { %5 = vst [vmem:[#allocation1] sm:$0x3] %v4_v0 }
   0x9   :  { %v10_v1 = vld [vmem:[#allocation1 + $0x1] sm:$0x1]   ;;  %v6_v2 = vld [vmem:[#allocation1] sm:$0x1]  }
   0xa   :  { %11 = vrot.lane.b32.xlu0 %v10_v1, %s22_s0  ;;  %8 = vst.msk [vmem:[#allocation0] sm:$0x1] %vm7_vm0, %v6_v2  }
  0x7c   :  { %v12_v3 = vpop.permute.xlu0 %11  }
  0x7d   :  { %14 = vst.msk [vmem:[#allocation0] sm:$0x1] %vm13_vm1, %v12_v3  }
  0x84   :  { %v18_v4 = vld [vmem:[#allocation0] sm:$0x1] }
  0x85   :  { %20 = vst [vmem:[%s40_s1] sm:$0x1] %v18_v4 }

// kernel: tile.8
= control target key start
LH: loop header
LB: loop body
LE: loop exit
PB: predicated region body
PF: predicated region fallthrough
CT: control target
= control target key end

     0   :  { %s22_s0 = inlined_call_operand.vmem [shape: f32[4], index: 0, kind: input, shape index: {}]   ;;  %s23_s1 = inlined_call_operand.vmem [shape: f32[2,4], index: 1, kind: output, shape index: {}]  }
   0x1   :  { %v4_v0 = vld [vmem:[%s22_s0] ss:$0 sm:$0xff] }
   0x2   :  { %5 = vst [vmem:[%s23_s1] sm:$0x3] %v4_v0 }

// kernel: upresnet_forward.2
= control target key start
LH: loop header
LB: loop body
LE: loop exit
PB: predicated region body
PF: predicated region fallthrough
CT: control target
= control target key end

     0   :  { %s659_s12 = smov 0   ;;  %s661_s13 = smov 0   ;;  %s740_s0 = inlined_call_operand.vmem [shape: f32[2,8,8,4], index: 0, kind: input, shape index: {}]   ;;  %s741_s1 = inlined_call_operand.vmem [shape: f32[4,16], index: 1, kind: input, shape index: {}]   ;;  %s742_s2 = inlined_call_operand.vmem [shape: f32[1,8], index: 2, kind: input, shape index: {}]   ;;  %s743_s3 = inlined_call_operand.vmem [shape: f32[2,8,2,8,8], index: 3, kind: output, shape index: {}]  }
   0x1   :  { %s663_s14 = smov 0  }
   0x2 LB: > { %s25_s15 = sadd.s32 1, %s631_s13  ;;  %p534_p0 = scmp.ge.s32.totalorder %s635_s14, 1  ;;  %s635_s14 = sphi %s663_s14, %s13_s14   ;;  %s631_s13 = sphi %s661_s13, %s745_s13   ;;  %s627_s12 = sphi %s659_s12, %s744_s12  }
   0x3   : > { %p27_p1 = scmp.ge.s32.totalorder %s25_s15, 2  ;;  %p158_p2 = scmp.lt.s32.totalorder %s635_s14, 3 }
   0x5   : > { %s747_s15 = smov (%p27_p1, %s25_s15), 0  ;;  %p159_p3 = pnand %p534_p0, %p158_p2 }
   0x6   : > { %v220_v0 = vld [vmem:[%s741_s1] sm:$0xf] (!%p159_p3)  ;;  %vm246_vm0 = vcmask (!%p159_p3), 1043456   ;;  %p192_p4 = scmp.lt.s32.totalorder (!%p159_p3), %s627_s12, 1  ;;  %s637_s20 = smov (!%p159_p3), 8   ;;  %vm221_vm1 = vcmask (!%p159_p3), 31744  }
   0x7   : > { %162 = sbr.rel (%p159_p3) target bundleno = 362 (0x16a), region = 32  ;;  %571 = vmatprep.subr.msk.mxu0 (!%p159_p3), %vm246_vm0, %v220_v0  ;;  %585 = vmatprep.subr.msk.mxu1 (!%p159_p3), %vm246_vm0, %v220_v0  ;;  %v549_v1 = vld [vmem:[%s742_s2] ss:$0 sm:$0xff] (!%p159_p3)  ;;  %vm370_vm2 = vcmask (!%p159_p3), 64512   ;;  %s638_s29 = smov (!%p159_p3), 120  }
   0x8   : > { %572 = vmatpush3.msk.msra.mxu0 (!%p159_p3), %vm246_vm0, %v220_v0  ;;  %586 = vmatpush3.msk.msra.mxu1 (!%p159_p3), %vm246_vm0, %v220_v0 }
   0x9   : > { %385 = vrot.lane.b32.xlu0 (!%p159_p3), %v549_v1, %s637_s20 }
   0xe   : > { %s749_s12 = smov (!%p192_p4, %s627_s12), 1 }
   0xf   : > { %s560_s21 = sshll.u32 %s749_s12, 6  ;;  %s561_s25 = sshll.u32 %s749_s12, 7 }
  0x10   : > { %s199_s24 = scalar_lea.vmem %s740_s0, %s560_s21  ;;  %s697_s28 = scalar_lea.vmem %s743_s3, %s561_s25 }
  0x11   : > { %v212_v2 = vld [vmem:[%s199_s24] sm:$0xff]  ;;  %v213_v4 = vld [vmem:[%s199_s24 + $0x8] sm:$0xff]  ;;  %v214_v6 = vld [vmem:[%s199_s24 + $0x10] sm:$0xff] }
  0x12   : > { %v216_v3 = vld [vmem:[%s199_s24 + $0x20] sm:$0xff]  ;;  %573 = vmatprep.mubr.msk.f32.mxu0 %vm221_vm1, %v212_v2  ;;  %v217_v5 = vld [vmem:[%s199_s24 + $0x28] sm:$0xff]  ;;  %v218_v7 = vld [vmem:[%s199_s24 + $0x30] sm:$0xff] }
  0x13   : > { %579 = vmatprep.mubr.msk.f32.mxu1 %vm221_vm1, %v216_v3  ;;  %574 = vmatmul.mubr.msk.f32.vlgmr.msra.gmra.mrb[0].mxu0 %vm221_vm1, %v213_v4  ;;  %v215_v8 = vld [vmem:[%s199_s24 + $0x18] sm:$0xff] }
  0x14   : > { %580 = vmatmul.mubr.msk.f32.vlgmr.msra.gmra.mrb[0].mxu1 %vm221_vm1, %v217_v5  ;;  %576 = vmatprep.mubr.msk.f32.mxu0 %vm221_vm1, %v214_v6  ;;  %v219_v9 = vld [vmem:[%s199_s24 + $0x38] sm:$0xff] }
  0x15   : > { %582 = vmatprep.mubr.msk.f32.mxu1 %vm221_vm1, %v218_v7 }
  0x17   : > { %577 = vmatmul.mubr.msk.f32.gmra.mrb[2].mxu0 %vm221_vm1, %v215_v8 }
  0x18   : > { %583 = vmatmul.mubr.msk.f32.gmra.mrb[2].mxu1 %vm221_vm1, %v219_v9 }
  0x7b   : > { %v386_v10 = vpop.permute.xlu0 %385 }
  0xe6   : > { %v575_v11 = vpop.f32.mrb[0].mxu0 }
  0xe7   : > { %v581_v12 = vpop.f32.mrb[0].mxu1  ;;  %v363_v13 = vadd.f32 %v575_v11, %v549_v1  ;;  %v316_v16 = vpop.f32.mrb[1].mxu0  ;;  %v389_v18 = vadd.f32 %v575_v11, %v386_v10 }
  0xe8   : > { %v367_v14 = vadd.f32 %v581_v12, %v549_v1  ;;  %v393_v15 = vadd.f32 %v581_v12, %v386_v10  ;;  %v336_v17 = vpop.f32.mrb[1].mxu1  ;;  %v362_v19 = vadd.f32 %v549_v1, %v316_v16  ;;  %v388_v23 = vadd.f32 %v386_v10, %v316_v16 }
  0xe9   : > { %v366_v20 = vadd.f32 %v549_v1, %v336_v17  ;;  %372 = vst.msk [vmem:[%s697_s28 + $0x10] sm:$0xff] %vm370_vm2, %v363_v13  ;;  %406 = vrot.lane.b32.xlu1 %v389_v18, %s638_s29  ;;  %v392_v24 = vadd.f32 %v386_v10, %v336_v17 }
  0xea   : > { %376 = vst.msk [vmem:[%s697_s28 + $0x50] sm:$0xff] %vm370_vm2, %v367_v14  ;;  %414 = vrot.lane.b32.xlu0 %v393_v15, %s638_s29  ;;  %371 = vst.msk [vmem:[%s697_s28] sm:$0xff] %vm370_vm2, %v362_v19  ;;  %v578_v21 = vpop.f32.mrb[2].mxu0 }
  0xeb   : > { %375 = vst.msk [vmem:[%s697_s28 + $0x40] sm:$0xff] %vm370_vm2, %v366_v20  ;;  %v584_v22 = vpop.f32.mrb[2].mxu1  ;;  %v365_v25 = vadd.f32 %v578_v21, %v549_v1  ;;  %v326_v27 = vpop.f32.mrb[3].mxu0  ;;  %v391_v31 = vadd.f32 %v578_v21, %v386_v10 }
  0xec   : > { %v369_v26 = vadd.f32 %v584_v22, %v549_v1  ;;  %v346_v28 = vpop.f32.mrb[3].mxu1  ;;  %v364_v29 = vadd.f32 %v549_v1, %v326_v27  ;;  %v390_v32 = vadd.f32 %v386_v10, %v326_v27  ;;  %v395_v33 = vadd.f32 %v584_v22, %v386_v10 }
  0xed   : > { %v368_v30 = vadd.f32 %v549_v1, %v346_v28  ;;  %374 = vst.msk [vmem:[%s697_s28 + $0x30] sm:$0xff] %vm370_vm2, %v365_v25  ;;  %412 = vrot.lane.b32.xlu1 %v392_v24, %s638_s29  ;;  %v394_v34 = vadd.f32 %v386_v10, %v346_v28 }
  0xee   : > { %378 = vst.msk [vmem:[%s697_s28 + $0x70] sm:$0xff] %vm370_vm2, %v369_v26  ;;  %404 = vrot.lane.b32.xlu0 %v388_v23, %s638_s29  ;;  %373 = vst.msk [vmem:[%s697_s28 + $0x20] sm:$0xff] %vm370_vm2, %v364_v29 }
  0xef   : > { %377 = vst.msk [vmem:[%s697_s28 + $0x60] sm:$0xff] %vm370_vm2, %v368_v30 }
  0xf1   : > { %408 = vrot.lane.b32.xlu1 %v390_v32, %s638_s29 }
  0xf2   : > { %410 = vrot.lane.b32.xlu0 %v391_v31, %s638_s29 }
  0xf5   : > { %416 = vrot.lane.b32.xlu1 %v394_v34, %s638_s29 }
  0xf6   : > { %418 = vrot.lane.b32.xlu0 %v395_v33, %s638_s29 }
 0x15b   : > { %v407_v36 = vpop.permute.xlu1 %406 }
 0x15c   : > { %v415_v35 = vpop.permute.xlu0 %414  ;;  %551 = vst.msk [vmem:[%s697_s28 + $0x18] sm:$0xff] %vm370_vm2, %v407_v36 }
 0x15d   : > { %555 = vst.msk [vmem:[%s697_s28 + $0x58] sm:$0xff] %vm370_vm2, %v415_v35 }
 0x15f   : > { %v413_v37 = vpop.permute.xlu1 %412 }
 0x160   : > { %v405_v38 = vpop.permute.xlu0 %404  ;;  %554 = vst.msk [vmem:[%s697_s28 + $0x48] sm:$0xff] %vm370_vm2, %v413_v37 }
 0x161   : > { %550 = vst.msk [vmem:[%s697_s28 + $0x8] sm:$0xff] %vm370_vm2, %v405_v38 }
 0x163   : > { %v409_v40 = vpop.permute.xlu1 %408 }
 0x164   : > { %v411_v39 = vpop.permute.xlu0 %410  ;;  %552 = vst.msk [vmem:[%s697_s28 + $0x28] sm:$0xff] %vm370_vm2, %v409_v40 }
 0x165   : > { %553 = vst.msk [vmem:[%s697_s28 + $0x38] sm:$0xff] %vm370_vm2, %v411_v39 }
 0x167   : > { %v417_v42 = vpop.permute.xlu1 %416 }
 0x168   : > { %v419_v41 = vpop.permute.xlu0 %418  ;;  %556 = vst.msk [vmem:[%s697_s28 + $0x68] sm:$0xff] %vm370_vm2, %v417_v42 }
 0x169   : > { %557 = vst.msk [vmem:[%s697_s28 + $0x78] sm:$0xff] %vm370_vm2, %v419_v41 }
 0x16a PF: > { %s13_s14 = sadd.s32 1, %s635_s14   ;;  %s744_s12 = smov %s631_s13 }
 0x16b   : > { %p10_p5 = scmp.ge.s32.totalorder %s13_s14, 4   ;;  %s745_s13 = smov %s747_s15 }
 0x16d   :  { %12 = sbr.rel (!%p10_p5) target bundleno = 2 (0x2), region = 63 }

// kernel: upresnet_forward.3
= control target key start
LH: loop header
LB: loop body
LE: loop exit
PB: predicated region body
PF: predicated region fallthrough
CT: control target
= control target key end

     0   :  { %s16914_s30 = smov 0   ;;  %s16916_s10 = smov 0   ;;  %s19972_s0 = inlined_call_operand.vmem [shape: f32[2,20,18,4], index: 0, kind: input, shape index: {}]   ;;  %s19973_s1 = inlined_call_operand.vmem [shape: f32[2,20,18,4], index: 1, kind: input, shape index: {}]   ;;  %s19974_s2 = inlined_call_operand.vmem [shape: f32[3,3,4,8], index: 2, kind: input, shape index: {}]   ;;  %s19975_s3 = inlined_call_operand.vmem [shape: f32[3,3,4,8], index: 3, kind: input, shape index: {}]   ;;  %s19976_s4 = inlined_call_operand.vmem [shape: f32[1,8], index: 4, kind: input, shape index: {}]   ;;  %s19977_s5 = inlined_call_operand.vmem [shape: f32[1,8], index: 5, kind: input, shape index: {}]   ;;  %s19978_s6 = inlined_call_operand.vmem [shape: f32[3,3,8,8], index: 6, kind: input, shape index: {}]   ;;  %s19979_s7 = inlined_call_operand.vmem [shape: f32[1,8], index: 7, kind: input, shape index: {}]   ;;  %s19980_s8 = inlined_call_operand.vmem [shape: f32[1,8], index: 8, kind: input, shape index: {}]   ;;  %s19981_s9 = inlined_call_operand.vmem [shape: f32[2,16,16,8], index: 9, kind: output, shape index: {}]  }
   0x1   :  { %s16918_s11 = smov 0  }
   0x2 LB: > { %s31_s12 = sadd.s32 1, %s16857_s10  ;;  %p12102_p0 = scmp.ge.s32.totalorder %s16861_s11, 1  ;;  %s16861_s11 = sphi %s16918_s11, %s19_s11   ;;  %s16857_s10 = sphi %s16916_s10, %s20110_s10   ;;  %s16853_s30 = sphi %s16914_s30, %s20109_s30  }
   0x3   : > { %p33_p1 = scmp.ge.s32.totalorder %s31_s12, 2  ;;  %p311_p2 = scmp.lt.s32.totalorder %s16861_s11, 3 }
   0x5   : > { %s20112_s12 = smov (%p33_p1, %s31_s12), 0  ;;  %p312_p3 = pnand %p12102_p0, %p311_p2 }
   0x7   : > { %315 = sbr.rel (%p312_p3) target bundleno = 1910 (0x776), region = 56 }
   0xe   : > { %vm565_vm0 = vcmask 1043456   ;;  %v12295_v0 = vld [vmem:[%s19975_s3 + $0x8] sm:$0xf]  ;;  %p357_p4 = scmp.lt.s32.totalorder %s16853_s30, 1  ;;  %v12369_v1 = vld [vmem:[%s19974_s2 + $0xc] sm:$0xf] }
   0xf   : > { %14767 = vmatprep.subr.msk.mxu0 %vm565_vm0, %v12295_v0  ;;  %vm456_vm1 = vcmask 31744   ;;  %v16958_v5 = vld [vmem:[%s19975_s3 + $0xc] sm:$0xf]  ;;  %v17052_v42 = vld [vmem:[%s19974_s2 + $0x10] sm:$0xf]  ;;  %vm8325_vm2 = vcmask 64512  }
  0x10   : > { %14768 = vmatpush3.msk.msra.mxu0 %vm565_vm0, %v12295_v0  ;;  %s20114_s30 = smov (!%p357_p4, %s16853_s30), 1  ;;  %vm8328_vm3 = vcmask 58368  }
  0x11   : > { %14823 = vmatprep.subr.msk.mxu0 %vm565_vm0, %v12369_v1  ;;  %s16813_s17 = smul.u32 480, %s20114_s30  ;;  %s13523_s16 = sshll.u32 %s20114_s30, 8 }
  0x12   : > { %s19836_s19 = scalar_lea.vmem %s19981_s9, %s13523_s16 }
  0x13   : > { %s16949_s20 = scalar_lea.vmem %s19973_s1, %s16813_s17  ;;  %s17032_s25 = scalar_lea.vmem %s19972_s0, %s16813_s17 }
  0x14   : > { %v2460_v2 = vld [vmem:[%s16949_s20 + $0x2] sm:$0xff]  ;;  %v2461_v3 = vld [vmem:[%s16949_s20 + $0xa] sm:$0xff]  ;;  %v2462_v4 = vld [vmem:[%s16949_s20 + $0x1a] sm:$0xff] }
  0x15   : > { %14769 = vmatprep.mubr.msk.f32.mxu0 %vm456_vm1, %v2460_v2  ;;  %v2463_v6 = vld [vmem:[%s16949_s20 + $0x22] sm:$0xff]  ;;  %v2464_v7 = vld [vmem:[%s16949_s20 + $0x32] sm:$0xff]  ;;  %v2465_v8 = vld [vmem:[%s16949_s20 + $0x3a] sm:$0xff] }
  0x16   : > { %14770 = vmatmul.mubr.msk.f32.vlgmr.msra.gmra.mrb[0].mxu0 %vm456_vm1, %v2461_v3  ;;  %v2466_v9 = vld [vmem:[%s16949_s20 + $0x4a] sm:$0xff]  ;;  %v2467_v10 = vld [vmem:[%s16949_s20 + $0x52] sm:$0xff]  ;;  %v2468_v11 = vld [vmem:[%s16949_s20 + $0x62] sm:$0xff] }
  0x17   : > { %14824 = vmatpush3.msk.msra.mxu0 %vm565_vm0, %v12369_v1  ;;  %14772 = vmatprep.mubr.msk.f32.mxu0 %vm456_vm1, %v2462_v4  ;;  %v2469_v12 = vld [vmem:[%s16949_s20 + $0x6a] sm:$0xff]  ;;  %v2470_v13 = vld [vmem:[%s16949_s20 + $0x7a] sm:$0xff]  ;;  %v2471_v14 = vld [vmem:[%s16949_s20 + $0x82] sm:$0xff] }
  0x18   : > { %14879 = vmatprep.subr.msk.mxu0 %vm565_vm0, %v16958_v5  ;;  %v2472_v15 = vld [vmem:[%s16949_s20 + $0x92] sm:$0xff]  ;;  %v2473_v16 = vld [vmem:[%s16949_s20 + $0x9a] sm:$0xff]  ;;  %v2474_v17 = vld [vmem:[%s16949_s20 + $0xaa] sm:$0xff] }
  0x19   : > { %v2475_v18 = vld [vmem:[%s16949_s20 + $0xb2] sm:$0xff]  ;;  %v2476_v19 = vld [vmem:[%s16949_s20 + $0xc2] sm:$0xff]  ;;  %v2477_v20 = vld [vmem:[%s16949_s20 + $0xca] sm:$0xff] }
  0x1a   : > { %14773 = vmatmul.mubr.msk.f32.gmra.mrb[2].mxu0 %vm456_vm1, %v2463_v6  ;;  %v2478_v21 = vld [vmem:[%s16949_s20 + $0xda] sm:$0xff]  ;;  %v2479_v22 = vld [vmem:[%s16949_s20 + $0xe2] sm:$0xff]  ;;  %v2480_v23 = vld [vmem:[%s16949_s20 + $0xf2] sm:$0xff] }
  0x1b   : > { %14775 = vmatprep.mubr.msk.f32.mxu0 %vm456_vm1, %v2464_v7  ;;  %v2481_v24 = vld [vmem:[%s16949_s20 + $0xfa] sm:$0xff]  ;;  %v2482_v25 = vld [vmem:[%s16949_s20 + $0x10a] sm:$0xff]  ;;  %v2483_v26 = vld [vmem:[%s16949_s20 + $0x112] sm:$0xff] }
  0x1c   : > { %v2484_v27 = vld [vmem:[%s16949_s20 + $0x122] sm:$0xff]  ;;  %v2485_v28 = vld [vmem:[%s16949_s20 + $0x12a] sm:$0xff]  ;;  %v2486_v29 = vld [vmem:[%s16949_s20 + $0x13a] sm:$0xff] }
  0x1d   : > { %v2487_v30 = vld [vmem:[%s16949_s20 + $0x142] sm:$0xff]  ;;  %v2488_v31 = vld [vmem:[%s16949_s20 + $0x152] sm:$0xff]  ;;  %v2489_v32 = vld [vmem:[%s16949_s20 + $0x15a] sm:$0xff] }
  0x1e   : > { %14776 = vmatmul.mubr.msk.f32.gmra.mrb[4].mxu0 %vm456_vm1, %v2465_v8  ;;  %v2490_v33 = vld [vmem:[%s16949_s20 + $0x16a] sm:$0xff]  ;;  %v2491_v34 = vld [vmem:[%s16949_s20 + $0x172] sm:$0xff]  ;;  %v2492_v35 = vld [vmem:[%s16949_s20 + $0x182] sm:$0xff] }
  0x1f   : > { %14778 = vmatprep.mubr.msk.f32.mxu0 %vm456_vm1, %v2466_v9  ;;  %v2493_v36 = vld [vmem:[%s16949_s20 + $0x18a] sm:$0xff]  ;;  %v2494_v37 = vld [vmem:[%s16949_s20 + $0x19a] sm:$0xff]  ;;  %v2495_v38 = vld [vmem:[%s16949_s20 + $0x1a2] sm:$0xff] }
  0x20   : > { %v17038_v39 = vld [vmem:[%s17032_s25 + $0x18] sm:$0xff]  ;;  %v17044_v40 = vld [vmem:[%s17032_s25 + $0x20] sm:$0xff]  ;;  %v17047_v41 = vld [vmem:[%s17032_s25 + $0x30] sm:$0xff] }
  0x21   : > { %v17061_v43 = vld [vmem:[%s17032_s25 + $0x38] sm:$0xff]  ;;  %v17064_v44 = vld [vmem:[%s17032_s25 + $0x48] sm:$0xff]  ;;  %v17073_v45 = vld [vmem:[%s17032_s25 + $0x50] sm:$0xff] }
  0x22   : > { %14779 = vmatmul.mubr.msk.f32.gmra.mrb[6].mxu0 %vm456_vm1, %v2467_v10  ;;  %v17076_v46 = vld [vmem:[%s17032_s25 + $0x60] sm:$0xff]  ;;  %v17083_v47 = vld [vmem:[%s17032_s25 + $0x68] sm:$0xff]  ;;  %v17086_v48 = vld [vmem:[%s17032_s25 + $0x78] sm:$0xff] }
  0x23   : > { %14781 = vmatprep.mubr.msk.f32.mxu0 %vm456_vm1, %v2468_v11  ;;  %v17093_v49 = vld [vmem:[%s17032_s25 + $0x80] sm:$0xff]  ;;  %v17096_v50 = vld [vmem:[%s17032_s25 + $0x90] sm:$0xff]  ;;  %v17103_v51 = vld [vmem:[%s17032_s25 + $0x98] sm:$0xff] }
  0x24   : > { %v17106_v52 = vld [vmem:[%s17032_s25 + $0xa8] sm:$0xff]  ;;  %v17113_v53 = vld [vmem:[%s17032_s25 + $0xb0] sm:$0xff]  ;;  %v17116_v54 = vld [vmem:[%s17032_s25 + $0xc0] sm:$0xff] }
  0x25   : > { %v17123_v55 = vld [vmem:[%s17032_s25 + $0xc8] sm:$0xff]  ;;  %v17126_v56 = vld [vmem:[%s17032_s25 + $0xd8] sm:$0xff]  ;;  %v17133_v57 = vld [vmem:[%s17032_s25 + $0xe0] sm:$0xff] }
  0x26   : > { %14782 = vmatmul.mubr.msk.f32.gmra.mrb[8].mxu0 %vm456_vm1, %v2469_v12  ;;  %v17136_v58 = vld [vmem:[%s17032_s25 + $0xf0] sm:$0xff]  ;;  %v17143_v59 = vld [vmem:[%s17032_s25 + $0xf8] sm:$0xff]  ;;  %v17146_v60 = vld [vmem:[%s17032_s25 + $0x108] sm:$0xff] }
  0x27   : > { %14784 = vmatprep.mubr.msk.f32.mxu0 %vm456_vm1, %v2470_v13  ;;  %v17153_v61 = vld [vmem:[%s17032_s25 + $0x110] sm:$0xff]  ;;  %v17156_v62 = vld [vmem:[%s17032_s25 + $0x120] sm:$0xff]  ;;  %v17163_v63 = vld [vmem:[%s17032_s25 + $0x128] sm:$0xff] }
  0x28   : > { %v17166_v0 = vld [vmem:[%s17032_s25 + $0x138] sm:$0xff]  ;;  %v17173_v1 = vld [vmem:[%s17032_s25 + $0x140] sm:$0xff]  ;;  %v17176_v2 = vld [vmem:[%s17032_s25 + $0x150] sm:$0xff] }
  0x29   : > { %v17183_v3 = vld [vmem:[%s17032_s25 + $0x158] sm:$0xff]  ;;  %v17186_v4 = vld [vmem:[%s17032_s25 + $0x168] sm:$0xff]  ;;  %v17196_v6 = vld [vmem:[%s17032_s25 + $0x180] sm:$0xff] }
  0x2a   : > { %14785 = vmatmul.mubr.msk.f32.gmra.mrb[10].mxu0 %vm456_vm1, %v2471_v14  ;;  %v17203_v7 = vld [vmem:[%s17032_s25 + $0x188] sm:$0xff]  ;;  %v17206_v8 = vld [vmem:[%s17032_s25 + $0x198] sm:$0xff]  ;;  %v17213_v9 = vld [vmem:[%s17032_s25 + $0x1a0] sm:$0xff] }
  0x2b   : > { %14787 = vmatprep.mubr.msk.f32.mxu0 %vm456_vm1, %v2472_v15  ;;  %v12367_v10 = vld [vmem:[%s17032_s25 + $0x1b0] sm:$0xff]  ;;  %v12368_v11 = vld [vmem:[%s17032_s25 + $0x1b8] sm:$0xff]  ;;  %v12408_v13 = vld [vmem:[%s16949_s20 + $0x20] sm:$0xff] }
  0x2c   : > { %v12407_v12 = vld [vmem:[%s16949_s20 + $0x18] sm:$0xff]  ;;  %v12409_v14 = vld [vmem:[%s16949_s20 + $0x30] sm:$0xff] }
  0x2d   : > { %v17228_v15 = vld [vmem:[%s19975_s3 + $0x10] sm:$0xf] }
  0x2e   : > { %14788 = vmatmul.mubr.msk.f32.gmra.mrb[12].mxu0 %vm456_vm1, %v2473_v16  ;;  %v12410_v16 = vld [vmem:[%s16949_s20 + $0x38] sm:$0xff] }
  0x2f   : > { %14790 = vmatprep.mubr.msk.f32.mxu0 %vm456_vm1, %v2474_v17  ;;  %v12411_v17 = vld [vmem:[%s16949_s20 + $0x48] sm:$0xff] }
  0x32   : > { %14791 = vmatmul.mubr.msk.f32.gmra.mrb[14].mxu0 %vm456_vm1, %v2475_v18  ;;  %v12412_v18 = vld [vmem:[%s16949_s20 + $0x50] sm:$0xff] }
  0x33   : > { %14793 = vmatprep.mubr.msk.f32.mxu0 %vm456_vm1, %v2476_v19  ;;  %v12413_v19 = vld [vmem:[%s16949_s20 + $0x60] sm:$0xff] }
  0x36   : > { %14794 = vmatmul.mubr.msk.f32.gmra.mrb[16].mxu0 %vm456_vm1, %v2477_v20  ;;  %v12414_v20 = vld [vmem:[%s16949_s20 + $0x68] sm:$0xff] }
  0x37   : > { %14796 = vmatprep.mubr.msk.f32.mxu0 %vm456_vm1, %v2478_v21  ;;  %v12415_v21 = vld [vmem:[%s16949_s20 + $0x78] sm:$0xff] }
  0x3a   : > { %14797 = vmatmul.mubr.msk.f32.gmra.mrb[18].mxu0 %vm456_vm1, %v2479_v22  ;;  %v455_v22 = vld [vmem:[%s19975_s3] sm:$0xf] }
  0x3b   : > { %14799 = vmatprep.mubr.msk.f32.mxu0 %vm456_vm1, %v2480_v23  ;;  %v419_v23 = vld [vmem:[%s16949_s20] sm:$0xff]  ;;  %14487 = vmatprep.subr.msk.mxu1 %vm565_vm0, %v455_v22 }
  0x3c   : > { %14488 = vmatpush3.msk.msra.mxu1 %vm565_vm0, %v455_v22  ;;  %14489 = vmatprep.mubr.msk.f32.mxu1 %vm456_vm1, %v419_v23  ;;  %v12442_v22 = vld [vmem:[%s16949_s20 + $0x1b8] sm:$0xff] }
  0x3d   : > { %v17336_v23 = vld [vmem:[%s17032_s25 + $0x19] sm:$0xff] }
  0x3e   : > { %14800 = vmatmul.mubr.msk.f32.gmra.mrb[20].mxu0 %vm456_vm1, %v2481_v24  ;;  %v420_v24 = vld [vmem:[%s16949_s20 + $0x8] sm:$0xff] }
  0x3f   : > { %14802 = vmatprep.mubr.msk.f32.mxu0 %vm456_vm1, %v2482_v25  ;;  %v12416_v25 = vld [vmem:[%s16949_s20 + $0x80] sm:$0xff]  ;;  %14490 = vmatmul.mubr.msk.f32.vlgmr.msra.gmra.mrb[0].mxu1 %vm456_vm1, %v420_v24 }
  0x40   : > { %14492 = vmatprep.mubr.msk.f32.mxu1 %vm456_vm1, %v12407_v12  ;;  %v17344_v24 = vld [vmem:[%s17032_s25 + $0x21] sm:$0xff] }
  0x42   : > { %14803 = vmatmul.mubr.msk.f32.gmra.mrb[22].mxu0 %vm456_vm1, %v2483_v26  ;;  %v12417_v26 = vld [vmem:[%s16949_s20 + $0x90] sm:$0xff] }
  0x43   : > { %14805 = vmatprep.mubr.msk.f32.mxu0 %vm456_vm1, %v2484_v27  ;;  %v12418_v27 = vld [vmem:[%s16949_s20 + $0x98] sm:$0xff]  ;;  %14493 = vmatmul.mubr.msk.f32.gmra.mrb[2].mxu1 %vm456_vm1, %v12408_v13 }
  0x44   : > { %14495 = vmatprep.mubr.msk.f32.mxu1 %vm456_vm1, %v12409_v14 }
  0x46   : > { %14806 = vmatmul.mubr.msk.f32.gmra.mrb[24].mxu0 %vm456_vm1, %v2485_v28  ;;  %v12419_v28 = vld [vmem:[%s16949_s20 + $0xa8] sm:$0xff] }
  0x47   : > { %14808 = vmatprep.mubr.msk.f32.mxu0 %vm456_vm1, %v2486_v29  ;;  %v12420_v29 = vld [vmem:[%s16949_s20 + $0xb0] sm:$0xff]  ;;  %14496 = vmatmul.mubr.msk.f32.gmra.mrb[4].mxu1 %vm456_vm1, %v12410_v16 }
  0x48   : > { %14498 = vmatprep.mubr.msk.f32.mxu1 %vm456_vm1, %v12411_v17 }
  0x4a   : > { %14809 = vmatmul.mubr.msk.f32.gmra.mrb[26].mxu0 %vm456_vm1, %v2487_v30  ;;  %v12421_v30 = vld [vmem:[%s16949_s20 + $0xc0] sm:$0xff] }
  0x4b   : > { %14811 = vmatprep.mubr.msk.f32.mxu0 %vm456_vm1, %v2488_v31  ;;  %v12422_v31 = vld [vmem:[%s16949_s20 + $0xc8] sm:$0xff]  ;;  %14499 = vmatmul.mubr.msk.f32.gmra.mrb[6].mxu1 %vm456_vm1, %v12412_v18 }
  0x4c   : > { %14501 = vmatprep.mubr.msk.f32.mxu1 %vm456_vm1, %v12413_v19 }
  0x4e   : > { %14812 = vmatmul.mubr.msk.f32.gmra.mrb[28].mxu0 %vm456_vm1, %v2489_v32  ;;  %v12423_v32 = vld [vmem:[%s16949_s20 + $0xd8] sm:$0xff] }
  0x4f   : > { %14814 = vmatprep.mubr.msk.f32.mxu0 %vm456_vm1, %v2490_v33  ;;  %v12424_v33 = vld [vmem:[%s16949_s20 + $0xe0] sm:$0xff]  ;;  %14502 = vmatmul.mubr.msk.f32.gmra.mrb[8].mxu1 %vm456_vm1, %v12414_v20 }
  0x50   : > { %14504 = vmatprep.mubr.msk.f32.mxu1 %vm456_vm1, %v12415_v21 }
  0x52   : > { %14815 = vmatmul.mubr.msk.f32.gmra.mrb[30].mxu0 %vm456_vm1, %v2491_v34  ;;  %v12425_v34 = vld [vmem:[%s16949_s20 + $0xf0] sm:$0xff] }
  0x53   : > { %14817 = vmatprep.mubr.msk.f32.mxu0 %vm456_vm1, %v2492_v35  ;;  %v12426_v35 = vld [vmem:[%s16949_s20 + $0xf8] sm:$0xff]  ;;  %14505 = vmatmul.mubr.msk.f32.gmra.mrb[10].mxu1 %vm456_vm1, %v12416_v25 }
  0x54   : > { %14507 = vmatprep.mubr.msk.f32.mxu1 %vm456_vm1, %v12417_v26 }
  0x56   : > { %14818 = vmatmul.mubr.msk.f32.gmra.mrb[32].mxu0 %vm456_vm1, %v2493_v36  ;;  %v12427_v36 = vld [vmem:[%s16949_s20 + $0x108] sm:$0xff] }
  0x57   : > { %14820 = vmatprep.mubr.msk.f32.mxu0 %vm456_vm1, %v2494_v37  ;;  %v12428_v37 = vld [vmem:[%s16949_s20 + $0x110] sm:$0xff]  ;;  %14508 = vmatmul.mubr.msk.f32.gmra.mrb[12].mxu1 %vm456_vm1, %v12418_v27 }
  0x58   : > { %14510 = vmatprep.mubr.msk.f32.mxu1 %vm456_vm1, %v12419_v28 }
  0x5a   : > { %14821 = vmatmul.mubr.msk.f32.gmra.mrb[34].mxu0 %vm456_vm1, %v2495_v38  ;;  %v12429_v38 = vld [vmem:[%s16949_s20 + $0x120] sm:$0xff] }
  0x5b   : > { %14825 = vmatprep.mubr.msk.f32.mxu0 %vm456_vm1, %v17038_v39  ;;  %14511 = vmatmul.mubr.msk.f32.gmra.mrb[14].mxu1 %vm456_vm1, %v12420_v29 }
  0x5c   : > { %14513 = vmatprep.mubr.msk.f32.mxu1 %vm456_vm1, %v12421_v30 }
  0x5e   : > { %14826 = vmatmul.mubr.msk.f32.vlgmr.msra.gmra.mrb[0].mxu0 %vm456_vm1, %v17044_v40 }
  0x5f   : > { %14880 = vmatpush3.msk.msra.mxu0 %vm565_vm0, %v16958_v5  ;;  %14828 = vmatprep.mubr.msk.f32.mxu0 %vm456_vm1, %v17047_v41  ;;  %v17193_v5 = vld [vmem:[%s17032_s25 + $0x170] sm:$0xff] }
  0x60   : > { %14935 = vmatprep.subr.msk.mxu0 %vm565_vm0, %v17052_v42  ;;  %14514 = vmatmul.mubr.msk.f32.gmra.mrb[16].mxu1 %vm456_vm1, %v12422_v31 }
  0x61   : > { %14516 = vmatprep.mubr.msk.f32.mxu1 %vm456_vm1, %v12423_v32 }
  0x62   : > { %14829 = vmatmul.mubr.msk.f32.gmra.mrb[2].mxu0 %vm456_vm1, %v17061_v43 }
  0x63   : > { %14831 = vmatprep.mubr.msk.f32.mxu0 %vm456_vm1, %v17064_v44 }
  0x64   : > { %14517 = vmatmul.mubr.msk.f32.gmra.mrb[18].mxu1 %vm456_vm1, %v12424_v33 }
  0x65   : > { %14519 = vmatprep.mubr.msk.f32.mxu1 %vm456_vm1, %v12425_v34 }
  0x66   : > { %14832 = vmatmul.mubr.msk.f32.gmra.mrb[4].mxu0 %vm456_vm1, %v17073_v45 }
  0x67   : > { %14834 = vmatprep.mubr.msk.f32.mxu0 %vm456_vm1, %v17076_v46 }
  0x68   : > { %14520 = vmatmul.mubr.msk.f32.gmra.mrb[20].mxu1 %vm456_vm1, %v12426_v35 }
  0x69   : > { %14522 = vmatprep.mubr.msk.f32.mxu1 %vm456_vm1, %v12427_v36 }
  0x6a   : > { %14835 = vmatmul.mubr.msk.f32.gmra.mrb[6].mxu0 %vm456_vm1, %v17083_v47 }
  0x6b   : > { %14837 = vmatprep.mubr.msk.f32.mxu0 %vm456_vm1, %v17086_v48 }
  0x6c   : > { %14523 = vmatmul.mubr.msk.f32.gmra.mrb[22].mxu1 %vm456_vm1, %v12428_v37 }
  0x6d   : > { %14525 = vmatprep.mubr.msk.f32.mxu1 %vm456_vm1, %v12429_v38 }
  0x6e   : > { %14838 = vmatmul.mubr.msk.f32.gmra.mrb[8].mxu0 %vm456_vm1, %v17093_v49 }
  0x6f   : > { %14840 = vmatprep.mubr.msk.f32.mxu0 %vm456_vm1, %v17096_v50 }
  0x72   : > { %14841 = vmatmul.mubr.msk.f32.gmra.mrb[10].mxu0 %vm456_vm1, %v17103_v51 }
  0x73   : > { %14843 = vmatprep.mubr.msk.f32.mxu0 %vm456_vm1, %v17106_v52 }
  0x76   : > { %14844 = vmatmul.mubr.msk.f32.gmra.mrb[12].mxu0 %vm456_vm1, %v17113_v53 }
  0x77   : > { %14846 = vmatprep.mubr.msk.f32.mxu0 %vm456_vm1, %v17116_v54 }
  0x7a   : > { %14847 = vmatmul.mubr.msk.f32.gmra.mrb[14].mxu0 %vm456_vm1, %v17123_v55 }
  0x7b   : > { %14849 = vmatprep.mubr.msk.f32.mxu0 %vm456_vm1, %v17126_v56 }
  0x7e   : > { %14850 = vmatmul.mubr.msk.f32.gmra.mrb[16].mxu0 %vm456_vm1, %v17133_v57 }
  0x7f   : > { %14852 = vmatprep.mubr.msk.f32.mxu0 %vm456_vm1, %v17136_v58 }
  0x82   : > { %14853 = vmatmul.mubr.msk.f32.gmra.mrb[18].mxu0 %vm456_vm1, %v17143_v59 }
  0x83   : > { %14855 = vmatprep.mubr.msk.f32.mxu0 %vm456_vm1, %v17146_v60 }
  0x86   : > { %14856 = vmatmul.mubr.msk.f32.gmra.mrb[20].mxu0 %vm456_vm1, %v17153_v61 }
  0x87   : > { %14858 = vmatprep.mubr.msk.f32.mxu0 %vm456_vm1, %v17156_v62 }
  0x8a   : > { %14859 = vmatmul.mubr.msk.f32.gmra.mrb[22].mxu0 %vm456_vm1, %v17163_v63 }
  0x8b   : > { %14861 = vmatprep.mubr.msk.f32.mxu0 %vm456_vm1, %v17166_v0 }
  0x8e   : > { %14862 = vmatmul.mubr.msk.f32.gmra.mrb[24].mxu0 %vm456_vm1, %v17173_v1 }
  0x8f   : > { %14864 = vmatprep.mubr.msk.f32.mxu0 %vm456_vm1, %v17176_v2 }
  0x92   : > { %14865 = vmatmul.mubr.msk.f32.gmra.mrb[26].mxu0 %vm456_vm1, %v17183_v3 }
  0x93   : > { %14867 = vmatprep.mubr.msk.f32.mxu0 %vm456_vm1, %v17186_v4 }
  0x96   : > { %14868 = vmatmul.mubr.msk.f32.gmra.mrb[28].mxu0 %vm456_vm1, %v17193_v5 }
  0x97   : > { %14870 = vmatprep.mubr.msk.f32.mxu0 %vm456_vm1, %v17196_v6 }
  0x9a   : > { %14871 = vmatmul.mubr.msk.f32.gmra.mrb[30].mxu0 %vm456_vm1, %v17203_v7 }
  0x9b   : > { %14873 = vmatprep.mubr.msk.f32.mxu0 %vm456_vm1, %v17206_v8 }
  0x9e   : > { %14874 = vmatmul.mubr.msk.f32.gmra.mrb[32].mxu0 %vm456_vm1, %v17213_v9 }
  0x9f   : > { %14876 = vmatprep.mubr.msk.f32.mxu0 %vm456_vm1, %v12367_v10  ;;  %v12431_v10 = vld [vmem:[%s16949_s20 + $0x138] sm:$0xff] }
  0xa2   : > { %14877 = vmatmul.mubr.msk.f32.gmra.mrb[34].mxu0 %vm456_vm1, %v12368_v11  ;;  %v12432_v11 = vld [vmem:[%s16949_s20 + $0x140] sm:$0xff] }
  0xa3   : > { %14881 = vmatprep.mubr.msk.f32.mxu0 %vm456_vm1, %v12407_v12  ;;  %v12433_v12 = vld [vmem:[%s16949_s20 + $0x150] sm:$0xff] }
  0xa6   : > { %14882 = vmatmul.mubr.msk.f32.vlgmr.msra.gmra.mrb[0].mxu0 %vm456_vm1, %v12408_v13  ;;  %v12434_v13 = vld [vmem:[%s16949_s20 + $0x158] sm:$0xff] }
  0xa7   : > { %14936 = vmatpush3.msk.msra.mxu0 %vm565_vm0, %v17052_v42  ;;  %14884 = vmatprep.mubr.msk.f32.mxu0 %vm456_vm1, %v12409_v14  ;;  %v12430_v42 = vld [vmem:[%s16949_s20 + $0x128] sm:$0xff] }
  0xa8   : > { %14991 = vmatprep.subr.msk.mxu0 %vm565_vm0, %v17228_v15  ;;  %v12435_v14 = vld [vmem:[%s16949_s20 + $0x168] sm:$0xff]  ;;  %14526 = vmatmul.mubr.msk.f32.gmra.mrb[24].mxu1 %vm456_vm1, %v12430_v42 }
  0xa9   : > { %14528 = vmatprep.mubr.msk.f32.mxu1 %vm456_vm1, %v12431_v10 }
  0xaa   : > { %14885 = vmatmul.mubr.msk.f32.gmra.mrb[2].mxu0 %vm456_vm1, %v12410_v16  ;;  %v12436_v16 = vld [vmem:[%s16949_s20 + $0x170] sm:$0xff] }
  0xab   : > { %14887 = vmatprep.mubr.msk.f32.mxu0 %vm456_vm1, %v12411_v17  ;;  %v12437_v17 = vld [vmem:[%s16949_s20 + $0x180] sm:$0xff] }
  0xac   : > { %14529 = vmatmul.mubr.msk.f32.gmra.mrb[26].mxu1 %vm456_vm1, %v12432_v11 }
  0xad   : > { %14531 = vmatprep.mubr.msk.f32.mxu1 %vm456_vm1, %v12433_v12 }
  0xae   : > { %14888 = vmatmul.mubr.msk.f32.gmra.mrb[4].mxu0 %vm456_vm1, %v12412_v18  ;;  %v12438_v18 = vld [vmem:[%s16949_s20 + $0x188] sm:$0xff] }
  0xaf   : > { %14890 = vmatprep.mubr.msk.f32.mxu0 %vm456_vm1, %v12413_v19  ;;  %v12439_v19 = vld [vmem:[%s16949_s20 + $0x198] sm:$0xff] }
  0xb0   : > { %14532 = vmatmul.mubr.msk.f32.gmra.mrb[28].mxu1 %vm456_vm1, %v12434_v13 }
  0xb1   : > { %14534 = vmatprep.mubr.msk.f32.mxu1 %vm456_vm1, %v12435_v14 }
  0xb2   : > { %14891 = vmatmul.mubr.msk.f32.gmra.mrb[6].mxu0 %vm456_vm1, %v12414_v20  ;;  %v12440_v20 = vld [vmem:[%s16949_s20 + $0x1a0] sm:$0xff] }
  0xb3   : > { %14893 = vmatprep.mubr.msk.f32.mxu0 %vm456_vm1, %v12415_v21  ;;  %v12441_v21 = vld [vmem:[%s16949_s20 + $0x1b0] sm:$0xff] }
  0xb4   : > { %14535 = vmatmul.mubr.msk.f32.gmra.mrb[30].mxu1 %vm456_vm1, %v12436_v16 }
  0xb5   : > { %14537 = vmatprep.mubr.msk.f32.mxu1 %vm456_vm1, %v12437_v17 }
  0xb6   : > { %14894 = vmatmul.mubr.msk.f32.gmra.mrb[8].mxu0 %vm456_vm1, %v12416_v25  ;;  %v17347_v25 = vld [vmem:[%s17032_s25 + $0x31] sm:$0xff] }
  0xb7   : > { %14896 = vmatprep.mubr.msk.f32.mxu0 %vm456_vm1, %v12417_v26  ;;  %v17352_v26 = vld [vmem:[%s19974_s2 + $0x14] sm:$0xf] }
  0xb8   : > { %14538 = vmatmul.mubr.msk.f32.gmra.mrb[32].mxu1 %vm456_vm1, %v12438_v18 }
  0xb9   : > { %14540 = vmatprep.mubr.msk.f32.mxu1 %vm456_vm1, %v12439_v19 }
  0xba   : > { %14897 = vmatmul.mubr.msk.f32.gmra.mrb[10].mxu0 %vm456_vm1, %v12418_v27  ;;  %v17363_v27 = vld [vmem:[%s17032_s25 + $0x39] sm:$0xff] }
  0xbb   : > { %14899 = vmatprep.mubr.msk.f32.mxu0 %vm456_vm1, %v12419_v28  ;;  %v17366_v28 = vld [vmem:[%s17032_s25 + $0x49] sm:$0xff] }
  0xbc   : > { %14541 = vmatmul.mubr.msk.f32.gmra.mrb[34].mxu1 %vm456_vm1, %v12440_v20 }
  0xbe   : > { %14900 = vmatmul.mubr.msk.f32.gmra.mrb[12].mxu0 %vm456_vm1, %v12420_v29  ;;  %v17380_v29 = vld [vmem:[%s17032_s25 + $0x61] sm:$0xff] }
  0xbf   : > { %14902 = vmatprep.mubr.msk.f32.mxu0 %vm456_vm1, %v12421_v30  ;;  %v17389_v30 = vld [vmem:[%s17032_s25 + $0x69] sm:$0xff] }
  0xc2   : > { %14903 = vmatmul.mubr.msk.f32.gmra.mrb[14].mxu0 %vm456_vm1, %v12422_v31  ;;  %v17392_v31 = vld [vmem:[%s17032_s25 + $0x79] sm:$0xff] }
  0xc3   : > { %14905 = vmatprep.mubr.msk.f32.mxu0 %vm456_vm1, %v12423_v32  ;;  %v417_v32 = vld [vmem:[%s19974_s2] sm:$0xf] }
  0xc4   : > { %14543 = vmatprep.subr.msk.mxu1 %vm565_vm0, %v417_v32 }
  0xc5   : > { %14544 = vmatpush3.msk.msra.mxu1 %vm565_vm0, %v417_v32  ;;  %v17810_v32 = vld [vmem:[%s16949_s20 + $0x181] sm:$0xff] }
  0xc6   : > { %14906 = vmatmul.mubr.msk.f32.gmra.mrb[16].mxu0 %vm456_vm1, %v12424_v33  ;;  %v381_v33 = vld [vmem:[%s17032_s25] sm:$0xff] }
  0xc7   : > { %14908 = vmatprep.mubr.msk.f32.mxu0 %vm456_vm1, %v12425_v34  ;;  %v382_v34 = vld [vmem:[%s17032_s25 + $0x8] sm:$0xff]  ;;  %14545 = vmatprep.mubr.msk.f32.mxu1 %vm456_vm1, %v381_v33 }
  0xc8   : > { %14546 = vmatmul.mubr.msk.f32.vlgmr.msra.gmra.mrb[0].mxu1 %vm456_vm1, %v382_v34  ;;  %v17821_v33 = vld [vmem:[%s16949_s20 + $0x189] sm:$0xff]  ;;  %v17824_v34 = vld [vmem:[%s16949_s20 + $0x199] sm:$0xff] }
  0xc9   : > { %14548 = vmatprep.mubr.msk.f32.mxu1 %vm456_vm1, %v17038_v39  ;;  %v17435_v39 = vld [vmem:[%s17032_s25 + $0xb1] sm:$0xff] }
  0xca   : > { %14909 = vmatmul.mubr.msk.f32.gmra.mrb[18].mxu0 %vm456_vm1, %v12426_v35  ;;  %v17405_v35 = vld [vmem:[%s17032_s25 + $0x81] sm:$0xff] }
  0xcb   : > { %14911 = vmatprep.mubr.msk.f32.mxu0 %vm456_vm1, %v12427_v36  ;;  %v17409_v36 = vld [vmem:[%s17032_s25 + $0x91] sm:$0xff] }
  0xcc   : > { %14549 = vmatmul.mubr.msk.f32.gmra.mrb[2].mxu1 %vm456_vm1, %v17044_v40  ;;  %v17449_v40 = vld [vmem:[%s17032_s25 + $0xc9] sm:$0xff] }
  0xcd   : > { %14551 = vmatprep.mubr.msk.f32.mxu1 %vm456_vm1, %v17047_v41  ;;  %v17452_v41 = vld [vmem:[%s17032_s25 + $0xd9] sm:$0xff] }
  0xce   : > { %14912 = vmatmul.mubr.msk.f32.gmra.mrb[20].mxu0 %vm456_vm1, %v12428_v37  ;;  %v17421_v37 = vld [vmem:[%s17032_s25 + $0x99] sm:$0xff] }
  0xcf   : > { %14914 = vmatprep.mubr.msk.f32.mxu0 %vm456_vm1, %v12429_v38  ;;  %v17424_v38 = vld [vmem:[%s17032_s25 + $0xa9] sm:$0xff] }
  0xd0   : > { %14552 = vmatmul.mubr.msk.f32.gmra.mrb[4].mxu1 %vm456_vm1, %v17061_v43  ;;  %v17463_v43 = vld [vmem:[%s17032_s25 + $0xe1] sm:$0xff] }
  0xd1   : > { %14554 = vmatprep.mubr.msk.f32.mxu1 %vm456_vm1, %v17064_v44  ;;  %v17466_v44 = vld [vmem:[%s17032_s25 + $0xf1] sm:$0xff] }
  0xd2   : > { %14915 = vmatmul.mubr.msk.f32.gmra.mrb[22].mxu0 %vm456_vm1, %v12430_v42  ;;  %v17438_v42 = vld [vmem:[%s17032_s25 + $0xc1] sm:$0xff] }
  0xd3   : > { %14917 = vmatprep.mubr.msk.f32.mxu0 %vm456_vm1, %v12431_v10  ;;  %v17605_v10 = vld [vmem:[%s19975_s3 + $0x14] sm:$0xf] }
  0xd4   : > { %14555 = vmatmul.mubr.msk.f32.gmra.mrb[6].mxu1 %vm456_vm1, %v17073_v45  ;;  %v17477_v45 = vld [vmem:[%s17032_s25 + $0xf9] sm:$0xff] }
  0xd5   : > { %14557 = vmatprep.mubr.msk.f32.mxu1 %vm456_vm1, %v17076_v46  ;;  %v17480_v46 = vld [vmem:[%s17032_s25 + $0x109] sm:$0xff] }
  0xd6   : > { %14918 = vmatmul.mubr.msk.f32.gmra.mrb[24].mxu0 %vm456_vm1, %v12432_v11  ;;  %v1171_v11 = vld [vmem:[%s17032_s25 + $0x9] sm:$0xff] }
  0xd7   : > { %14920 = vmatprep.mubr.msk.f32.mxu0 %vm456_vm1, %v12433_v12  ;;  %v17665_v12 = vld [vmem:[%s16949_s20 + $0x81] sm:$0xff] }
  0xd8   : > { %14558 = vmatmul.mubr.msk.f32.gmra.mrb[8].mxu1 %vm456_vm1, %v17083_v47  ;;  %v17491_v47 = vld [vmem:[%s17032_s25 + $0x111] sm:$0xff] }
  0xd9   : > { %14560 = vmatprep.mubr.msk.f32.mxu1 %vm456_vm1, %v17086_v48  ;;  %v17494_v48 = vld [vmem:[%s17032_s25 + $0x121] sm:$0xff] }
  0xda   : > { %14921 = vmatmul.mubr.msk.f32.gmra.mrb[26].mxu0 %vm456_vm1, %v12434_v13  ;;  %v17681_v13 = vld [vmem:[%s16949_s20 + $0x99] sm:$0xff] }
  0xdb   : > { %14923 = vmatprep.mubr.msk.f32.mxu0 %vm456_vm1, %v12435_v14  ;;  %v17684_v14 = vld [vmem:[%s16949_s20 + $0xa9] sm:$0xff] }
  0xdc   : > { %14561 = vmatmul.mubr.msk.f32.gmra.mrb[10].mxu1 %vm456_vm1, %v17093_v49  ;;  %v17505_v49 = vld [vmem:[%s17032_s25 + $0x129] sm:$0xff] }
  0xdd   : > { %14563 = vmatprep.mubr.msk.f32.mxu1 %vm456_vm1, %v17096_v50  ;;  %v17508_v50 = vld [vmem:[%s17032_s25 + $0x139] sm:$0xff] }
  0xde   : > { %14924 = vmatmul.mubr.msk.f32.gmra.mrb[28].mxu0 %vm456_vm1, %v12436_v16  ;;  %v17695_v16 = vld [vmem:[%s16949_s20 + $0xb1] sm:$0xff] }
  0xdf   : > { %14926 = vmatprep.mubr.msk.f32.mxu0 %vm456_vm1, %v12437_v17  ;;  %v17698_v17 = vld [vmem:[%s16949_s20 + $0xc1] sm:$0xff] }
  0xe0   : > { %14564 = vmatmul.mubr.msk.f32.gmra.mrb[12].mxu1 %vm456_vm1, %v17103_v51  ;;  %v17519_v51 = vld [vmem:[%s17032_s25 + $0x141] sm:$0xff] }
  0xe1   : > { %14566 = vmatprep.mubr.msk.f32.mxu1 %vm456_vm1, %v17106_v52  ;;  %v17522_v52 = vld [vmem:[%s17032_s25 + $0x151] sm:$0xff] }
  0xe2   : > { %14927 = vmatmul.mubr.msk.f32.gmra.mrb[30].mxu0 %vm456_vm1, %v12438_v18  ;;  %v17709_v18 = vld [vmem:[%s16949_s20 + $0xc9] sm:$0xff] }
  0xe3   : > { %14929 = vmatprep.mubr.msk.f32.mxu0 %vm456_vm1, %v12439_v19  ;;  %v17712_v19 = vld [vmem:[%s16949_s20 + $0xd9] sm:$0xff] }
  0xe4   : > { %14567 = vmatmul.mubr.msk.f32.gmra.mrb[14].mxu1 %vm456_vm1, %v17113_v53  ;;  %v17533_v53 = vld [vmem:[%s17032_s25 + $0x159] sm:$0xff] }
  0xe5   : > { %14569 = vmatprep.mubr.msk.f32.mxu1 %vm456_vm1, %v17116_v54  ;;  %v17536_v54 = vld [vmem:[%s17032_s25 + $0x169] sm:$0xff] }
  0xe6   : > { %14930 = vmatmul.mubr.msk.f32.gmra.mrb[32].mxu0 %vm456_vm1, %v12440_v20  ;;  %v17723_v20 = vld [vmem:[%s16949_s20 + $0xe1] sm:$0xff] }
  0xe7   : > { %14932 = vmatprep.mubr.msk.f32.mxu0 %vm456_vm1, %v12441_v21  ;;  %v17726_v21 = vld [vmem:[%s16949_s20 + $0xf1] sm:$0xff] }
  0xe8   : > { %14570 = vmatmul.mubr.msk.f32.gmra.mrb[16].mxu1 %vm456_vm1, %v17123_v55  ;;  %v17547_v55 = vld [vmem:[%s17032_s25 + $0x171] sm:$0xff] }
  0xe9   : > { %14572 = vmatprep.mubr.msk.f32.mxu1 %vm456_vm1, %v17126_v56  ;;  %v17550_v56 = vld [vmem:[%s17032_s25 + $0x181] sm:$0xff] }
  0xea   : > { %14933 = vmatmul.mubr.msk.f32.gmra.mrb[34].mxu0 %vm456_vm1, %v12442_v22  ;;  %v17737_v22 = vld [vmem:[%s16949_s20 + $0xf9] sm:$0xff] }
  0xeb   : > { %14937 = vmatprep.mubr.msk.f32.mxu0 %vm456_vm1, %v17336_v23 }
  0xec   : > { %14573 = vmatmul.mubr.msk.f32.gmra.mrb[18].mxu1 %vm456_vm1, %v17133_v57  ;;  %v17561_v57 = vld [vmem:[%s17032_s25 + $0x189] sm:$0xff] }
  0xed   : > { %14575 = vmatprep.mubr.msk.f32.mxu1 %vm456_vm1, %v17136_v58  ;;  %v17564_v58 = vld [vmem:[%s17032_s25 + $0x199] sm:$0xff] }
  0xee   : > { %14938 = vmatmul.mubr.msk.f32.vlgmr.msra.gmra.mrb[0].mxu0 %vm456_vm1, %v17344_v24 }
  0xef   : > { %14992 = vmatpush3.msk.msra.mxu0 %vm565_vm0, %v17228_v15  ;;  %14940 = vmatprep.mubr.msk.f32.mxu0 %vm456_vm1, %v17347_v25  ;;  %v17377_v15 = vld [vmem:[%s17032_s25 + $0x51] sm:$0xff] }
  0xf0   : > { %15047 = vmatprep.subr.msk.mxu0 %vm565_vm0, %v17352_v26  ;;  %14576 = vmatmul.mubr.msk.f32.gmra.mrb[20].mxu1 %vm456_vm1, %v17143_v59  ;;  %v17575_v59 = vld [vmem:[%s17032_s25 + $0x1a1] sm:$0xff] }
  0xf1   : > { %14578 = vmatprep.mubr.msk.f32.mxu1 %vm456_vm1, %v17146_v60  ;;  %v12515_v60 = vld [vmem:[%s17032_s25 + $0x1b1] sm:$0xff] }
  0xf2   : > { %14941 = vmatmul.mubr.msk.f32.gmra.mrb[2].mxu0 %vm456_vm1, %v17363_v27 }
  0xf3   : > { %14943 = vmatprep.mubr.msk.f32.mxu0 %vm456_vm1, %v17366_v28 }
  0xf4   : > { %14579 = vmatmul.mubr.msk.f32.gmra.mrb[22].mxu1 %vm456_vm1, %v17153_v61  ;;  %v12516_v61 = vld [vmem:[%s17032_s25 + $0x1b9] sm:$0xff] }
  0xf5   : > { %14581 = vmatprep.mubr.msk.f32.mxu1 %vm456_vm1, %v17156_v62  ;;  %v17587_v62 = vld [vmem:[%s16949_s20 + $0x19] sm:$0xff] }
  0xf6   : > { %14944 = vmatmul.mubr.msk.f32.gmra.mrb[4].mxu0 %vm456_vm1, %v17377_v15 }
  0xf7   : > { %14946 = vmatprep.mubr.msk.f32.mxu0 %vm456_vm1, %v17380_v29 }
  0xf8   : > { %14582 = vmatmul.mubr.msk.f32.gmra.mrb[24].mxu1 %vm456_vm1, %v17163_v63  ;;  %v17597_v63 = vld [vmem:[%s16949_s20 + $0x21] sm:$0xff] }
  0xf9   : > { %14584 = vmatprep.mubr.msk.f32.mxu1 %vm456_vm1, %v17166_v0  ;;  %v17600_v0 = vld [vmem:[%s16949_s20 + $0x31] sm:$0xff] }
  0xfa   : > { %14947 = vmatmul.mubr.msk.f32.gmra.mrb[6].mxu0 %vm456_vm1, %v17389_v30 }
  0xfb   : > { %14949 = vmatprep.mubr.msk.f32.mxu0 %vm456_vm1, %v17392_v31 }
  0xfc   : > { %14585 = vmatmul.mubr.msk.f32.gmra.mrb[26].mxu1 %vm456_vm1, %v17173_v1  ;;  %v17618_v1 = vld [vmem:[%s16949_s20 + $0x39] sm:$0xff] }
  0xfd   : > { %14587 = vmatprep.mubr.msk.f32.mxu1 %vm456_vm1, %v17176_v2  ;;  %v17621_v2 = vld [vmem:[%s16949_s20 + $0x49] sm:$0xff] }
  0xfe   : > { %14950 = vmatmul.mubr.msk.f32.gmra.mrb[8].mxu0 %vm456_vm1, %v17405_v35 }
  0xff   : > { %14952 = vmatprep.mubr.msk.f32.mxu0 %vm456_vm1, %v17409_v36 }
 0x100   : > { %14588 = vmatmul.mubr.msk.f32.gmra.mrb[28].mxu1 %vm456_vm1, %v17183_v3  ;;  %v17634_v3 = vld [vmem:[%s16949_s20 + $0x51] sm:$0xff] }
 0x101   : > { %14590 = vmatprep.mubr.msk.f32.mxu1 %vm456_vm1, %v17186_v4  ;;  %v17637_v4 = vld [vmem:[%s16949_s20 + $0x61] sm:$0xff] }
 0x102   : > { %14953 = vmatmul.mubr.msk.f32.gmra.mrb[10].mxu0 %vm456_vm1, %v17421_v37 }
 0x103   : > { %14955 = vmatprep.mubr.msk.f32.mxu0 %vm456_vm1, %v17424_v38 }
 0x104   : > { %14591 = vmatmul.mubr.msk.f32.gmra.mrb[30].mxu1 %vm456_vm1, %v17193_v5  ;;  %v17648_v5 = vld [vmem:[%s16949_s20 + $0x69] sm:$0xff] }
 0x105   : > { %14593 = vmatprep.mubr.msk.f32.mxu1 %vm456_vm1, %v17196_v6  ;;  %v17651_v6 = vld [vmem:[%s16949_s20 + $0x79] sm:$0xff] }
 0x106   : > { %14956 = vmatmul.mubr.msk.f32.gmra.mrb[12].mxu0 %vm456_vm1, %v17435_v39 }
 0x107   : > { %14958 = vmatprep.mubr.msk.f32.mxu0 %vm456_vm1, %v17438_v42 }
 0x108   : > { %14594 = vmatmul.mubr.msk.f32.gmra.mrb[32].mxu1 %vm456_vm1, %v17203_v7  ;;  %v12181_v7 = vld [vmem:[%s19974_s2 + $0x4] sm:$0xf] }
 0x109   : > { %14596 = vmatprep.mubr.msk.f32.mxu1 %vm456_vm1, %v17206_v8  ;;  %v1170_v8 = vld [vmem:[%s17032_s25 + $0x1] sm:$0xff]  ;;  %14599 = vmatprep.subr.msk.mxu1 %vm565_vm0, %v12181_v7 }
 0x10a   : > { %14959 = vmatmul.mubr.msk.f32.gmra.mrb[14].mxu0 %vm456_vm1, %v17449_v40  ;;  %14600 = vmatpush3.msk.msra.mxu1 %vm565_vm0, %v12181_v7  ;;  %v18070_v7 = vld [vmem:[%s17032_s25 + $0x182] sm:$0xff] }
 0x10b   : > { %14961 = vmatprep.mubr.msk.f32.mxu0 %vm456_vm1, %v17452_v41 }
 0x10c   : > { %14597 = vmatmul.mubr.msk.f32.gmra.mrb[34].mxu1 %vm456_vm1, %v17213_v9  ;;  %v17669_v9 = vld [vmem:[%s16949_s20 + $0x91] sm:$0xff] }
 0x10d   : > { %14601 = vmatprep.mubr.msk.f32.mxu1 %vm456_vm1, %v1170_v8  ;;  %v18081_v8 = vld [vmem:[%s17032_s25 + $0x18a] sm:$0xff] }
 0x10e   : > { %14962 = vmatmul.mubr.msk.f32.gmra.mrb[16].mxu0 %vm456_vm1, %v17463_v43 }
 0x10f   : > { %14964 = vmatprep.mubr.msk.f32.mxu0 %vm456_vm1, %v17466_v44 }
 0x110   : > { %14602 = vmatmul.mubr.msk.f32.vlgmr.msra.gmra.mrb[0].mxu1 %vm456_vm1, %v1171_v11  ;;  %v18084_v11 = vld [vmem:[%s17032_s25 + $0x19a] sm:$0xff] }
 0x111   : > { %14604 = vmatprep.mubr.msk.f32.mxu1 %vm456_vm1, %v17336_v23  ;;  %v17740_v23 = vld [vmem:[%s16949_s20 + $0x109] sm:$0xff] }
 0x112   : > { %14965 = vmatmul.mubr.msk.f32.gmra.mrb[18].mxu0 %vm456_vm1, %v17477_v45 }
 0x113   : > { %14967 = vmatprep.mubr.msk.f32.mxu0 %vm456_vm1, %v17480_v46 }
 0x114   : > { %14605 = vmatmul.mubr.msk.f32.gmra.mrb[2].mxu1 %vm456_vm1, %v17344_v24  ;;  %v17751_v24 = vld [vmem:[%s16949_s20 + $0x111] sm:$0xff] }
 0x115   : > { %14607 = vmatprep.mubr.msk.f32.mxu1 %vm456_vm1, %v17347_v25  ;;  %v17754_v25 = vld [vmem:[%s16949_s20 + $0x121] sm:$0xff] }
 0x116   : > { %14968 = vmatmul.mubr.msk.f32.gmra.mrb[20].mxu0 %vm456_vm1, %v17491_v47 }
 0x117   : > { %14970 = vmatprep.mubr.msk.f32.mxu0 %vm456_vm1, %v17494_v48 }
 0x118   : > { %14608 = vmatmul.mubr.msk.f32.gmra.mrb[4].mxu1 %vm456_vm1, %v17363_v27  ;;  %v17768_v27 = vld [vmem:[%s16949_s20 + $0x139] sm:$0xff] }
 0x119   : > { %14610 = vmatprep.mubr.msk.f32.mxu1 %vm456_vm1, %v17366_v28  ;;  %v17779_v28 = vld [vmem:[%s16949_s20 + $0x141] sm:$0xff] }
 0x11a   : > { %14971 = vmatmul.mubr.msk.f32.gmra.mrb[22].mxu0 %vm456_vm1, %v17505_v49 }
 0x11b   : > { %14973 = vmatprep.mubr.msk.f32.mxu0 %vm456_vm1, %v17508_v50 }
 0x11c   : > { %14611 = vmatmul.mubr.msk.f32.gmra.mrb[6].mxu1 %vm456_vm1, %v17377_v15  ;;  %v17782_v15 = vld [vmem:[%s16949_s20 + $0x151] sm:$0xff] }
 0x11d   : > { %14613 = vmatprep.mubr.msk.f32.mxu1 %vm456_vm1, %v17380_v29  ;;  %v17793_v29 = vld [vmem:[%s16949_s20 + $0x159] sm:$0xff] }
 0x11e   : > { %14974 = vmatmul.mubr.msk.f32.gmra.mrb[24].mxu0 %vm456_vm1, %v17519_v51 }
 0x11f   : > { %14976 = vmatprep.mubr.msk.f32.mxu0 %vm456_vm1, %v17522_v52 }
 0x120   : > { %14614 = vmatmul.mubr.msk.f32.gmra.mrb[8].mxu1 %vm456_vm1, %v17389_v30  ;;  %v17796_v30 = vld [vmem:[%s16949_s20 + $0x169] sm:$0xff] }
 0x121   : > { %14616 = vmatprep.mubr.msk.f32.mxu1 %vm456_vm1, %v17392_v31  ;;  %v17807_v31 = vld [vmem:[%s16949_s20 + $0x171] sm:$0xff] }
 0x122   : > { %14977 = vmatmul.mubr.msk.f32.gmra.mrb[26].mxu0 %vm456_vm1, %v17533_v53 }
 0x123   : > { %14979 = vmatprep.mubr.msk.f32.mxu0 %vm456_vm1, %v17536_v54 }
 0x124   : > { %14617 = vmatmul.mubr.msk.f32.gmra.mrb[10].mxu1 %vm456_vm1, %v17405_v35  ;;  %v17835_v35 = vld [vmem:[%s16949_s20 + $0x1a1] sm:$0xff] }
 0x125   : > { %14619 = vmatprep.mubr.msk.f32.mxu1 %vm456_vm1, %v17409_v36  ;;  %v12589_v36 = vld [vmem:[%s16949_s20 + $0x1b1] sm:$0xff] }
 0x126   : > { %14980 = vmatmul.mubr.msk.f32.gmra.mrb[28].mxu0 %vm456_vm1, %v17547_v55 }
 0x127   : > { %14982 = vmatprep.mubr.msk.f32.mxu0 %vm456_vm1, %v17550_v56 }
 0x128   : > { %14620 = vmatmul.mubr.msk.f32.gmra.mrb[12].mxu1 %vm456_vm1, %v17421_v37  ;;  %v12590_v37 = vld [vmem:[%s16949_s20 + $0x1b9] sm:$0xff] }
 0x129   : > { %14622 = vmatprep.mubr.msk.f32.mxu1 %vm456_vm1, %v17424_v38  ;;  %v17847_v38 = vld [vmem:[%s17032_s25 + $0x1a] sm:$0xff] }
 0x12a   : > { %14983 = vmatmul.mubr.msk.f32.gmra.mrb[30].mxu0 %vm456_vm1, %v17561_v57 }
 0x12b   : > { %14985 = vmatprep.mubr.msk.f32.mxu0 %vm456_vm1, %v17564_v58 }
 0x12c   : > { %14623 = vmatmul.mubr.msk.f32.gmra.mrb[14].mxu1 %vm456_vm1, %v17435_v39  ;;  %v17857_v39 = vld [vmem:[%s17032_s25 + $0x22] sm:$0xff] }
 0x12d   : > { %14625 = vmatprep.mubr.msk.f32.mxu1 %vm456_vm1, %v17438_v42  ;;  %v17860_v42 = vld [vmem:[%s17032_s25 + $0x32] sm:$0xff] }
 0x12e   : > { %14986 = vmatmul.mubr.msk.f32.gmra.mrb[32].mxu0 %vm456_vm1, %v17575_v59 }
 0x12f   : > { %14988 = vmatprep.mubr.msk.f32.mxu0 %vm456_vm1, %v12515_v60  ;;  %v17986_v60 = vld [vmem:[%s17032_s25 + $0xf2] sm:$0xff] }
 0x130   : > { %14626 = vmatmul.mubr.msk.f32.gmra.mrb[16].mxu1 %vm456_vm1, %v17449_v40  ;;  %v17865_v40 = vld [vmem:[%s19974_s2 + $0x18] sm:$0xf] }
 0x131   : > { %14628 = vmatprep.mubr.msk.f32.mxu1 %vm456_vm1, %v17452_v41  ;;  %v17878_v41 = vld [vmem:[%s17032_s25 + $0x3a] sm:$0xff] }
 0x132   : > { %14989 = vmatmul.mubr.msk.f32.gmra.mrb[34].mxu0 %vm456_vm1, %v12516_v61  ;;  %v17997_v61 = vld [vmem:[%s17032_s25 + $0xfa] sm:$0xff] }
 0x133   : > { %14993 = vmatprep.mubr.msk.f32.mxu0 %vm456_vm1, %v17587_v62 }
 0x134   : > { %14629 = vmatmul.mubr.msk.f32.gmra.mrb[18].mxu1 %vm456_vm1, %v17463_v43  ;;  %v17881_v43 = vld [vmem:[%s17032_s25 + $0x4a] sm:$0xff] }
 0x135   : > { %14631 = vmatprep.mubr.msk.f32.mxu1 %vm456_vm1, %v17466_v44  ;;  %v17894_v44 = vld [vmem:[%s17032_s25 + $0x52] sm:$0xff] }
 0x136   : > { %14994 = vmatmul.mubr.msk.f32.vlgmr.msra.gmra.mrb[0].mxu0 %vm456_vm1, %v17597_v63 }
 0x137   : > { %15048 = vmatpush3.msk.msra.mxu0 %vm565_vm0, %v17352_v26  ;;  %14996 = vmatprep.mubr.msk.f32.mxu0 %vm456_vm1, %v17600_v0  ;;  %v17765_v26 = vld [vmem:[%s16949_s20 + $0x129] sm:$0xff] }
 0x138   : > { %15103 = vmatprep.subr.msk.mxu0 %vm565_vm0, %v17605_v10  ;;  %14632 = vmatmul.mubr.msk.f32.gmra.mrb[20].mxu1 %vm456_vm1, %v17477_v45  ;;  %v17897_v45 = vld [vmem:[%s17032_s25 + $0x62] sm:$0xff] }
 0x139   : > { %14634 = vmatprep.mubr.msk.f32.mxu1 %vm456_vm1, %v17480_v46  ;;  %v17908_v46 = vld [vmem:[%s17032_s25 + $0x6a] sm:$0xff] }
 0x13a   : > { %14997 = vmatmul.mubr.msk.f32.gmra.mrb[2].mxu0 %vm456_vm1, %v17618_v1 }
 0x13b   : > { %14999 = vmatprep.mubr.msk.f32.mxu0 %vm456_vm1, %v17621_v2 }
 0x13c   : > { %14635 = vmatmul.mubr.msk.f32.gmra.mrb[22].mxu1 %vm456_vm1, %v17491_v47  ;;  %v17911_v47 = vld [vmem:[%s17032_s25 + $0x7a] sm:$0xff] }
 0x13d   : > { %14637 = vmatprep.mubr.msk.f32.mxu1 %vm456_vm1, %v17494_v48  ;;  %v12219_v48 = vld [vmem:[%s19975_s3 + $0x4] sm:$0xf] }
 0x13e   : > { %15000 = vmatmul.mubr.msk.f32.gmra.mrb[4].mxu0 %vm456_vm1, %v17634_v3  ;;  %14655 = vmatprep.subr.msk.mxu1 %vm565_vm0, %v12219_v48 }
 0x13f   : > { %15002 = vmatprep.mubr.msk.f32.mxu0 %vm456_vm1, %v17637_v4  ;;  %14656 = vmatpush3.msk.msra.mxu1 %vm565_vm0, %v12219_v48  ;;  %v12733_v48 = vld [vmem:[%s16949_s20 + $0x182] sm:$0xff] }
 0x140   : > { %14638 = vmatmul.mubr.msk.f32.gmra.mrb[24].mxu1 %vm456_vm1, %v17505_v49  ;;  %v1600_v49 = vld [vmem:[%s16949_s20 + $0x1] sm:$0xff] }
 0x141   : > { %14640 = vmatprep.mubr.msk.f32.mxu1 %vm456_vm1, %v17508_v50  ;;  %v1601_v50 = vld [vmem:[%s16949_s20 + $0x9] sm:$0xff] }
 0x142   : > { %15003 = vmatmul.mubr.msk.f32.gmra.mrb[6].mxu0 %vm456_vm1, %v17648_v5 }
 0x143   : > { %15005 = vmatprep.mubr.msk.f32.mxu0 %vm456_vm1, %v17651_v6 }
 0x144   : > { %14641 = vmatmul.mubr.msk.f32.gmra.mrb[26].mxu1 %vm456_vm1, %v17519_v51  ;;  %v17925_v51 = vld [vmem:[%s17032_s25 + $0x82] sm:$0xff] }
 0x145   : > { %14643 = vmatprep.mubr.msk.f32.mxu1 %vm456_vm1, %v17522_v52  ;;  %v17929_v52 = vld [vmem:[%s17032_s25 + $0x92] sm:$0xff] }
 0x146   : > { %15006 = vmatmul.mubr.msk.f32.gmra.mrb[8].mxu0 %vm456_vm1, %v17665_v12 }
 0x147   : > { %15008 = vmatprep.mubr.msk.f32.mxu0 %vm456_vm1, %v17669_v9 }
 0x148   : > { %14644 = vmatmul.mubr.msk.f32.gmra.mrb[28].mxu1 %vm456_vm1, %v17533_v53  ;;  %v17941_v53 = vld [vmem:[%s17032_s25 + $0x9a] sm:$0xff] }
 0x149   : > { %14646 = vmatprep.mubr.msk.f32.mxu1 %vm456_vm1, %v17536_v54  ;;  %v17944_v54 = vld [vmem:[%s17032_s25 + $0xaa] sm:$0xff] }
 0x14a   : > { %15009 = vmatmul.mubr.msk.f32.gmra.mrb[10].mxu0 %vm456_vm1, %v17681_v13 }
 0x14b   : > { %15011 = vmatprep.mubr.msk.f32.mxu0 %vm456_vm1, %v17684_v14 }
 0x14c   : > { %14647 = vmatmul.mubr.msk.f32.gmra.mrb[30].mxu1 %vm456_vm1, %v17547_v55  ;;  %v17955_v55 = vld [vmem:[%s17032_s25 + $0xb2] sm:$0xff] }
 0x14d   : > { %14649 = vmatprep.mubr.msk.f32.mxu1 %vm456_vm1, %v17550_v56  ;;  %v17958_v56 = vld [vmem:[%s17032_s25 + $0xc2] sm:$0xff] }
 0x14e   : > { %15012 = vmatmul.mubr.msk.f32.gmra.mrb[12].mxu0 %vm456_vm1, %v17695_v16 }
 0x14f   : > { %15014 = vmatprep.mubr.msk.f32.mxu0 %vm456_vm1, %v17698_v17 }
 0x150   : > { %14650 = vmatmul.mubr.msk.f32.gmra.mrb[32].mxu1 %vm456_vm1, %v17561_v57  ;;  %v17969_v57 = vld [vmem:[%s17032_s25 + $0xca] sm:$0xff] }
 0x151   : > { %14652 = vmatprep.mubr.msk.f32.mxu1 %vm456_vm1, %v17564_v58  ;;  %v17972_v58 = vld [vmem:[%s17032_s25 + $0xda] sm:$0xff] }
 0x152   : > { %15015 = vmatmul.mubr.msk.f32.gmra.mrb[14].mxu0 %vm456_vm1, %v17709_v18 }
 0x153   : > { %15017 = vmatprep.mubr.msk.f32.mxu0 %vm456_vm1, %v17712_v19 }
 0x154   : > { %14653 = vmatmul.mubr.msk.f32.gmra.mrb[34].mxu1 %vm456_vm1, %v17575_v59  ;;  %v17983_v59 = vld [vmem:[%s17032_s25 + $0xe2] sm:$0xff] }
 0x155   : > { %14657 = vmatprep.mubr.msk.f32.mxu1 %vm456_vm1, %v1600_v49  ;;  %v12734_v49 = vld [vmem:[%s16949_s20 + $0x18a] sm:$0xff] }
 0x156   : > { %15018 = vmatmul.mubr.msk.f32.gmra.mrb[16].mxu0 %vm456_vm1, %v17723_v20 }
 0x157   : > { %15020 = vmatprep.mubr.msk.f32.mxu0 %vm456_vm1, %v17726_v21 }
 0x158   : > { %14658 = vmatmul.mubr.msk.f32.vlgmr.msra.gmra.mrb[0].mxu1 %vm456_vm1, %v1601_v50  ;;  %v12735_v50 = vld [vmem:[%s16949_s20 + $0x19a] sm:$0xff] }
 0x159   : > { %14660 = vmatprep.mubr.msk.f32.mxu1 %vm456_vm1, %v17587_v62  ;;  %v18000_v62 = vld [vmem:[%s17032_s25 + $0x10a] sm:$0xff] }
 0x15a   : > { %15021 = vmatmul.mubr.msk.f32.gmra.mrb[18].mxu0 %vm456_vm1, %v17737_v22 }
 0x15b   : > { %15023 = vmatprep.mubr.msk.f32.mxu0 %vm456_vm1, %v17740_v23 }
 0x15c   : > { %14661 = vmatmul.mubr.msk.f32.gmra.mrb[2].mxu1 %vm456_vm1, %v17597_v63  ;;  %v18011_v63 = vld [vmem:[%s17032_s25 + $0x112] sm:$0xff] }
 0x15d   : > { %14663 = vmatprep.mubr.msk.f32.mxu1 %vm456_vm1, %v17600_v0  ;;  %v18014_v0 = vld [vmem:[%s17032_s25 + $0x122] sm:$0xff] }
 0x15e   : > { %15024 = vmatmul.mubr.msk.f32.gmra.mrb[20].mxu0 %vm456_vm1, %v17751_v24 }
 0x15f   : > { %15026 = vmatprep.mubr.msk.f32.mxu0 %vm456_vm1, %v17754_v25 }
 0x160   : > { %14664 = vmatmul.mubr.msk.f32.gmra.mrb[4].mxu1 %vm456_vm1, %v17618_v1  ;;  %v18028_v1 = vld [vmem:[%s17032_s25 + $0x13a] sm:$0xff] }
 0x161   : > { %14666 = vmatprep.mubr.msk.f32.mxu1 %vm456_vm1, %v17621_v2  ;;  %v18039_v2 = vld [vmem:[%s17032_s25 + $0x142] sm:$0xff] }
 0x162   : > { %15027 = vmatmul.mubr.msk.f32.gmra.mrb[22].mxu0 %vm456_vm1, %v17765_v26 }
 0x163   : > { %15029 = vmatprep.mubr.msk.f32.mxu0 %vm456_vm1, %v17768_v27 }
 0x164   : > { %14667 = vmatmul.mubr.msk.f32.gmra.mrb[6].mxu1 %vm456_vm1, %v17634_v3  ;;  %v18042_v3 = vld [vmem:[%s17032_s25 + $0x152] sm:$0xff] }
 0x165   : > { %14669 = vmatprep.mubr.msk.f32.mxu1 %vm456_vm1, %v17637_v4  ;;  %v18053_v4 = vld [vmem:[%s17032_s25 + $0x15a] sm:$0xff] }
 0x166   : > { %15030 = vmatmul.mubr.msk.f32.gmra.mrb[24].mxu0 %vm456_vm1, %v17779_v28 }
 0x167   : > { %15032 = vmatprep.mubr.msk.f32.mxu0 %vm456_vm1, %v17782_v15 }
 0x168   : > { %14670 = vmatmul.mubr.msk.f32.gmra.mrb[8].mxu1 %vm456_vm1, %v17648_v5  ;;  %v18056_v5 = vld [vmem:[%s17032_s25 + $0x16a] sm:$0xff] }
 0x169   : > { %14672 = vmatprep.mubr.msk.f32.mxu1 %vm456_vm1, %v17651_v6  ;;  %v18067_v6 = vld [vmem:[%s17032_s25 + $0x172] sm:$0xff] }
 0x16a   : > { %15033 = vmatmul.mubr.msk.f32.gmra.mrb[26].mxu0 %vm456_vm1, %v17793_v29 }
 0x16b   : > { %15035 = vmatprep.mubr.msk.f32.mxu0 %vm456_vm1, %v17796_v30 }
 0x16c   : > { %14673 = vmatmul.mubr.msk.f32.gmra.mrb[10].mxu1 %vm456_vm1, %v17665_v12  ;;  %v18095_v12 = vld [vmem:[%s17032_s25 + $0x1a2] sm:$0xff] }
 0x16d   : > { %14675 = vmatprep.mubr.msk.f32.mxu1 %vm456_vm1, %v17669_v9  ;;  %v12663_v9 = vld [vmem:[%s17032_s25 + $0x1b2] sm:$0xff] }
 0x16e   : > { %15036 = vmatmul.mubr.msk.f32.gmra.mrb[28].mxu0 %vm456_vm1, %v17807_v31 }
 0x16f   : > { %15038 = vmatprep.mubr.msk.f32.mxu0 %vm456_vm1, %v17810_v32 }
 0x170   : > { %14676 = vmatmul.mubr.msk.f32.gmra.mrb[12].mxu1 %vm456_vm1, %v17681_v13  ;;  %v12664_v13 = vld [vmem:[%s17032_s25 + $0x1ba] sm:$0xff] }
 0x171   : > { %14678 = vmatprep.mubr.msk.f32.mxu1 %vm456_vm1, %v17684_v14  ;;  %v12703_v14 = vld [vmem:[%s16949_s20 + $0x1a] sm:$0xff] }
 0x172   : > { %15039 = vmatmul.mubr.msk.f32.gmra.mrb[30].mxu0 %vm456_vm1, %v17821_v33 }
 0x173   : > { %15041 = vmatprep.mubr.msk.f32.mxu0 %vm456_vm1, %v17824_v34 }
 0x174   : > { %14679 = vmatmul.mubr.msk.f32.gmra.mrb[14].mxu1 %vm456_vm1, %v17695_v16  ;;  %v12704_v16 = vld [vmem:[%s16949_s20 + $0x22] sm:$0xff] }
 0x175   : > { %14681 = vmatprep.mubr.msk.f32.mxu1 %vm456_vm1, %v17698_v17  ;;  %v12705_v17 = vld [vmem:[%s16949_s20 + $0x32] sm:$0xff] }
 0x176   : > { %15042 = vmatmul.mubr.msk.f32.gmra.mrb[32].mxu0 %vm456_vm1, %v17835_v35 }
 0x177   : > { %15044 = vmatprep.mubr.msk.f32.mxu0 %vm456_vm1, %v12589_v36  ;;  %v12721_v36 = vld [vmem:[%s16949_s20 + $0xf2] sm:$0xff] }
 0x178   : > { %14682 = vmatmul.mubr.msk.f32.gmra.mrb[16].mxu1 %vm456_vm1, %v17709_v18  ;;  %v18118_v18 = vld [vmem:[%s19975_s3 + $0x18] sm:$0xf] }
 0x179   : > { %14684 = vmatprep.mubr.msk.f32.mxu1 %vm456_vm1, %v17712_v19  ;;  %v12706_v19 = vld [vmem:[%s16949_s20 + $0x3a] sm:$0xff] }
 0x17a   : > { %15045 = vmatmul.mubr.msk.f32.gmra.mrb[34].mxu0 %vm456_vm1, %v12590_v37  ;;  %v12722_v37 = vld [vmem:[%s16949_s20 + $0xfa] sm:$0xff] }
 0x17b   : > { %15049 = vmatprep.mubr.msk.f32.mxu0 %vm456_vm1, %v17847_v38 }
 0x17c   : > { %14685 = vmatmul.mubr.msk.f32.gmra.mrb[18].mxu1 %vm456_vm1, %v17723_v20  ;;  %v12707_v20 = vld [vmem:[%s16949_s20 + $0x4a] sm:$0xff] }
 0x17d   : > { %14687 = vmatprep.mubr.msk.f32.mxu1 %vm456_vm1, %v17726_v21  ;;  %v12708_v21 = vld [vmem:[%s16949_s20 + $0x52] sm:$0xff] }
 0x17e   : > { %15050 = vmatmul.mubr.msk.f32.vlgmr.msra.gmra.mrb[0].mxu0 %vm456_vm1, %v17857_v39 }
 0x17f   : > { %15104 = vmatpush3.msk.msra.mxu0 %vm565_vm0, %v17605_v10  ;;  %15052 = vmatprep.mubr.msk.f32.mxu0 %vm456_vm1, %v17860_v42  ;;  %v18025_v10 = vld [vmem:[%s17032_s25 + $0x12a] sm:$0xff] }
 0x180   : > { %15159 = vmatprep.subr.msk.mxu0 %vm565_vm0, %v17865_v40  ;;  %14688 = vmatmul.mubr.msk.f32.gmra.mrb[20].mxu1 %vm456_vm1, %v17737_v22  ;;  %v12709_v22 = vld [vmem:[%s16949_s20 + $0x62] sm:$0xff] }
 0x181   : > { %14690 = vmatprep.mubr.msk.f32.mxu1 %vm456_vm1, %v17740_v23  ;;  %v12710_v23 = vld [vmem:[%s16949_s20 + $0x6a] sm:$0xff] }
 0x182   : > { %15053 = vmatmul.mubr.msk.f32.gmra.mrb[2].mxu0 %vm456_vm1, %v17878_v41 }
 0x183   : > { %15055 = vmatprep.mubr.msk.f32.mxu0 %vm456_vm1, %v17881_v43 }
 0x184   : > { %14691 = vmatmul.mubr.msk.f32.gmra.mrb[22].mxu1 %vm456_vm1, %v17751_v24  ;;  %v12711_v24 = vld [vmem:[%s16949_s20 + $0x7a] sm:$0xff] }
 0x185   : > { %14693 = vmatprep.mubr.msk.f32.mxu1 %vm456_vm1, %v17754_v25  ;;  %v12257_v25 = vld [vmem:[%s19974_s2 + $0x8] sm:$0xf] }
 0x186   : > { %15056 = vmatmul.mubr.msk.f32.gmra.mrb[4].mxu0 %vm456_vm1, %v17894_v44  ;;  %14711 = vmatprep.subr.msk.mxu1 %vm565_vm0, %v12257_v25 }
 0x187   : > { %15058 = vmatprep.mubr.msk.f32.mxu0 %vm456_vm1, %v17897_v45  ;;  %14712 = vmatpush3.msk.msra.mxu1 %vm565_vm0, %v12257_v25  ;;  %v12810_v25 = vld [vmem:[%s17032_s25 + $0x1b8] sm:$0xff] }
 0x188   : > { %14694 = vmatmul.mubr.msk.f32.gmra.mrb[24].mxu1 %vm456_vm1, %v17765_v26  ;;  %v2030_v26 = vld [vmem:[%s17032_s25 + $0x2] sm:$0xff] }
 0x189   : > { %14696 = vmatprep.mubr.msk.f32.mxu1 %vm456_vm1, %v17768_v27  ;;  %v2031_v27 = vld [vmem:[%s17032_s25 + $0xa] sm:$0xff] }
 0x18a   : > { %15059 = vmatmul.mubr.msk.f32.gmra.mrb[6].mxu0 %vm456_vm1, %v17908_v46 }
 0x18b   : > { %15061 = vmatprep.mubr.msk.f32.mxu0 %vm456_vm1, %v17911_v47 }
 0x18c   : > { %14697 = vmatmul.mubr.msk.f32.gmra.mrb[26].mxu1 %vm456_vm1, %v17779_v28  ;;  %v12712_v28 = vld [vmem:[%s16949_s20 + $0x82] sm:$0xff] }
 0x18d   : > { %14699 = vmatprep.mubr.msk.f32.mxu1 %vm456_vm1, %v17782_v15  ;;  %v12713_v15 = vld [vmem:[%s16949_s20 + $0x92] sm:$0xff] }
 0x18e   : > { %15062 = vmatmul.mubr.msk.f32.gmra.mrb[8].mxu0 %vm456_vm1, %v17925_v51 }
 0x18f   : > { %15064 = vmatprep.mubr.msk.f32.mxu0 %vm456_vm1, %v17929_v52 }
 0x190   : > { %14700 = vmatmul.mubr.msk.f32.gmra.mrb[28].mxu1 %vm456_vm1, %v17793_v29  ;;  %v12714_v29 = vld [vmem:[%s16949_s20 + $0x9a] sm:$0xff] }
 0x191   : > { %14702 = vmatprep.mubr.msk.f32.mxu1 %vm456_vm1, %v17796_v30  ;;  %v12715_v30 = vld [vmem:[%s16949_s20 + $0xaa] sm:$0xff] }
 0x192   : > { %15065 = vmatmul.mubr.msk.f32.gmra.mrb[10].mxu0 %vm456_vm1, %v17941_v53 }
 0x193   : > { %15067 = vmatprep.mubr.msk.f32.mxu0 %vm456_vm1, %v17944_v54 }
 0x194   : > { %14703 = vmatmul.mubr.msk.f32.gmra.mrb[30].mxu1 %vm456_vm1, %v17807_v31  ;;  %v12716_v31 = vld [vmem:[%s16949_s20 + $0xb2] sm:$0xff] }
 0x195   : > { %14705 = vmatprep.mubr.msk.f32.mxu1 %vm456_vm1, %v17810_v32  ;;  %v12717_v32 = vld [vmem:[%s16949_s20 + $0xc2] sm:$0xff] }
 0x196   : > { %15068 = vmatmul.mubr.msk.f32.gmra.mrb[12].mxu0 %vm456_vm1, %v17955_v55 }
 0x197   : > { %15070 = vmatprep.mubr.msk.f32.mxu0 %vm456_vm1, %v17958_v56 }
 0x198   : > { %14706 = vmatmul.mubr.msk.f32.gmra.mrb[32].mxu1 %vm456_vm1, %v17821_v33  ;;  %v12718_v33 = vld [vmem:[%s16949_s20 + $0xca] sm:$0xff] }
 0x199   : > { %14708 = vmatprep.mubr.msk.f32.mxu1 %vm456_vm1, %v17824_v34  ;;  %v12719_v34 = vld [vmem:[%s16949_s20 + $0xda] sm:$0xff] }
 0x19a   : > { %15071 = vmatmul.mubr.msk.f32.gmra.mrb[14].mxu0 %vm456_vm1, %v17969_v57 }
 0x19b   : > { %15073 = vmatprep.mubr.msk.f32.mxu0 %vm456_vm1, %v17972_v58 }
 0x19c   : > { %14709 = vmatmul.mubr.msk.f32.gmra.mrb[34].mxu1 %vm456_vm1, %v17835_v35  ;;  %v12720_v35 = vld [vmem:[%s16949_s20 + $0xe2] sm:$0xff] }
 0x19d   : > { %14713 = vmatprep.mubr.msk.f32.mxu1 %vm456_vm1, %v2030_v26  ;;  %v12811_v26 = vld [vmem:[%s17032_s25 + $0x1c8] sm:$0xff] }
 0x19e   : > { %15074 = vmatmul.mubr.msk.f32.gmra.mrb[16].mxu0 %vm456_vm1, %v17983_v59 }
 0x19f   : > { %15076 = vmatprep.mubr.msk.f32.mxu0 %vm456_vm1, %v17986_v60 }
 0x1a0   : > { %14714 = vmatmul.mubr.msk.f32.vlgmr.msra.gmra.mrb[0].mxu1 %vm456_vm1, %v2031_v27  ;;  %v12812_v27 = vld [vmem:[%s17032_s25 + $0x1d0] sm:$0xff] }
 0x1a1   : > { %14716 = vmatprep.mubr.msk.f32.mxu1 %vm456_vm1, %v17847_v38  ;;  %v12723_v38 = vld [vmem:[%s16949_s20 + $0x10a] sm:$0xff] }
 0x1a2   : > { %15077 = vmatmul.mubr.msk.f32.gmra.mrb[18].mxu0 %vm456_vm1, %v17997_v61 }
 0x1a3   : > { %15079 = vmatprep.mubr.msk.f32.mxu0 %vm456_vm1, %v18000_v62 }
 0x1a4   : > { %14717 = vmatmul.mubr.msk.f32.gmra.mrb[2].mxu1 %vm456_vm1, %v17857_v39  ;;  %v12724_v39 = vld [vmem:[%s16949_s20 + $0x112] sm:$0xff] }
 0x1a5   : > { %14719 = vmatprep.mubr.msk.f32.mxu1 %vm456_vm1, %v17860_v42  ;;  %v12725_v42 = vld [vmem:[%s16949_s20 + $0x122] sm:$0xff] }
 0x1a6   : > { %15080 = vmatmul.mubr.msk.f32.gmra.mrb[20].mxu0 %vm456_vm1, %v18011_v63 }
 0x1a7   : > { %15082 = vmatprep.mubr.msk.f32.mxu0 %vm456_vm1, %v18014_v0 }
 0x1a8   : > { %14720 = vmatmul.mubr.msk.f32.gmra.mrb[4].mxu1 %vm456_vm1, %v17878_v41  ;;  %v12727_v41 = vld [vmem:[%s16949_s20 + $0x13a] sm:$0xff] }
 0x1a9   : > { %14722 = vmatprep.mubr.msk.f32.mxu1 %vm456_vm1, %v17881_v43  ;;  %v12728_v43 = vld [vmem:[%s16949_s20 + $0x142] sm:$0xff] }
 0x1aa   : > { %15083 = vmatmul.mubr.msk.f32.gmra.mrb[22].mxu0 %vm456_vm1, %v18025_v10 }
 0x1ab   : > { %15085 = vmatprep.mubr.msk.f32.mxu0 %vm456_vm1, %v18028_v1 }
 0x1ac   : > { %14723 = vmatmul.mubr.msk.f32.gmra.mrb[6].mxu1 %vm456_vm1, %v17894_v44  ;;  %v12729_v44 = vld [vmem:[%s16949_s20 + $0x152] sm:$0xff] }
 0x1ad   : > { %14725 = vmatprep.mubr.msk.f32.mxu1 %vm456_vm1, %v17897_v45  ;;  %v12730_v45 = vld [vmem:[%s16949_s20 + $0x15a] sm:$0xff] }
 0x1ae   : > { %15086 = vmatmul.mubr.msk.f32.gmra.mrb[24].mxu0 %vm456_vm1, %v18039_v2 }
 0x1af   : > { %15088 = vmatprep.mubr.msk.f32.mxu0 %vm456_vm1, %v18042_v3 }
 0x1b0   : > { %14726 = vmatmul.mubr.msk.f32.gmra.mrb[8].mxu1 %vm456_vm1, %v17908_v46  ;;  %v12731_v46 = vld [vmem:[%s16949_s20 + $0x16a] sm:$0xff] }
 0x1b1   : > { %14728 = vmatprep.mubr.msk.f32.mxu1 %vm456_vm1, %v17911_v47  ;;  %v12732_v47 = vld [vmem:[%s16949_s20 + $0x172] sm:$0xff] }
 0x1b2   : > { %15089 = vmatmul.mubr.msk.f32.gmra.mrb[26].mxu0 %vm456_vm1, %v18053_v4 }
 0x1b3   : > { %15091 = vmatprep.mubr.msk.f32.mxu0 %vm456_vm1, %v18056_v5 }
 0x1b4   : > { %14729 = vmatmul.mubr.msk.f32.gmra.mrb[10].mxu1 %vm456_vm1, %v17925_v51  ;;  %v12736_v51 = vld [vmem:[%s16949_s20 + $0x1a2] sm:$0xff] }
 0x1b5   : > { %14731 = vmatprep.mubr.msk.f32.mxu1 %vm456_vm1, %v17929_v52  ;;  %v12737_v52 = vld [vmem:[%s16949_s20 + $0x1b2] sm:$0xff] }
 0x1b6   : > { %15092 = vmatmul.mubr.msk.f32.gmra.mrb[28].mxu0 %vm456_vm1, %v18067_v6 }
 0x1b7   : > { %15094 = vmatprep.mubr.msk.f32.mxu0 %vm456_vm1, %v18070_v7 }
 0x1b8   : > { %14732 = vmatmul.mubr.msk.f32.gmra.mrb[12].mxu1 %vm456_vm1, %v17941_v53  ;;  %v12738_v53 = vld [vmem:[%s16949_s20 + $0x1ba] sm:$0xff] }
 0x1b9   : > { %14734 = vmatprep.mubr.msk.f32.mxu1 %vm456_vm1, %v17944_v54  ;;  %v12777_v54 = vld [vmem:[%s17032_s25 + $0x30] sm:$0xff] }
 0x1ba   : > { %15095 = vmatmul.mubr.msk.f32.gmra.mrb[30].mxu0 %vm456_vm1, %v18081_v8 }
 0x1bb   : > { %15097 = vmatprep.mubr.msk.f32.mxu0 %vm456_vm1, %v18084_v11 }
 0x1bc   : > { %14735 = vmatmul.mubr.msk.f32.gmra.mrb[14].mxu1 %vm456_vm1, %v17955_v55  ;;  %v12778_v55 = vld [vmem:[%s17032_s25 + $0x38] sm:$0xff] }
 0x1bd   : > { %14737 = vmatprep.mubr.msk.f32.mxu1 %vm456_vm1, %v17958_v56  ;;  %v12779_v56 = vld [vmem:[%s17032_s25 + $0x48] sm:$0xff] }
 0x1be   : > { %15098 = vmatmul.mubr.msk.f32.gmra.mrb[32].mxu0 %vm456_vm1, %v18095_v12 }
 0x1bf   : > { %15100 = vmatprep.mubr.msk.f32.mxu0 %vm456_vm1, %v12663_v9  ;;  %v12798_v9 = vld [vmem:[%s17032_s25 + $0x128] sm:$0xff] }
 0x1c0   : > { %14738 = vmatmul.mubr.msk.f32.gmra.mrb[16].mxu1 %vm456_vm1, %v17969_v57  ;;  %v18276_v57 = vld [vmem:[%s19974_s2 + $0x1c] sm:$0xf] }
 0x1c1   : > { %14740 = vmatprep.mubr.msk.f32.mxu1 %vm456_vm1, %v17972_v58  ;;  %v12780_v58 = vld [vmem:[%s17032_s25 + $0x50] sm:$0xff] }
 0x1c2   : > { %15101 = vmatmul.mubr.msk.f32.gmra.mrb[34].mxu0 %vm456_vm1, %v12664_v13  ;;  %v12799_v13 = vld [vmem:[%s17032_s25 + $0x138] sm:$0xff] }
 0x1c3   : > { %15105 = vmatprep.mubr.msk.f32.mxu0 %vm456_vm1, %v12703_v14  ;;  %v12800_v14 = vld [vmem:[%s17032_s25 + $0x140] sm:$0xff] }
 0x1c4   : > { %14741 = vmatmul.mubr.msk.f32.gmra.mrb[18].mxu1 %vm456_vm1, %v17983_v59  ;;  %v12781_v59 = vld [vmem:[%s17032_s25 + $0x60] sm:$0xff] }
 0x1c5   : > { %14743 = vmatprep.mubr.msk.f32.mxu1 %vm456_vm1, %v17986_v60  ;;  %v12782_v60 = vld [vmem:[%s17032_s25 + $0x68] sm:$0xff] }
 0x1c6   : > { %15106 = vmatmul.mubr.msk.f32.vlgmr.msra.gmra.mrb[0].mxu0 %vm456_vm1, %v12704_v16  ;;  %v12801_v16 = vld [vmem:[%s17032_s25 + $0x150] sm:$0xff] }
 0x1c7   : > { %15160 = vmatpush3.msk.msra.mxu0 %vm565_vm0, %v17865_v40  ;;  %15108 = vmatprep.mubr.msk.f32.mxu0 %vm456_vm1, %v12705_v17  ;;  %v12726_v40 = vld [vmem:[%s16949_s20 + $0x12a] sm:$0xff]  ;;  %v12802_v17 = vld [vmem:[%s17032_s25 + $0x158] sm:$0xff] }
 0x1c8   : > { %15215 = vmatprep.subr.msk.mxu0 %vm565_vm0, %v18118_v18  ;;  %14744 = vmatmul.mubr.msk.f32.gmra.mrb[20].mxu1 %vm456_vm1, %v17997_v61  ;;  %v12783_v61 = vld [vmem:[%s17032_s25 + $0x78] sm:$0xff] }
 0x1c9   : > { %14746 = vmatprep.mubr.msk.f32.mxu1 %vm456_vm1, %v18000_v62  ;;  %v12784_v62 = vld [vmem:[%s17032_s25 + $0x80] sm:$0xff] }
 0x1ca   : > { %15109 = vmatmul.mubr.msk.f32.gmra.mrb[2].mxu0 %vm456_vm1, %v12706_v19  ;;  %v12804_v19 = vld [vmem:[%s17032_s25 + $0x170] sm:$0xff] }
 0x1cb   : > { %15111 = vmatprep.mubr.msk.f32.mxu0 %vm456_vm1, %v12707_v20  ;;  %v12805_v20 = vld [vmem:[%s17032_s25 + $0x180] sm:$0xff] }
 0x1cc   : > { %14747 = vmatmul.mubr.msk.f32.gmra.mrb[22].mxu1 %vm456_vm1, %v18011_v63  ;;  %v12785_v63 = vld [vmem:[%s17032_s25 + $0x90] sm:$0xff] }
 0x1cd   : > { %14749 = vmatprep.mubr.msk.f32.mxu1 %vm456_vm1, %v18014_v0  ;;  %v12786_v0 = vld [vmem:[%s17032_s25 + $0x98] sm:$0xff] }
 0x1ce   : > { %15112 = vmatmul.mubr.msk.f32.gmra.mrb[4].mxu0 %vm456_vm1, %v12708_v21  ;;  %v12806_v21 = vld [vmem:[%s17032_s25 + $0x188] sm:$0xff] }
 0x1cf   : > { %15114 = vmatprep.mubr.msk.f32.mxu0 %vm456_vm1, %v12709_v22  ;;  %v12807_v22 = vld [vmem:[%s17032_s25 + $0x198] sm:$0xff] }
 0x1d0   : > { %14750 = vmatmul.mubr.msk.f32.gmra.mrb[24].mxu1 %vm456_vm1, %v18025_v10  ;;  %v12787_v10 = vld [vmem:[%s17032_s25 + $0xa8] sm:$0xff] }
 0x1d1   : > { %14752 = vmatprep.mubr.msk.f32.mxu1 %vm456_vm1, %v18028_v1  ;;  %v12788_v1 = vld [vmem:[%s17032_s25 + $0xb0] sm:$0xff] }
 0x1d2   : > { %15115 = vmatmul.mubr.msk.f32.gmra.mrb[6].mxu0 %vm456_vm1, %v12710_v23  ;;  %v12808_v23 = vld [vmem:[%s17032_s25 + $0x1a0] sm:$0xff] }
 0x1d3   : > { %15117 = vmatprep.mubr.msk.f32.mxu0 %vm456_vm1, %v12711_v24  ;;  %v12809_v24 = vld [vmem:[%s17032_s25 + $0x1b0] sm:$0xff] }
 0x1d4   : > { %14753 = vmatmul.mubr.msk.f32.gmra.mrb[26].mxu1 %vm456_vm1, %v18039_v2  ;;  %v12789_v2 = vld [vmem:[%s17032_s25 + $0xc0] sm:$0xff] }
 0x1d5   : > { %14755 = vmatprep.mubr.msk.f32.mxu1 %vm456_vm1, %v18042_v3  ;;  %v12790_v3 = vld [vmem:[%s17032_s25 + $0xc8] sm:$0xff] }
 0x1d6   : > { %15118 = vmatmul.mubr.msk.f32.gmra.mrb[8].mxu0 %vm456_vm1, %v12712_v28  ;;  %v12851_v28 = vld [vmem:[%s16949_s20 + $0x30] sm:$0xff] }
 0x1d7   : > { %15120 = vmatprep.mubr.msk.f32.mxu0 %vm456_vm1, %v12713_v15  ;;  %v12852_v15 = vld [vmem:[%s16949_s20 + $0x38] sm:$0xff] }
 0x1d8   : > { %14756 = vmatmul.mubr.msk.f32.gmra.mrb[28].mxu1 %vm456_vm1, %v18053_v4  ;;  %v12791_v4 = vld [vmem:[%s17032_s25 + $0xd8] sm:$0xff] }
 0x1d9   : > { %14758 = vmatprep.mubr.msk.f32.mxu1 %vm456_vm1, %v18056_v5  ;;  %v12792_v5 = vld [vmem:[%s17032_s25 + $0xe0] sm:$0xff] }
 0x1da   : > { %15121 = vmatmul.mubr.msk.f32.gmra.mrb[10].mxu0 %vm456_vm1, %v12714_v29  ;;  %v12853_v29 = vld [vmem:[%s16949_s20 + $0x48] sm:$0xff] }
 0x1db   : > { %15123 = vmatprep.mubr.msk.f32.mxu0 %vm456_vm1, %v12715_v30  ;;  %v18371_v30 = vld [vmem:[%s19975_s3 + $0x1c] sm:$0xf] }
 0x1dc   : > { %14759 = vmatmul.mubr.msk.f32.gmra.mrb[30].mxu1 %vm456_vm1, %v18067_v6  ;;  %v12793_v6 = vld [vmem:[%s17032_s25 + $0xf0] sm:$0xff] }
 0x1dd   : > { %14761 = vmatprep.mubr.msk.f32.mxu1 %vm456_vm1, %v18070_v7  ;;  %v12794_v7 = vld [vmem:[%s17032_s25 + $0xf8] sm:$0xff] }
 0x1de   : > { %15124 = vmatmul.mubr.msk.f32.gmra.mrb[12].mxu0 %vm456_vm1, %v12716_v31  ;;  %v12854_v31 = vld [vmem:[%s16949_s20 + $0x50] sm:$0xff] }
 0x1df   : > { %15126 = vmatprep.mubr.msk.f32.mxu0 %vm456_vm1, %v12717_v32  ;;  %v12855_v32 = vld [vmem:[%s16949_s20 + $0x60] sm:$0xff] }
 0x1e0   : > { %14762 = vmatmul.mubr.msk.f32.gmra.mrb[32].mxu1 %vm456_vm1, %v18081_v8  ;;  %v12795_v8 = vld [vmem:[%s17032_s25 + $0x108] sm:$0xff] }
 0x1e1   : > { %14764 = vmatprep.mubr.msk.f32.mxu1 %vm456_vm1, %v18084_v11  ;;  %v12796_v11 = vld [vmem:[%s17032_s25 + $0x110] sm:$0xff] }
 0x1e2   : > { %15127 = vmatmul.mubr.msk.f32.gmra.mrb[14].mxu0 %vm456_vm1, %v12718_v33  ;;  %v12856_v33 = vld [vmem:[%s16949_s20 + $0x68] sm:$0xff] }
 0x1e3   : > { %15129 = vmatprep.mubr.msk.f32.mxu0 %vm456_vm1, %v12719_v34  ;;  %v12857_v34 = vld [vmem:[%s16949_s20 + $0x78] sm:$0xff] }
 0x1e4   : > { %14765 = vmatmul.mubr.msk.f32.gmra.mrb[34].mxu1 %vm456_vm1, %v18095_v12  ;;  %v12797_v12 = vld [vmem:[%s17032_s25 + $0x120] sm:$0xff] }
 0x1e6   : > { %15130 = vmatmul.mubr.msk.f32.gmra.mrb[16].mxu0 %vm456_vm1, %v12720_v35  ;;  %v12858_v35 = vld [vmem:[%s16949_s20 + $0x80] sm:$0xff] }
 0x1e7   : > { %15132 = vmatprep.mubr.msk.f32.mxu0 %vm456_vm1, %v12721_v36  ;;  %v12859_v36 = vld [vmem:[%s16949_s20 + $0x90] sm:$0xff] }
 0x1ea   : > { %15133 = vmatmul.mubr.msk.f32.gmra.mrb[18].mxu0 %vm456_vm1, %v12722_v37  ;;  %v12860_v37 = vld [vmem:[%s16949_s20 + $0x98] sm:$0xff] }
 0x1eb   : > { %15135 = vmatprep.mubr.msk.f32.mxu0 %vm456_vm1, %v12723_v38  ;;  %v12861_v38 = vld [vmem:[%s16949_s20 + $0xa8] sm:$0xff] }
 0x1ee   : > { %15136 = vmatmul.mubr.msk.f32.gmra.mrb[20].mxu0 %vm456_vm1, %v12724_v39  ;;  %v12862_v39 = vld [vmem:[%s16949_s20 + $0xb0] sm:$0xff] }
 0x1ef   : > { %15138 = vmatprep.mubr.msk.f32.mxu0 %vm456_vm1, %v12725_v42  ;;  %v12863_v42 = vld [vmem:[%s16949_s20 + $0xc0] sm:$0xff] }
 0x1f2   : > { %15139 = vmatmul.mubr.msk.f32.gmra.mrb[22].mxu0 %vm456_vm1, %v12726_v40  ;;  %v12864_v40 = vld [vmem:[%s16949_s20 + $0xc8] sm:$0xff] }
 0x1f3   : > { %15141 = vmatprep.mubr.msk.f32.mxu0 %vm456_vm1, %v12727_v41  ;;  %v12865_v41 = vld [vmem:[%s16949_s20 + $0xd8] sm:$0xff] }
 0x1f6   : > { %15142 = vmatmul.mubr.msk.f32.gmra.mrb[24].mxu0 %vm456_vm1, %v12728_v43  ;;  %v12866_v43 = vld [vmem:[%s16949_s20 + $0xe0] sm:$0xff] }
 0x1f7   : > { %15144 = vmatprep.mubr.msk.f32.mxu0 %vm456_vm1, %v12729_v44  ;;  %v12867_v44 = vld [vmem:[%s16949_s20 + $0xf0] sm:$0xff] }
 0x1fa   : > { %15145 = vmatmul.mubr.msk.f32.gmra.mrb[26].mxu0 %vm456_vm1, %v12730_v45  ;;  %v12868_v45 = vld [vmem:[%s16949_s20 + $0xf8] sm:$0xff] }
 0x1fb   : > { %15147 = vmatprep.mubr.msk.f32.mxu0 %vm456_vm1, %v12731_v46  ;;  %v12869_v46 = vld [vmem:[%s16949_s20 + $0x108] sm:$0xff] }
 0x1fe   : > { %15148 = vmatmul.mubr.msk.f32.gmra.mrb[28].mxu0 %vm456_vm1, %v12732_v47  ;;  %v12870_v47 = vld [vmem:[%s16949_s20 + $0x110] sm:$0xff] }
 0x1ff   : > { %15150 = vmatprep.mubr.msk.f32.mxu0 %vm456_vm1, %v12733_v48  ;;  %v12871_v48 = vld [vmem:[%s16949_s20 + $0x120] sm:$0xff] }
 0x202   : > { %15151 = vmatmul.mubr.msk.f32.gmra.mrb[30].mxu0 %vm456_vm1, %v12734_v49  ;;  %v12872_v49 = vld [vmem:[%s16949_s20 + $0x128] sm:$0xff] }
 0x203   : > { %15153 = vmatprep.mubr.msk.f32.mxu0 %vm456_vm1, %v12735_v50  ;;  %v12873_v50 = vld [vmem:[%s16949_s20 + $0x138] sm:$0xff] }
 0x206   : > { %15154 = vmatmul.mubr.msk.f32.gmra.mrb[32].mxu0 %vm456_vm1, %v12736_v51  ;;  %v12874_v51 = vld [vmem:[%s16949_s20 + $0x140] sm:$0xff] }
 0x207   : > { %15156 = vmatprep.mubr.msk.f32.mxu0 %vm456_vm1, %v12737_v52  ;;  %v12875_v52 = vld [vmem:[%s16949_s20 + $0x150] sm:$0xff] }
 0x20a   : > { %15157 = vmatmul.mubr.msk.f32.gmra.mrb[34].mxu0 %vm456_vm1, %v12738_v53  ;;  %v12876_v53 = vld [vmem:[%s16949_s20 + $0x158] sm:$0xff] }
 0x20b   : > { %15161 = vmatprep.mubr.msk.f32.mxu0 %vm456_vm1, %v12777_v54  ;;  %v12877_v54 = vld [vmem:[%s16949_s20 + $0x168] sm:$0xff] }
 0x20e   : > { %15162 = vmatmul.mubr.msk.f32.vlgmr.msra.gmra.mrb[0].mxu0 %vm456_vm1, %v12778_v55  ;;  %v12878_v55 = vld [vmem:[%s16949_s20 + $0x170] sm:$0xff] }
 0x20f   : > { %15216 = vmatpush3.msk.msra.mxu0 %vm565_vm0, %v18118_v18  ;;  %15164 = vmatprep.mubr.msk.f32.mxu0 %vm456_vm1, %v12779_v56  ;;  %v12803_v18 = vld [vmem:[%s17032_s25 + $0x168] sm:$0xff]  ;;  %v12879_v56 = vld [vmem:[%s16949_s20 + $0x180] sm:$0xff] }
 0x210   : > { %15271 = vmatprep.subr.msk.mxu0 %vm565_vm0, %v18276_v57 }
 0x212   : > { %15165 = vmatmul.mubr.msk.f32.gmra.mrb[2].mxu0 %vm456_vm1, %v12780_v58  ;;  %v12881_v58 = vld [vmem:[%s16949_s20 + $0x198] sm:$0xff] }
 0x213   : > { %15167 = vmatprep.mubr.msk.f32.mxu0 %vm456_vm1, %v12781_v59  ;;  %v12882_v59 = vld [vmem:[%s16949_s20 + $0x1a0] sm:$0xff] }
 0x216   : > { %15168 = vmatmul.mubr.msk.f32.gmra.mrb[4].mxu0 %vm456_vm1, %v12782_v60  ;;  %v12883_v60 = vld [vmem:[%s16949_s20 + $0x1b0] sm:$0xff] }
 0x217   : > { %15170 = vmatprep.mubr.msk.f32.mxu0 %vm456_vm1, %v12783_v61  ;;  %v12884_v61 = vld [vmem:[%s16949_s20 + $0x1b8] sm:$0xff] }
 0x21a   : > { %15171 = vmatmul.mubr.msk.f32.gmra.mrb[6].mxu0 %vm456_vm1, %v12784_v62  ;;  %v12885_v62 = vld [vmem:[%s16949_s20 + $0x1c8] sm:$0xff] }
 0x21b   : > { %15173 = vmatprep.mubr.msk.f32.mxu0 %vm456_vm1, %v12785_v63  ;;  %v12886_v63 = vld [vmem:[%s16949_s20 + $0x1d0] sm:$0xff] }
 0x21e   : > { %15174 = vmatmul.mubr.msk.f32.gmra.mrb[8].mxu0 %vm456_vm1, %v12786_v0  ;;  %v12925_v0 = vld [vmem:[%s17032_s25 + $0x31] sm:$0xff] }
 0x21f   : > { %15176 = vmatprep.mubr.msk.f32.mxu0 %vm456_vm1, %v12787_v10  ;;  %v12926_v10 = vld [vmem:[%s17032_s25 + $0x39] sm:$0xff] }
 0x222   : > { %15177 = vmatmul.mubr.msk.f32.gmra.mrb[10].mxu0 %vm456_vm1, %v12788_v1  ;;  %v12927_v1 = vld [vmem:[%s17032_s25 + $0x49] sm:$0xff] }
 0x223   : > { %15179 = vmatprep.mubr.msk.f32.mxu0 %vm456_vm1, %v12789_v2  ;;  %v18452_v2 = vld [vmem:[%s19974_s2 + $0x20] sm:$0xf] }
 0x226   : > { %15180 = vmatmul.mubr.msk.f32.gmra.mrb[12].mxu0 %vm456_vm1, %v12790_v3  ;;  %v12928_v3 = vld [vmem:[%s17032_s25 + $0x51] sm:$0xff] }
 0x227   : > { %15182 = vmatprep.mubr.msk.f32.mxu0 %vm456_vm1, %v12791_v4  ;;  %v12929_v4 = vld [vmem:[%s17032_s25 + $0x61] sm:$0xff] }
 0x22a   : > { %15183 = vmatmul.mubr.msk.f32.gmra.mrb[14].mxu0 %vm456_vm1, %v12792_v5  ;;  %v12930_v5 = vld [vmem:[%s17032_s25 + $0x69] sm:$0xff] }
 0x22b   : > { %15185 = vmatprep.mubr.msk.f32.mxu0 %vm456_vm1, %v12793_v6  ;;  %v12931_v6 = vld [vmem:[%s17032_s25 + $0x79] sm:$0xff] }
 0x22e   : > { %15186 = vmatmul.mubr.msk.f32.gmra.mrb[16].mxu0 %vm456_vm1, %v12794_v7  ;;  %v12932_v7 = vld [vmem:[%s17032_s25 + $0x81] sm:$0xff] }
 0x22f   : > { %15188 = vmatprep.mubr.msk.f32.mxu0 %vm456_vm1, %v12795_v8  ;;  %v12933_v8 = vld [vmem:[%s17032_s25 + $0x91] sm:$0xff] }
 0x232   : > { %15189 = vmatmul.mubr.msk.f32.gmra.mrb[18].mxu0 %vm456_vm1, %v12796_v11 }
 0x233   : > { %15191 = vmatprep.mubr.msk.f32.mxu0 %vm456_vm1, %v12797_v12 }
 0x236   : > { %15192 = vmatmul.mubr.msk.f32.gmra.mrb[20].mxu0 %vm456_vm1, %v12798_v9  ;;  %v12934_v9 = vld [vmem:[%s17032_s25 + $0x99] sm:$0xff] }
 0x237   : > { %15194 = vmatprep.mubr.msk.f32.mxu0 %vm456_vm1, %v12799_v13  ;;  %v12935_v13 = vld [vmem:[%s17032_s25 + $0xa9] sm:$0xff] }
 0x23a   : > { %15195 = vmatmul.mubr.msk.f32.gmra.mrb[22].mxu0 %vm456_vm1, %v12800_v14 }
 0x23b   : > { %15197 = vmatprep.mubr.msk.f32.mxu0 %vm456_vm1, %v12801_v16 }
 0x23e   : > { %15198 = vmatmul.mubr.msk.f32.gmra.mrb[24].mxu0 %vm456_vm1, %v12802_v17  ;;  %v12936_v17 = vld [vmem:[%s17032_s25 + $0xb1] sm:$0xff] }
 0x23f   : > { %15200 = vmatprep.mubr.msk.f32.mxu0 %vm456_vm1, %v12803_v18  ;;  %v12937_v18 = vld [vmem:[%s17032_s25 + $0xc1] sm:$0xff] }
 0x242   : > { %15201 = vmatmul.mubr.msk.f32.gmra.mrb[26].mxu0 %vm456_vm1, %v12804_v19 }
 0x243   : > { %15203 = vmatprep.mubr.msk.f32.mxu0 %vm456_vm1, %v12805_v20 }
 0x246   : > { %15204 = vmatmul.mubr.msk.f32.gmra.mrb[28].mxu0 %vm456_vm1, %v12806_v21  ;;  %v12938_v21 = vld [vmem:[%s17032_s25 + $0xc9] sm:$0xff] }
 0x247   : > { %15206 = vmatprep.mubr.msk.f32.mxu0 %vm456_vm1, %v12807_v22  ;;  %v12939_v22 = vld [vmem:[%s17032_s25 + $0xd9] sm:$0xff] }
 0x24a   : > { %15207 = vmatmul.mubr.msk.f32.gmra.mrb[30].mxu0 %vm456_vm1, %v12808_v23 }
 0x24b   : > { %15209 = vmatprep.mubr.msk.f32.mxu0 %vm456_vm1, %v12809_v24 }
 0x24e   : > { %15210 = vmatmul.mubr.msk.f32.gmra.mrb[32].mxu0 %vm456_vm1, %v12810_v25  ;;  %v12940_v25 = vld [vmem:[%s17032_s25 + $0xe1] sm:$0xff] }
 0x24f   : > { %15212 = vmatprep.mubr.msk.f32.mxu0 %vm456_vm1, %v12811_v26  ;;  %v12941_v26 = vld [vmem:[%s17032_s25 + $0xf1] sm:$0xff] }
 0x252   : > { %15213 = vmatmul.mubr.msk.f32.gmra.mrb[34].mxu0 %vm456_vm1, %v12812_v27 }
 0x253   : > { %15217 = vmatprep.mubr.msk.f32.mxu0 %vm456_vm1, %v12851_v28 }
 0x256   : > { %15218 = vmatmul.mubr.msk.f32.vlgmr.msra.gmra.mrb[0].mxu0 %vm456_vm1, %v12852_v15  ;;  %v12942_v15 = vld [vmem:[%s17032_s25 + $0xf9] sm:$0xff] }
 0x257   : > { %15272 = vmatpush3.msk.msra.mxu0 %vm565_vm0, %v18276_v57  ;;  %15220 = vmatprep.mubr.msk.f32.mxu0 %vm456_vm1, %v12853_v29  ;;  %v12880_v57 = vld [vmem:[%s16949_s20 + $0x188] sm:$0xff] }
 0x258   : > { %15327 = vmatprep.subr.msk.mxu0 %vm565_vm0, %v18371_v30  ;;  %v12943_v29 = vld [vmem:[%s17032_s25 + $0x109] sm:$0xff] }
 0x25a   : > { %15221 = vmatmul.mubr.msk.f32.gmra.mrb[2].mxu0 %vm456_vm1, %v12854_v31 }
 0x25b   : > { %15223 = vmatprep.mubr.msk.f32.mxu0 %vm456_vm1, %v12855_v32  ;;  %v12944_v32 = vld [vmem:[%s17032_s25 + $0x111] sm:$0xff] }
 0x25e   : > { %15224 = vmatmul.mubr.msk.f32.gmra.mrb[4].mxu0 %vm456_vm1, %v12856_v33  ;;  %v12945_v33 = vld [vmem:[%s17032_s25 + $0x121] sm:$0xff] }
 0x25f   : > { %15226 = vmatprep.mubr.msk.f32.mxu0 %vm456_vm1, %v12857_v34 }
 0x262   : > { %15227 = vmatmul.mubr.msk.f32.gmra.mrb[6].mxu0 %vm456_vm1, %v12858_v35 }
 0x263   : > { %15229 = vmatprep.mubr.msk.f32.mxu0 %vm456_vm1, %v12859_v36  ;;  %v12946_v36 = vld [vmem:[%s17032_s25 + $0x129] sm:$0xff] }
 0x266   : > { %15230 = vmatmul.mubr.msk.f32.gmra.mrb[8].mxu0 %vm456_vm1, %v12860_v37  ;;  %v12947_v37 = vld [vmem:[%s17032_s25 + $0x139] sm:$0xff] }
 0x267   : > { %15232 = vmatprep.mubr.msk.f32.mxu0 %vm456_vm1, %v12861_v38 }
 0x26a   : > { %15233 = vmatmul.mubr.msk.f32.gmra.mrb[10].mxu0 %vm456_vm1, %v12862_v39 }
 0x26b   : > { %15235 = vmatprep.mubr.msk.f32.mxu0 %vm456_vm1, %v12863_v42  ;;  %v12948_v42 = vld [vmem:[%s17032_s25 + $0x141] sm:$0xff] }
 0x26e   : > { %15236 = vmatmul.mubr.msk.f32.gmra.mrb[12].mxu0 %vm456_vm1, %v12864_v40  ;;  %v12949_v40 = vld [vmem:[%s17032_s25 + $0x151] sm:$0xff] }
 0x26f   : > { %15238 = vmatprep.mubr.msk.f32.mxu0 %vm456_vm1, %v12865_v41 }
 0x272   : > { %15239 = vmatmul.mubr.msk.f32.gmra.mrb[14].mxu0 %vm456_vm1, %v12866_v43 }
 0x273   : > { %15241 = vmatprep.mubr.msk.f32.mxu0 %vm456_vm1, %v12867_v44  ;;  %v18470_v11 = vpop.f32.mrb[0].mxu1  ;;  %v12950_v44 = vld [vmem:[%s17032_s25 + $0x159] sm:$0xff] }
 0x274   : > { %v18472_v12 = vpop.f32.mrb[1].mxu1 }
 0x276   : > { %15242 = vmatmul.mubr.msk.f32.gmra.mrb[16].mxu0 %vm456_vm1, %v12868_v45  ;;  %v12951_v45 = vld [vmem:[%s17032_s25 + $0x169] sm:$0xff] }
 0x277   : > { %15244 = vmatprep.mubr.msk.f32.mxu0 %vm456_vm1, %v12869_v46  ;;  %v18478_v14 = vpop.f32.mrb[2].mxu1 }
 0x278   : > { %v18480_v16 = vpop.f32.mrb[3].mxu1 }
 0x27a   : > { %15245 = vmatmul.mubr.msk.f32.gmra.mrb[18].mxu0 %vm456_vm1, %v12870_v47 }
 0x27b   : > { %15247 = vmatprep.mubr.msk.f32.mxu0 %vm456_vm1, %v12871_v48  ;;  %v18486_v19 = vpop.f32.mrb[4].mxu1  ;;  %v12952_v48 = vld [vmem:[%s17032_s25 + $0x171] sm:$0xff] }
 0x27c   : > { %v18488_v20 = vpop.f32.mrb[5].mxu1 }
 0x27e   : > { %15248 = vmatmul.mubr.msk.f32.gmra.mrb[20].mxu0 %vm456_vm1, %v12872_v49  ;;  %v12953_v49 = vld [vmem:[%s17032_s25 + $0x181] sm:$0xff] }
 0x27f   : > { %15250 = vmatprep.mubr.msk.f32.mxu0 %vm456_vm1, %v12873_v50  ;;  %v18494_v23 = vpop.f32.mrb[6].mxu1 }
 0x280   : > { %v18496_v24 = vpop.f32.mrb[7].mxu1 }
 0x282   : > { %15251 = vmatmul.mubr.msk.f32.gmra.mrb[22].mxu0 %vm456_vm1, %v12874_v51 }
 0x283   : > { %15253 = vmatprep.mubr.msk.f32.mxu0 %vm456_vm1, %v12875_v52  ;;  %v18502_v27 = vpop.f32.mrb[8].mxu1  ;;  %v12954_v52 = vld [vmem:[%s17032_s25 + $0x189] sm:$0xff] }
 0x284   : > { %v18504_v28 = vpop.f32.mrb[9].mxu1 }
 0x286   : > { %15254 = vmatmul.mubr.msk.f32.gmra.mrb[24].mxu0 %vm456_vm1, %v12876_v53  ;;  %v12955_v53 = vld [vmem:[%s17032_s25 + $0x199] sm:$0xff] }
 0x287   : > { %15256 = vmatprep.mubr.msk.f32.mxu0 %vm456_vm1, %v12877_v54 }
 0x28a   : > { %15257 = vmatmul.mubr.msk.f32.gmra.mrb[26].mxu0 %vm456_vm1, %v12878_v55 }
 0x28b   : > { %15259 = vmatprep.mubr.msk.f32.mxu0 %vm456_vm1, %v12879_v56  ;;  %v12956_v56 = vld [vmem:[%s17032_s25 + $0x1a1] sm:$0xff] }
 0x28e   : > { %15260 = vmatmul.mubr.msk.f32.gmra.mrb[28].mxu0 %vm456_vm1, %v12880_v57  ;;  %v12957_v57 = vld [vmem:[%s17032_s25 + $0x1b1] sm:$0xff] }
 0x28f   : > { %15262 = vmatprep.mubr.msk.f32.mxu0 %vm456_vm1, %v12881_v58 }
 0x292   : > { %15263 = vmatmul.mubr.msk.f32.gmra.mrb[30].mxu0 %vm456_vm1, %v12882_v59 }
 0x293   : > { %15265 = vmatprep.mubr.msk.f32.mxu0 %vm456_vm1, %v12883_v60  ;;  %v12958_v60 = vld [vmem:[%s17032_s25 + $0x1b9] sm:$0xff] }
 0x296   : > { %15266 = vmatmul.mubr.msk.f32.gmra.mrb[32].mxu0 %vm456_vm1, %v12884_v61  ;;  %v12959_v61 = vld [vmem:[%s17032_s25 + $0x1c9] sm:$0xff] }
 0x297   : > { %15268 = vmatprep.mubr.msk.f32.mxu0 %vm456_vm1, %v12885_v62 }
 0x29a   : > { %15269 = vmatmul.mubr.msk.f32.gmra.mrb[34].mxu0 %vm456_vm1, %v12886_v63 }
 0x29b   : > { %15273 = vmatprep.mubr.msk.f32.mxu0 %vm456_vm1, %v12925_v0  ;;  %v12960_v0 = vld [vmem:[%s17032_s25 + $0x1d1] sm:$0xff] }
 0x29e   : > { %15274 = vmatmul.mubr.msk.f32.vlgmr.msra.gmra.mrb[0].mxu0 %vm456_vm1, %v12926_v10  ;;  %v12999_v10 = vld [vmem:[%s16949_s20 + $0x31] sm:$0xff] }
 0x29f   : > { %15328 = vmatpush3.msk.msra.mxu0 %vm565_vm0, %v18371_v30  ;;  %15276 = vmatprep.mubr.msk.f32.mxu0 %vm456_vm1, %v12927_v1  ;;  %v18510_v30 = vpop.f32.mrb[10].mxu1 }
 0x2a0   : > { %15383 = vmatprep.subr.msk.mxu0 %vm565_vm0, %v18452_v2  ;;  %v18512_v31 = vpop.f32.mrb[11].mxu1 }
 0x2a1   : > { %v18518_v34 = vpop.f32.mrb[12].mxu1 }
 0x2a2   : > { %15277 = vmatmul.mubr.msk.f32.gmra.mrb[2].mxu0 %vm456_vm1, %v12928_v3  ;;  %v18520_v35 = vpop.f32.mrb[13].mxu1 }
 0x2a3   : > { %15279 = vmatprep.mubr.msk.f32.mxu0 %vm456_vm1, %v12929_v4  ;;  %v18526_v38 = vpop.f32.mrb[14].mxu1  ;;  %v13000_v4 = vld [vmem:[%s16949_s20 + $0x39] sm:$0xff] }
 0x2a4   : > { %v18528_v39 = vpop.f32.mrb[15].mxu1 }
 0x2a5   : > { %v18534_v41 = vpop.f32.mrb[16].mxu1 }
 0x2a6   : > { %15280 = vmatmul.mubr.msk.f32.gmra.mrb[4].mxu0 %vm456_vm1, %v12930_v5  ;;  %v18536_v43 = vpop.f32.mrb[17].mxu1  ;;  %v13001_v5 = vld [vmem:[%s16949_s20 + $0x49] sm:$0xff] }
 0x2a7   : > { %15282 = vmatprep.mubr.msk.f32.mxu0 %vm456_vm1, %v12931_v6  ;;  %v18542_v46 = vpop.f32.mrb[18].mxu1 }
 0x2a8   : > { %v18544_v47 = vpop.f32.mrb[19].mxu1 }
 0x2a9   : > { %v18550_v50 = vpop.f32.mrb[20].mxu1 }
 0x2aa   : > { %15283 = vmatmul.mubr.msk.f32.gmra.mrb[6].mxu0 %vm456_vm1, %v12932_v7  ;;  %v18552_v51 = vpop.f32.mrb[21].mxu1  ;;  %v18595_v7 = vld [vmem:[%s19975_s3 + $0x20] sm:$0xf] }
 0x2ab   : > { %15285 = vmatprep.mubr.msk.f32.mxu0 %vm456_vm1, %v12933_v8  ;;  %v18558_v54 = vpop.f32.mrb[22].mxu1 }
 0x2ac   : > { %v18560_v55 = vpop.f32.mrb[23].mxu1 }
 0x2ad   : > { %v18566_v58 = vpop.f32.mrb[24].mxu1 }
 0x2ae   : > { %15286 = vmatmul.mubr.msk.f32.gmra.mrb[8].mxu0 %vm456_vm1, %v12934_v9  ;;  %v18568_v59 = vpop.f32.mrb[25].mxu1  ;;  %v13002_v9 = vld [vmem:[%s16949_s20 + $0x51] sm:$0xff] }
 0x2af   : > { %15288 = vmatprep.mubr.msk.f32.mxu0 %vm456_vm1, %v12935_v13  ;;  %v18574_v62 = vpop.f32.mrb[26].mxu1  ;;  %v13003_v13 = vld [vmem:[%s16949_s20 + $0x61] sm:$0xff] }
 0x2b0   : > { %v18576_v63 = vpop.f32.mrb[27].mxu1 }
 0x2b1   : > { %v18582_v1 = vpop.f32.mrb[28].mxu1 }
 0x2b2   : > { %15289 = vmatmul.mubr.msk.f32.gmra.mrb[10].mxu0 %vm456_vm1, %v12936_v17  ;;  %v18584_v3 = vpop.f32.mrb[29].mxu1 }
 0x2b3   : > { %15291 = vmatprep.mubr.msk.f32.mxu0 %vm456_vm1, %v12937_v18  ;;  %v18590_v6 = vpop.f32.mrb[30].mxu1 }
 0x2b4   : > { %v18597_v8 = vpop.f32.mrb[31].mxu1 }
 0x2b5   : > { %v18607_v17 = vpop.f32.mrb[32].mxu1 }
 0x2b6   : > { %15292 = vmatmul.mubr.msk.f32.gmra.mrb[12].mxu0 %vm456_vm1, %v12938_v21  ;;  %v18609_v18 = vpop.f32.mrb[33].mxu1  ;;  %v13005_v21 = vld [vmem:[%s16949_s20 + $0x79] sm:$0xff] }
 0x2b7   : > { %15294 = vmatprep.mubr.msk.f32.mxu0 %vm456_vm1, %v12939_v22  ;;  %v18615_v22 = vpop.f32.mrb[34].mxu1 }
 0x2ba   : > { %15295 = vmatmul.mubr.msk.f32.gmra.mrb[14].mxu0 %vm456_vm1, %v12940_v25  ;;  %v18617_v25 = vpop.f32.mrb[35].mxu1 }
 0x2bb   : > { %15297 = vmatprep.mubr.msk.f32.mxu0 %vm456_vm1, %v12941_v26  ;;  %v13006_v26 = vld [vmem:[%s16949_s20 + $0x81] sm:$0xff] }
 0x2be   : > { %15298 = vmatmul.mubr.msk.f32.gmra.mrb[16].mxu0 %vm456_vm1, %v12942_v15  ;;  %v13007_v15 = vld [vmem:[%s16949_s20 + $0x91] sm:$0xff] }
 0x2bf   : > { %15300 = vmatprep.mubr.msk.f32.mxu0 %vm456_vm1, %v12943_v29  ;;  %v13008_v29 = vld [vmem:[%s16949_s20 + $0x99] sm:$0xff] }
 0x2c2   : > { %15301 = vmatmul.mubr.msk.f32.gmra.mrb[18].mxu0 %vm456_vm1, %v12944_v32  ;;  %v13009_v32 = vld [vmem:[%s16949_s20 + $0xa9] sm:$0xff] }
 0x2c3   : > { %15303 = vmatprep.mubr.msk.f32.mxu0 %vm456_vm1, %v12945_v33  ;;  %v13010_v33 = vld [vmem:[%s16949_s20 + $0xb1] sm:$0xff] }
 0x2c6   : > { %15304 = vmatmul.mubr.msk.f32.gmra.mrb[20].mxu0 %vm456_vm1, %v12946_v36  ;;  %v13011_v36 = vld [vmem:[%s16949_s20 + $0xc1] sm:$0xff] }
 0x2c7   : > { %15306 = vmatprep.mubr.msk.f32.mxu0 %vm456_vm1, %v12947_v37  ;;  %v13012_v37 = vld [vmem:[%s16949_s20 + $0xc9] sm:$0xff] }
 0x2ca   : > { %15307 = vmatmul.mubr.msk.f32.gmra.mrb[22].mxu0 %vm456_vm1, %v12948_v42  ;;  %v13013_v42 = vld [vmem:[%s16949_s20 + $0xd9] sm:$0xff] }
 0x2cb   : > { %15309 = vmatprep.mubr.msk.f32.mxu0 %vm456_vm1, %v12949_v40  ;;  %v13014_v40 = vld [vmem:[%s16949_s20 + $0xe1] sm:$0xff] }
 0x2ce   : > { %15310 = vmatmul.mubr.msk.f32.gmra.mrb[24].mxu0 %vm456_vm1, %v12950_v44  ;;  %v13015_v44 = vld [vmem:[%s16949_s20 + $0xf1] sm:$0xff] }
 0x2cf   : > { %15312 = vmatprep.mubr.msk.f32.mxu0 %vm456_vm1, %v12951_v45  ;;  %v13016_v45 = vld [vmem:[%s16949_s20 + $0xf9] sm:$0xff] }
 0x2d2   : > { %15313 = vmatmul.mubr.msk.f32.gmra.mrb[26].mxu0 %vm456_vm1, %v12952_v48  ;;  %v13017_v48 = vld [vmem:[%s16949_s20 + $0x109] sm:$0xff] }
 0x2d3   : > { %15315 = vmatprep.mubr.msk.f32.mxu0 %vm456_vm1, %v12953_v49  ;;  %v13018_v49 = vld [vmem:[%s16949_s20 + $0x111] sm:$0xff] }
 0x2d6   : > { %15316 = vmatmul.mubr.msk.f32.gmra.mrb[28].mxu0 %vm456_vm1, %v12954_v52  ;;  %v13019_v52 = vld [vmem:[%s16949_s20 + $0x121] sm:$0xff] }
 0x2d7   : > { %15318 = vmatprep.mubr.msk.f32.mxu0 %vm456_vm1, %v12955_v53  ;;  %v13020_v53 = vld [vmem:[%s16949_s20 + $0x129] sm:$0xff] }
 0x2da   : > { %15319 = vmatmul.mubr.msk.f32.gmra.mrb[30].mxu0 %vm456_vm1, %v12956_v56  ;;  %v13021_v56 = vld [vmem:[%s16949_s20 + $0x139] sm:$0xff] }
 0x2db   : > { %15321 = vmatprep.mubr.msk.f32.mxu0 %vm456_vm1, %v12957_v57  ;;  %v13022_v57 = vld [vmem:[%s16949_s20 + $0x141] sm:$0xff] }
 0x2de   : > { %15322 = vmatmul.mubr.msk.f32.gmra.mrb[32].mxu0 %vm456_vm1, %v12958_v60  ;;  %v13023_v60 = vld [vmem:[%s16949_s20 + $0x151] sm:$0xff] }
 0x2df   : > { %15324 = vmatprep.mubr.msk.f32.mxu0 %vm456_vm1, %v12959_v61  ;;  %v13024_v61 = vld [vmem:[%s16949_s20 + $0x159] sm:$0xff] }
 0x2e2   : > { %15325 = vmatmul.mubr.msk.f32.gmra.mrb[34].mxu0 %vm456_vm1, %v12960_v0  ;;  %v13025_v0 = vld [vmem:[%s16949_s20 + $0x169] sm:$0xff] }
 0x2e3   : > { %15329 = vmatprep.mubr.msk.f32.mxu0 %vm456_vm1, %v12999_v10  ;;  %v13026_v10 = vld [vmem:[%s16949_s20 + $0x171] sm:$0xff] }
 0x2e6   : > { %15330 = vmatmul.mubr.msk.f32.vlgmr.msra.gmra.mrb[0].mxu0 %vm456_vm1, %v13000_v4  ;;  %v13027_v4 = vld [vmem:[%s16949_s20 + $0x181] sm:$0xff] }
 0x2e7   : > { %15384 = vmatpush3.msk.msra.mxu0 %vm565_vm0, %v18452_v2  ;;  %15332 = vmatprep.mubr.msk.f32.mxu0 %vm456_vm1, %v13001_v5  ;;  %v13004_v2 = vld [vmem:[%s16949_s20 + $0x69] sm:$0xff] }
 0x2e8   : > { %15439 = vmatprep.subr.msk.mxu0 %vm565_vm0, %v18595_v7  ;;  %v13028_v5 = vld [vmem:[%s16949_s20 + $0x189] sm:$0xff] }
 0x2ea   : > { %15333 = vmatmul.mubr.msk.f32.gmra.mrb[2].mxu0 %vm456_vm1, %v13002_v9  ;;  %v13029_v9 = vld [vmem:[%s16949_s20 + $0x199] sm:$0xff] }
 0x2eb   : > { %15335 = vmatprep.mubr.msk.f32.mxu0 %vm456_vm1, %v13003_v13  ;;  %v13030_v13 = vld [vmem:[%s16949_s20 + $0x1a1] sm:$0xff] }
 0x2ee   : > { %15336 = vmatmul.mubr.msk.f32.gmra.mrb[4].mxu0 %vm456_vm1, %v13004_v2  ;;  %v13031_v2 = vld [vmem:[%s16949_s20 + $0x1b1] sm:$0xff] }
 0x2ef   : > { %15338 = vmatprep.mubr.msk.f32.mxu0 %vm456_vm1, %v13005_v21  ;;  %v13032_v21 = vld [vmem:[%s16949_s20 + $0x1b9] sm:$0xff] }
 0x2f2   : > { %15339 = vmatmul.mubr.msk.f32.gmra.mrb[6].mxu0 %vm456_vm1, %v13006_v26  ;;  %v13033_v26 = vld [vmem:[%s16949_s20 + $0x1c9] sm:$0xff] }
 0x2f3   : > { %15341 = vmatprep.mubr.msk.f32.mxu0 %vm456_vm1, %v13007_v15  ;;  %v13034_v15 = vld [vmem:[%s16949_s20 + $0x1d1] sm:$0xff] }
 0x2f6   : > { %15342 = vmatmul.mubr.msk.f32.gmra.mrb[8].mxu0 %vm456_vm1, %v13008_v29  ;;  %v13073_v29 = vld [vmem:[%s17032_s25 + $0x32] sm:$0xff] }
 0x2f7   : > { %15344 = vmatprep.mubr.msk.f32.mxu0 %vm456_vm1, %v13009_v32  ;;  %v13074_v32 = vld [vmem:[%s17032_s25 + $0x3a] sm:$0xff] }
 0x2fa   : > { %15345 = vmatmul.mubr.msk.f32.gmra.mrb[10].mxu0 %vm456_vm1, %v13010_v33  ;;  %v13075_v33 = vld [vmem:[%s17032_s25 + $0x4a] sm:$0xff] }
 0x2fb   : > { %15347 = vmatprep.mubr.msk.f32.mxu0 %vm456_vm1, %v13011_v36  ;;  %v13076_v36 = vld [vmem:[%s17032_s25 + $0x52] sm:$0xff] }
 0x2fe   : > { %15348 = vmatmul.mubr.msk.f32.gmra.mrb[12].mxu0 %vm456_vm1, %v13012_v37  ;;  %v13077_v37 = vld [vmem:[%s17032_s25 + $0x62] sm:$0xff] }
 0x2ff   : > { %15350 = vmatprep.mubr.msk.f32.mxu0 %vm456_vm1, %v13013_v42  ;;  %v13078_v42 = vld [vmem:[%s17032_s25 + $0x6a] sm:$0xff] }
 0x302   : > { %15351 = vmatmul.mubr.msk.f32.gmra.mrb[14].mxu0 %vm456_vm1, %v13014_v40  ;;  %v13079_v40 = vld [vmem:[%s17032_s25 + $0x7a] sm:$0xff] }
 0x303   : > { %15353 = vmatprep.mubr.msk.f32.mxu0 %vm456_vm1, %v13015_v44  ;;  %v13080_v44 = vld [vmem:[%s17032_s25 + $0x82] sm:$0xff] }
 0x306   : > { %15354 = vmatmul.mubr.msk.f32.gmra.mrb[16].mxu0 %vm456_vm1, %v13016_v45  ;;  %v13223_v45 = vld [vmem:[%s19978_s6 + $0x8] sm:$0xff] }
 0x307   : > { %15356 = vmatprep.mubr.msk.f32.mxu0 %vm456_vm1, %v13017_v48  ;;  %v13082_v48 = vld [vmem:[%s17032_s25 + $0x9a] sm:$0xff]  ;;  %15495 = vmatprep.subr.mxu1 %v13223_v45 }
 0x308   : > { %15496 = vmatpush3.msra.mxu1 %v13223_v45  ;;  %v13147_v45 = vld [vmem:[%s16949_s20 + $0x32] sm:$0xff] }
 0x30a   : > { %15357 = vmatmul.mubr.msk.f32.gmra.mrb[18].mxu0 %vm456_vm1, %v13018_v49  ;;  %v13083_v49 = vld [vmem:[%s17032_s25 + $0xaa] sm:$0xff] }
 0x30b   : > { %15359 = vmatprep.mubr.msk.f32.mxu0 %vm456_vm1, %v13019_v52  ;;  %v13084_v52 = vld [vmem:[%s17032_s25 + $0xb2] sm:$0xff] }
 0x30e   : > { %15360 = vmatmul.mubr.msk.f32.gmra.mrb[20].mxu0 %vm456_vm1, %v13020_v53  ;;  %v13085_v53 = vld [vmem:[%s17032_s25 + $0xc2] sm:$0xff] }
 0x30f   : > { %15362 = vmatprep.mubr.msk.f32.mxu0 %vm456_vm1, %v13021_v56  ;;  %v13086_v56 = vld [vmem:[%s17032_s25 + $0xca] sm:$0xff] }
 0x312   : > { %15363 = vmatmul.mubr.msk.f32.gmra.mrb[22].mxu0 %vm456_vm1, %v13022_v57  ;;  %v13087_v57 = vld [vmem:[%s17032_s25 + $0xda] sm:$0xff] }
 0x313   : > { %15365 = vmatprep.mubr.msk.f32.mxu0 %vm456_vm1, %v13023_v60  ;;  %v13088_v60 = vld [vmem:[%s17032_s25 + $0xe2] sm:$0xff] }
 0x316   : > { %15366 = vmatmul.mubr.msk.f32.gmra.mrb[24].mxu0 %vm456_vm1, %v13024_v61  ;;  %v13089_v61 = vld [vmem:[%s17032_s25 + $0xf2] sm:$0xff] }
 0x317   : > { %15368 = vmatprep.mubr.msk.f32.mxu0 %vm456_vm1, %v13025_v0  ;;  %v13090_v0 = vld [vmem:[%s17032_s25 + $0xfa] sm:$0xff] }
 0x31a   : > { %15369 = vmatmul.mubr.msk.f32.gmra.mrb[26].mxu0 %vm456_vm1, %v13026_v10  ;;  %v13091_v10 = vld [vmem:[%s17032_s25 + $0x10a] sm:$0xff] }
 0x31b   : > { %15371 = vmatprep.mubr.msk.f32.mxu0 %vm456_vm1, %v13027_v4  ;;  %v13092_v4 = vld [vmem:[%s17032_s25 + $0x112] sm:$0xff] }
 0x31e   : > { %15372 = vmatmul.mubr.msk.f32.gmra.mrb[28].mxu0 %vm456_vm1, %v13028_v5  ;;  %v13093_v5 = vld [vmem:[%s17032_s25 + $0x122] sm:$0xff] }
 0x31f   : > { %15374 = vmatprep.mubr.msk.f32.mxu0 %vm456_vm1, %v13029_v9  ;;  %v13094_v9 = vld [vmem:[%s17032_s25 + $0x12a] sm:$0xff] }
 0x322   : > { %15375 = vmatmul.mubr.msk.f32.gmra.mrb[30].mxu0 %vm456_vm1, %v13030_v13  ;;  %v13095_v13 = vld [vmem:[%s17032_s25 + $0x13a] sm:$0xff] }
 0x323   : > { %15377 = vmatprep.mubr.msk.f32.mxu0 %vm456_vm1, %v13031_v2  ;;  %v13096_v2 = vld [vmem:[%s17032_s25 + $0x142] sm:$0xff] }
 0x326   : > { %15378 = vmatmul.mubr.msk.f32.gmra.mrb[32].mxu0 %vm456_vm1, %v13032_v21  ;;  %v13097_v21 = vld [vmem:[%s17032_s25 + $0x152] sm:$0xff] }
 0x327   : > { %15380 = vmatprep.mubr.msk.f32.mxu0 %vm456_vm1, %v13033_v26  ;;  %v13098_v26 = vld [vmem:[%s17032_s25 + $0x15a] sm:$0xff] }
 0x32a   : > { %15381 = vmatmul.mubr.msk.f32.gmra.mrb[34].mxu0 %vm456_vm1, %v13034_v15  ;;  %v13099_v15 = vld [vmem:[%s17032_s25 + $0x16a] sm:$0xff] }
 0x32b   : > { %15385 = vmatprep.mubr.msk.f32.mxu0 %vm456_vm1, %v13073_v29  ;;  %v13100_v29 = vld [vmem:[%s17032_s25 + $0x172] sm:$0xff] }
 0x32e   : > { %15386 = vmatmul.mubr.msk.f32.vlgmr.msra.gmra.mrb[0].mxu0 %vm456_vm1, %v13074_v32  ;;  %v13101_v32 = vld [vmem:[%s17032_s25 + $0x182] sm:$0xff] }
 0x32f   : > { %15440 = vmatpush3.msk.msra.mxu0 %vm565_vm0, %v18595_v7  ;;  %15388 = vmatprep.mubr.msk.f32.mxu0 %vm456_vm1, %v13075_v33  ;;  %v13081_v7 = vld [vmem:[%s17032_s25 + $0x92] sm:$0xff]  ;;  %v13102_v33 = vld [vmem:[%s17032_s25 + $0x18a] sm:$0xff] }
 0x332   : > { %15389 = vmatmul.mubr.msk.f32.gmra.mrb[2].mxu0 %vm456_vm1, %v13076_v36  ;;  %v13103_v36 = vld [vmem:[%s17032_s25 + $0x19a] sm:$0xff] }
 0x333   : > { %15391 = vmatprep.mubr.msk.f32.mxu0 %vm456_vm1, %v13077_v37  ;;  %v13104_v37 = vld [vmem:[%s17032_s25 + $0x1a2] sm:$0xff] }
 0x336   : > { %15392 = vmatmul.mubr.msk.f32.gmra.mrb[4].mxu0 %vm456_vm1, %v13078_v42  ;;  %v13105_v42 = vld [vmem:[%s17032_s25 + $0x1b2] sm:$0xff] }
 0x337   : > { %15394 = vmatprep.mubr.msk.f32.mxu0 %vm456_vm1, %v13079_v40  ;;  %v13106_v40 = vld [vmem:[%s17032_s25 + $0x1ba] sm:$0xff] }
 0x33a   : > { %15395 = vmatmul.mubr.msk.f32.gmra.mrb[6].mxu0 %vm456_vm1, %v13080_v44  ;;  %v13107_v44 = vld [vmem:[%s17032_s25 + $0x1ca] sm:$0xff] }
 0x33b   : > { %15397 = vmatprep.mubr.msk.f32.mxu0 %vm456_vm1, %v13081_v7  ;;  %v13108_v7 = vld [vmem:[%s17032_s25 + $0x1d2] sm:$0xff] }
 0x33e   : > { %15398 = vmatmul.mubr.msk.f32.gmra.mrb[8].mxu0 %vm456_vm1, %v13082_v48  ;;  %v13148_v48 = vld [vmem:[%s16949_s20 + $0x3a] sm:$0xff] }
 0x33f   : > { %15400 = vmatprep.mubr.msk.f32.mxu0 %vm456_vm1, %v13083_v49  ;;  %v13149_v49 = vld [vmem:[%s16949_s20 + $0x4a] sm:$0xff] }
 0x342   : > { %15401 = vmatmul.mubr.msk.f32.gmra.mrb[10].mxu0 %vm456_vm1, %v13084_v52  ;;  %v13150_v52 = vld [vmem:[%s16949_s20 + $0x52] sm:$0xff] }
 0x343   : > { %15403 = vmatprep.mubr.msk.f32.mxu0 %vm456_vm1, %v13085_v53  ;;  %v13151_v53 = vld [vmem:[%s16949_s20 + $0x62] sm:$0xff] }
 0x346   : > { %15404 = vmatmul.mubr.msk.f32.gmra.mrb[12].mxu0 %vm456_vm1, %v13086_v56  ;;  %v13152_v56 = vld [vmem:[%s16949_s20 + $0x6a] sm:$0xff] }
 0x347   : > { %15406 = vmatprep.mubr.msk.f32.mxu0 %vm456_vm1, %v13087_v57  ;;  %v13153_v57 = vld [vmem:[%s16949_s20 + $0x7a] sm:$0xff] }
 0x34a   : > { %15407 = vmatmul.mubr.msk.f32.gmra.mrb[14].mxu0 %vm456_vm1, %v13088_v60  ;;  %v13154_v60 = vld [vmem:[%s16949_s20 + $0x82] sm:$0xff] }
 0x34b   : > { %15409 = vmatprep.mubr.msk.f32.mxu0 %vm456_vm1, %v13089_v61  ;;  %v13155_v61 = vld [vmem:[%s16949_s20 + $0x92] sm:$0xff] }
 0x34e   : > { %15410 = vmatmul.mubr.msk.f32.gmra.mrb[16].mxu0 %vm456_vm1, %v13090_v0  ;;  %v13156_v0 = vld [vmem:[%s16949_s20 + $0x9a] sm:$0xff] }
 0x34f   : > { %15412 = vmatprep.mubr.msk.f32.mxu0 %vm456_vm1, %v13091_v10  ;;  %v13157_v10 = vld [vmem:[%s16949_s20 + $0xaa] sm:$0xff] }
 0x352   : > { %15413 = vmatmul.mubr.msk.f32.gmra.mrb[18].mxu0 %vm456_vm1, %v13092_v4  ;;  %v13158_v4 = vld [vmem:[%s16949_s20 + $0xb2] sm:$0xff] }
 0x353   : > { %15415 = vmatprep.mubr.msk.f32.mxu0 %vm456_vm1, %v13093_v5  ;;  %v13159_v5 = vld [vmem:[%s16949_s20 + $0xc2] sm:$0xff] }
 0x356   : > { %15416 = vmatmul.mubr.msk.f32.gmra.mrb[20].mxu0 %vm456_vm1, %v13094_v9  ;;  %v13160_v9 = vld [vmem:[%s16949_s20 + $0xca] sm:$0xff] }
 0x357   : > { %15418 = vmatprep.mubr.msk.f32.mxu0 %vm456_vm1, %v13095_v13  ;;  %v13161_v13 = vld [vmem:[%s16949_s20 + $0xda] sm:$0xff] }
 0x35a   : > { %15419 = vmatmul.mubr.msk.f32.gmra.mrb[22].mxu0 %vm456_vm1, %v13096_v2  ;;  %v13162_v2 = vld [vmem:[%s16949_s20 + $0xe2] sm:$0xff] }
 0x35b   : > { %15421 = vmatprep.mubr.msk.f32.mxu0 %vm456_vm1, %v13097_v21  ;;  %v13163_v21 = vld [vmem:[%s16949_s20 + $0xf2] sm:$0xff] }
 0x35e   : > { %15422 = vmatmul.mubr.msk.f32.gmra.mrb[24].mxu0 %vm456_vm1, %v13098_v26  ;;  %v13164_v26 = vld [vmem:[%s16949_s20 + $0xfa] sm:$0xff] }
 0x35f   : > { %15424 = vmatprep.mubr.msk.f32.mxu0 %vm456_vm1, %v13099_v15  ;;  %v13165_v15 = vld [vmem:[%s16949_s20 + $0x10a] sm:$0xff] }
 0x362   : > { %15425 = vmatmul.mubr.msk.f32.gmra.mrb[26].mxu0 %vm456_vm1, %v13100_v29  ;;  %v13166_v29 = vld [vmem:[%s16949_s20 + $0x112] sm:$0xff] }
 0x363   : > { %15427 = vmatprep.mubr.msk.f32.mxu0 %vm456_vm1, %v13101_v32  ;;  %v13167_v32 = vld [vmem:[%s16949_s20 + $0x122] sm:$0xff] }
 0x366   : > { %15428 = vmatmul.mubr.msk.f32.gmra.mrb[28].mxu0 %vm456_vm1, %v13102_v33  ;;  %v13168_v33 = vld [vmem:[%s16949_s20 + $0x12a] sm:$0xff] }
 0x367   : > { %15430 = vmatprep.mubr.msk.f32.mxu0 %vm456_vm1, %v13103_v36  ;;  %v13169_v36 = vld [vmem:[%s16949_s20 + $0x13a] sm:$0xff] }
 0x36a   : > { %15431 = vmatmul.mubr.msk.f32.gmra.mrb[30].mxu0 %vm456_vm1, %v13104_v37  ;;  %v13170_v37 = vld [vmem:[%s16949_s20 + $0x142] sm:$0xff] }
 0x36b   : > { %15433 = vmatprep.mubr.msk.f32.mxu0 %vm456_vm1, %v13105_v42  ;;  %v13171_v42 = vld [vmem:[%s16949_s20 + $0x152] sm:$0xff] }
 0x36e   : > { %15434 = vmatmul.mubr.msk.f32.gmra.mrb[32].mxu0 %vm456_vm1, %v13106_v40  ;;  %v13172_v40 = vld [vmem:[%s16949_s20 + $0x15a] sm:$0xff] }
 0x36f   : > { %15436 = vmatprep.mubr.msk.f32.mxu0 %vm456_vm1, %v13107_v44  ;;  %v13173_v44 = vld [vmem:[%s16949_s20 + $0x16a] sm:$0xff] }
 0x372   : > { %15437 = vmatmul.mubr.msk.f32.gmra.mrb[34].mxu0 %vm456_vm1, %v13108_v7  ;;  %v13174_v7 = vld [vmem:[%s16949_s20 + $0x172] sm:$0xff] }
 0x373   : > { %15441 = vmatprep.mubr.msk.f32.mxu0 %vm456_vm1, %v13147_v45  ;;  %v13175_v45 = vld [vmem:[%s16949_s20 + $0x182] sm:$0xff] }
 0x376   : > { %15442 = vmatmul.mubr.msk.f32.vlgmr.msra.gmra.mrb[0].mxu0 %vm456_vm1, %v13148_v48  ;;  %v13176_v48 = vld [vmem:[%s16949_s20 + $0x18a] sm:$0xff] }
 0x377   : > { %15444 = vmatprep.mubr.msk.f32.mxu0 %vm456_vm1, %v13149_v49  ;;  %v13177_v49 = vld [vmem:[%s16949_s20 + $0x19a] sm:$0xff] }
 0x37a   : > { %15445 = vmatmul.mubr.msk.f32.gmra.mrb[2].mxu0 %vm456_vm1, %v13150_v52  ;;  %v13178_v52 = vld [vmem:[%s16949_s20 + $0x1a2] sm:$0xff] }
 0x37b   : > { %15447 = vmatprep.mubr.msk.f32.mxu0 %vm456_vm1, %v13151_v53  ;;  %v13179_v53 = vld [vmem:[%s16949_s20 + $0x1b2] sm:$0xff] }
 0x37e   : > { %15448 = vmatmul.mubr.msk.f32.gmra.mrb[4].mxu0 %vm456_vm1, %v13152_v56  ;;  %v13180_v56 = vld [vmem:[%s16949_s20 + $0x1ba] sm:$0xff] }
 0x37f   : > { %15450 = vmatprep.mubr.msk.f32.mxu0 %vm456_vm1, %v13153_v57  ;;  %v13181_v57 = vld [vmem:[%s16949_s20 + $0x1ca] sm:$0xff] }
 0x382   : > { %15451 = vmatmul.mubr.msk.f32.gmra.mrb[6].mxu0 %vm456_vm1, %v13154_v60  ;;  %v13182_v60 = vld [vmem:[%s16949_s20 + $0x1d2] sm:$0xff] }
 0x383   : > { %15453 = vmatprep.mubr.msk.f32.mxu0 %vm456_vm1, %v13155_v61  ;;  %v16863_v61 = vmov 0.0  }
 0x384   : > { %8327 = vst.msk [vmem:[#allocation2 + $0x8] sm:$0xff] %vm8325_vm2, %v16863_v61  ;;  %8326 = vst.msk [vmem:[#allocation2] sm:$0xff] %vm8325_vm2, %v16863_v61 }
 0x385   : > { %8329 = vst.msk [vmem:[#allocation2 + $0x10] sm:$0x3] %vm8328_vm3, %v16863_v61  ;;  %8332 = vst.msk [vmem:[#allocation2 + $0x28] sm:$0x3] %vm8328_vm3, %v16863_v61 }
 0x386   : > { %15454 = vmatmul.mubr.msk.f32.gmra.mrb[8].mxu0 %vm456_vm1, %v13156_v0  ;;  %8330 = vst.msk [vmem:[#allocation2 + $0x18] sm:$0xff] %vm8325_vm2, %v16863_v61  ;;  %8331 = vst.msk [vmem:[#allocation2 + $0x20] sm:$0xff] %vm8325_vm2, %v16863_v61  ;;  %v18885_v0 = vld [vmem:[%s19978_s6] sm:$0xff] }
 0x387   : > { %15456 = vmatprep.mubr.msk.f32.mxu0 %vm456_vm1, %v13157_v10  ;;  %8333 = vst.msk [vmem:[#allocation2 + $0x30] sm:$0xff] %vm8325_vm2, %v16863_v61  ;;  %8334 = vst.msk [vmem:[#allocation2 + $0x38] sm:$0xff] %vm8325_vm2, %v16863_v61  ;;  %15545 = vmatprep.subr.mxu1 %v18885_v0 }
 0x388   : > { %8335 = vst.msk [vmem:[#allocation2 + $0x40] sm:$0x3] %vm8328_vm3, %v16863_v61  ;;  %8338 = vst.msk [vmem:[#allocation2 + $0x58] sm:$0x3] %vm8328_vm3, %v16863_v61 }
 0x389   : > { %8336 = vst.msk [vmem:[#allocation2 + $0x48] sm:$0xff] %vm8325_vm2, %v16863_v61  ;;  %8337 = vst.msk [vmem:[#allocation2 + $0x50] sm:$0xff] %vm8325_vm2, %v16863_v61 }
 0x38a   : > { %15457 = vmatmul.mubr.msk.f32.gmra.mrb[10].mxu0 %vm456_vm1, %v13158_v4  ;;  %8339 = vst.msk [vmem:[#allocation2 + $0x60] sm:$0xff] %vm8325_vm2, %v16863_v61  ;;  %8340 = vst.msk [vmem:[#allocation2 + $0x68] sm:$0xff] %vm8325_vm2, %v16863_v61  ;;  %v18891_v4 = vld [vmem:[%s19976_s4] ss:$0 sm:$0xff] }
 0x38b   : > { %15459 = vmatprep.mubr.msk.f32.mxu0 %vm456_vm1, %v13159_v5  ;;  %8341 = vst.msk [vmem:[#allocation2 + $0x70] sm:$0x3] %vm8328_vm3, %v16863_v61  ;;  %8344 = vst.msk [vmem:[#allocation2 + $0x88] sm:$0x3] %vm8328_vm3, %v16863_v61 }
 0x38c   : > { %8342 = vst.msk [vmem:[#allocation2 + $0x78] sm:$0xff] %vm8325_vm2, %v16863_v61  ;;  %8343 = vst.msk [vmem:[#allocation2 + $0x80] sm:$0xff] %vm8325_vm2, %v16863_v61 }
 0x38d   : > { %8345 = vst.msk [vmem:[#allocation2 + $0x90] sm:$0xff] %vm8325_vm2, %v16863_v61  ;;  %8346 = vst.msk [vmem:[#allocation2 + $0x98] sm:$0xff] %vm8325_vm2, %v16863_v61 }
 0x38e   : > { %15460 = vmatmul.mubr.msk.f32.gmra.mrb[12].mxu0 %vm456_vm1, %v13160_v9  ;;  %8347 = vst.msk [vmem:[#allocation2 + $0xa0] sm:$0x3] %vm8328_vm3, %v16863_v61  ;;  %8350 = vst.msk [vmem:[#allocation2 + $0xb8] sm:$0x3] %vm8328_vm3, %v16863_v61 }
 0x38f   : > { %15462 = vmatprep.mubr.msk.f32.mxu0 %vm456_vm1, %v13161_v13  ;;  %8348 = vst.msk [vmem:[#allocation2 + $0xa8] sm:$0xff] %vm8325_vm2, %v16863_v61  ;;  %8349 = vst.msk [vmem:[#allocation2 + $0xb0] sm:$0xff] %vm8325_vm2, %v16863_v61  ;;  %v18897_v13 = vld [vmem:[%s19977_s5] ss:$0 sm:$0xff] }
 0x390   : > { %8351 = vst.msk [vmem:[#allocation2 + $0xc0] sm:$0xff] %vm8325_vm2, %v16863_v61  ;;  %8352 = vst.msk [vmem:[#allocation2 + $0xc8] sm:$0xff] %vm8325_vm2, %v16863_v61 }
 0x391   : > { %8353 = vst.msk [vmem:[#allocation2 + $0xd0] sm:$0x3] %vm8328_vm3, %v16863_v61  ;;  %8356 = vst.msk [vmem:[#allocation2 + $0xe8] sm:$0x3] %vm8328_vm3, %v16863_v61 }
 0x392   : > { %15463 = vmatmul.mubr.msk.f32.gmra.mrb[14].mxu0 %vm456_vm1, %v13162_v2  ;;  %8354 = vst.msk [vmem:[#allocation2 + $0xd8] sm:$0xff] %vm8325_vm2, %v16863_v61  ;;  %8355 = vst.msk [vmem:[#allocation2 + $0xe0] sm:$0xff] %vm8325_vm2, %v16863_v61 }
 0x393   : > { %15465 = vmatprep.mubr.msk.f32.mxu0 %vm456_vm1, %v13163_v21  ;;  %8357 = vst.msk [vmem:[#allocation2 + $0xf0] sm:$0xff] %vm8325_vm2, %v16863_v61  ;;  %8358 = vst.msk [vmem:[#allocation2 + $0xf8] sm:$0xff] %vm8325_vm2, %v16863_v61 }
 0x394   : > { %8359 = vst.msk [vmem:[#allocation2 + $0x100] sm:$0x3] %vm8328_vm3, %v16863_v61  ;;  %8362 = vst.msk [vmem:[#allocation2 + $0x118] sm:$0x3] %vm8328_vm3, %v16863_v61 }
 0x395   : > { %8360 = vst.msk [vmem:[#allocation2 + $0x108] sm:$0xff] %vm8325_vm2, %v16863_v61  ;;  %8361 = vst.msk [vmem:[#allocation2 + $0x110] sm:$0xff] %vm8325_vm2, %v16863_v61 }
 0x396   : > { %15466 = vmatmul.mubr.msk.f32.gmra.mrb[16].mxu0 %vm456_vm1, %v13164_v26  ;;  %8363 = vst.msk [vmem:[#allocation2 + $0x120] sm:$0xff] %vm8325_vm2, %v16863_v61  ;;  %8364 = vst.msk [vmem:[#allocation2 + $0x128] sm:$0xff] %vm8325_vm2, %v16863_v61 }
 0x397   : > { %15468 = vmatprep.mubr.msk.f32.mxu0 %vm456_vm1, %v13165_v15  ;;  %8365 = vst.msk [vmem:[#allocation2 + $0x130] sm:$0x3] %vm8328_vm3, %v16863_v61  ;;  %8368 = vst.msk [vmem:[#allocation2 + $0x148] sm:$0x3] %vm8328_vm3, %v16863_v61 }
 0x398   : > { %8366 = vst.msk [vmem:[#allocation2 + $0x138] sm:$0xff] %vm8325_vm2, %v16863_v61  ;;  %8367 = vst.msk [vmem:[#allocation2 + $0x140] sm:$0xff] %vm8325_vm2, %v16863_v61 }
 0x399   : > { %8369 = vst.msk [vmem:[#allocation2 + $0x150] sm:$0xff] %vm8325_vm2, %v16863_v61  ;;  %8370 = vst.msk [vmem:[#allocation2 + $0x158] sm:$0xff] %vm8325_vm2, %v16863_v61 }
 0x39a   : > { %15469 = vmatmul.mubr.msk.f32.gmra.mrb[18].mxu0 %vm456_vm1, %v13166_v29  ;;  %8371 = vst.msk [vmem:[#allocation2 + $0x160] sm:$0x3] %vm8328_vm3, %v16863_v61  ;;  %8374 = vst.msk [vmem:[#allocation2 + $0x178] sm:$0x3] %vm8328_vm3, %v16863_v61 }
 0x39b   : > { %15471 = vmatprep.mubr.msk.f32.mxu0 %vm456_vm1, %v13167_v32  ;;  %8372 = vst.msk [vmem:[#allocation2 + $0x168] sm:$0xff] %vm8325_vm2, %v16863_v61  ;;  %8373 = vst.msk [vmem:[#allocation2 + $0x170] sm:$0xff] %vm8325_vm2, %v16863_v61 }
 0x39c   : > { %8375 = vst.msk [vmem:[#allocation2 + $0x180] sm:$0xff] %vm8325_vm2, %v16863_v61  ;;  %8376 = vst.msk [vmem:[#allocation2 + $0x188] sm:$0xff] %vm8325_vm2, %v16863_v61 }
 0x39d   : > { %8377 = vst.msk [vmem:[#allocation2 + $0x190] sm:$0x3] %vm8328_vm3, %v16863_v61  ;;  %8380 = vst.msk [vmem:[#allocation2 + $0x1a8] sm:$0x3] %vm8328_vm3, %v16863_v61 }
 0x39e   : > { %15472 = vmatmul.mubr.msk.f32.gmra.mrb[20].mxu0 %vm456_vm1, %v13168_v33  ;;  %8378 = vst.msk [vmem:[#allocation2 + $0x198] sm:$0xff] %vm8325_vm2, %v16863_v61  ;;  %8379 = vst.msk [vmem:[#allocation2 + $0x1a0] sm:$0xff] %vm8325_vm2, %v16863_v61 }
 0x39f   : > { %15474 = vmatprep.mubr.msk.f32.mxu0 %vm456_vm1, %v13169_v36 }
 0x3a2   : > { %15475 = vmatmul.mubr.msk.f32.gmra.mrb[22].mxu0 %vm456_vm1, %v13170_v37 }
 0x3a3   : > { %15477 = vmatprep.mubr.msk.f32.mxu0 %vm456_vm1, %v13171_v42 }
 0x3a6   : > { %15478 = vmatmul.mubr.msk.f32.gmra.mrb[24].mxu0 %vm456_vm1, %v13172_v40 }
 0x3a7   : > { %15480 = vmatprep.mubr.msk.f32.mxu0 %vm456_vm1, %v13173_v44 }
 0x3aa   : > { %15481 = vmatmul.mubr.msk.f32.gmra.mrb[26].mxu0 %vm456_vm1, %v13174_v7 }
 0x3ab   : > { %15483 = vmatprep.mubr.msk.f32.mxu0 %vm456_vm1, %v13175_v45 }
 0x3ae   : > { %15484 = vmatmul.mubr.msk.f32.gmra.mrb[28].mxu0 %vm456_vm1, %v13176_v48 }
 0x3af   : > { %15486 = vmatprep.mubr.msk.f32.mxu0 %vm456_vm1, %v13177_v49 }
 0x3b2   : > { %15487 = vmatmul.mubr.msk.f32.gmra.mrb[30].mxu0 %vm456_vm1, %v13178_v52 }
 0x3b3   : > { %15489 = vmatprep.mubr.msk.f32.mxu0 %vm456_vm1, %v13179_v53 }
 0x3b6   : > { %15490 = vmatmul.mubr.msk.f32.gmra.mrb[32].mxu0 %vm456_vm1, %v13180_v56 }
 0x3b7   : > { %15492 = vmatprep.mubr.msk.f32.mxu0 %vm456_vm1, %v13181_v57 }
 0x3ba   : > { %15493 = vmatmul.mubr.msk.f32.gmra.mrb[34].mxu0 %vm456_vm1, %v13182_v60 }
 0x449   : > { %v15443_v10 = vpop.f32.mrb[0].mxu0 }
 0x44a   : > { %v15945_v5 = vadd.f32 %v15443_v10, %v18470_v11  ;;  %v7843_v9 = vpop.f32.mrb[1].mxu0 }
 0x44b   : > { %v15946_v2 = vadd.f32 %v7843_v9, %v18472_v12 }
 0x44c   : > { %v8066_v21 = vmul.f32 %v15945_v5, %v18891_v4 }
 0x44d   : > { %v8065_v26 = vmul.f32 %v15946_v2, %v18891_v4  ;;  %v15446_v15 = vpop.f32.mrb[2].mxu0 }
 0x44e   : > { %v8109_v29 = vadd.f32 %v18897_v13, %v8066_v21  ;;  %v15947_v32 = vadd.f32 %v15446_v15, %v18478_v14  ;;  %v7853_v33 = vpop.f32.mrb[3].mxu0 }
 0x44f   : > { %v8108_v11 = vadd.f32 %v18897_v13, %v8065_v26  ;;  %v15948_v36 = vadd.f32 %v7853_v33, %v18480_v16 }
 0x450   : > { %v8145_v37 = vmax.f32 %v8109_v29, 0.0  ;;  %v8068_v42 = vmul.f32 %v15947_v32, %v18891_v4 }
 0x451   : > { %v8144_v40 = vmax.f32 %v8108_v11, 0.0  ;;  %v8067_v12 = vmul.f32 %v15948_v36, %v18891_v4  ;;  %v15449_v44 = vpop.f32.mrb[4].mxu0 }
 0x452   : > { %v8290_v7 = vmul.f32 0.0, %v8145_v37  ;;  %v8111_v45 = vadd.f32 %v18897_v13, %v8068_v42  ;;  %v15949_v48 = vadd.f32 %v15449_v44, %v18486_v19  ;;  %v7863_v49 = vpop.f32.mrb[5].mxu0 }
 0x453   : > { %v8289_v52 = vmul.f32 0.0, %v8144_v40  ;;  %v8110_v14 = vadd.f32 %v18897_v13, %v8067_v12  ;;  %v15950_v53 = vadd.f32 %v7863_v49, %v18488_v20 }
 0x454   : > { %8382 = vst.msk [vmem:[#allocation2 + $0x9] sm:$0xff] %vm8325_vm2, %v8290_v7  ;;  %v8147_v16 = vmax.f32 %v8111_v45, 0.0  ;;  %v8070_v56 = vmul.f32 %v15949_v48, %v18891_v4 }
 0x455   : > { %8381 = vst.msk [vmem:[#allocation2 + $0x1] sm:$0xff] %vm8325_vm2, %v8289_v52  ;;  %v8146_v57 = vmax.f32 %v8110_v14, 0.0  ;;  %v8069_v60 = vmul.f32 %v15950_v53, %v18891_v4  ;;  %v15452_v61 = vpop.f32.mrb[6].mxu0 }
 0x456   : > { %8384 = vst.msk [vmem:[#allocation2 + $0x21] sm:$0xff] %vm8325_vm2, %v8147_v16  ;;  %v8113_v19 = vadd.f32 %v18897_v13, %v8070_v56  ;;  %v15951_v10 = vadd.f32 %v15452_v61, %v18494_v23  ;;  %v7873_v5 = vpop.f32.mrb[7].mxu0 }
 0x457   : > { %8383 = vst.msk [vmem:[#allocation2 + $0x19] sm:$0xff] %vm8325_vm2, %v8146_v57  ;;  %v8112_v20 = vadd.f32 %v18897_v13, %v8069_v60  ;;  %v15952_v9 = vadd.f32 %v7873_v5, %v18496_v24 }
 0x458   : > { %v8149_v2 = vmax.f32 %v8113_v19, 0.0  ;;  %v8072_v21 = vmul.f32 %v15951_v10, %v18891_v4 }
 0x459   : > { %v8148_v26 = vmax.f32 %v8112_v20, 0.0  ;;  %v8071_v15 = vmul.f32 %v15952_v9, %v18891_v4  ;;  %v15455_v29 = vpop.f32.mrb[8].mxu0 }
 0x45a   : > { %8386 = vst.msk [vmem:[#allocation2 + $0x39] sm:$0xff] %vm8325_vm2, %v8149_v2  ;;  %v8115_v32 = vadd.f32 %v18897_v13, %v8072_v21  ;;  %v15953_v23 = vadd.f32 %v15455_v29, %v18502_v27  ;;  %v7883_v33 = vpop.f32.mrb[9].mxu0  ;;  %v18936_v27 = vld [vmem:[%s19978_s6 + $0x10] sm:$0xff] }
 0x45b   : > { %8385 = vst.msk [vmem:[#allocation2 + $0x31] sm:$0xff] %vm8325_vm2, %v8148_v26  ;;  %v8114_v11 = vadd.f32 %v18897_v13, %v8071_v15  ;;  %v15954_v24 = vadd.f32 %v7883_v33, %v18504_v28  ;;  %v8451_v7 = vld [vmem:[#allocation2 + $0x9] sm:$0xff] }
 0x45c   : > { %v8151_v36 = vmax.f32 %v8115_v32, 0.0  ;;  %v8074_v37 = vmul.f32 %v15953_v23, %v18891_v4  ;;  %v8450_v42 = vld [vmem:[#allocation2 + $0x1] sm:$0xff] }
 0x45d   : > { %v8150_v40 = vmax.f32 %v8114_v11, 0.0  ;;  %v8073_v12 = vmul.f32 %v15954_v24, %v18891_v4  ;;  %v15458_v44 = vpop.f32.mrb[10].mxu0  ;;  %15497 = vmatprep.mubr.msk.f32.mxu1 %vm8325_vm2, %v8450_v42  ;;  %v18953_v60 = vld [vmem:[#allocation2 + $0x21] sm:$0xff] }
 0x45e   : > { %8388 = vst.msk [vmem:[#allocation2 + $0x51] sm:$0xff] %vm8325_vm2, %v8151_v36  ;;  %v8117_v28 = vadd.f32 %v18897_v13, %v8074_v37  ;;  %v15955_v45 = vadd.f32 %v15458_v44, %v18510_v30  ;;  %v7893_v48 = vpop.f32.mrb[11].mxu0  ;;  %15498 = vmatmul.mubr.msk.f32.vlgmr.msra.gmra.mrb[36].mxu1 %vm8325_vm2, %v8451_v7  ;;  %v18942_v49 = vld [vmem:[#allocation2 + $0x19] sm:$0xff] }
 0x45f   : > { %8387 = vst.msk [vmem:[#allocation2 + $0x49] sm:$0xff] %vm8325_vm2, %v8150_v40  ;;  %v8116_v52 = vadd.f32 %v18897_v13, %v8073_v12  ;;  %v15956_v14 = vadd.f32 %v7893_v48, %v18512_v31  ;;  %15546 = vmatpush3.msra.mxu1 %v18885_v0  ;;  %15500 = vmatprep.mubr.msk.f32.mxu1 %vm8325_vm2, %v18942_v49 }
 0x460   : > { %v8153_v53 = vmax.f32 %v8117_v28, 0.0  ;;  %v8076_v16 = vmul.f32 %v15955_v45, %v18891_v4  ;;  %15595 = vmatprep.subr.mxu1 %v18936_v27 }
 0x461   : > { %v8152_v30 = vmax.f32 %v8116_v52, 0.0  ;;  %v8075_v56 = vmul.f32 %v15956_v14, %v18891_v4  ;;  %v15461_v57 = vpop.f32.mrb[12].mxu0  ;;  %v18969_v26 = vld [vmem:[#allocation2 + $0x39] sm:$0xff] }
 0x462   : > { %8390 = vst.msk [vmem:[#allocation2 + $0x69] sm:$0xff] %vm8325_vm2, %v8153_v53  ;;  %v8119_v31 = vadd.f32 %v18897_v13, %v8076_v16  ;;  %v15957_v0 = vadd.f32 %v15461_v57, %v18518_v34  ;;  %v7903_v61 = vpop.f32.mrb[13].mxu0  ;;  %15501 = vmatmul.mubr.msk.f32.gmra.mrb[38].mxu1 %vm8325_vm2, %v18953_v60  ;;  %v18960_v19 = vld [vmem:[#allocation2 + $0x31] sm:$0xff] }
 0x463   : > { %8389 = vst.msk [vmem:[#allocation2 + $0x61] sm:$0xff] %vm8325_vm2, %v8152_v30  ;;  %v8118_v10 = vadd.f32 %v18897_v13, %v8075_v56  ;;  %v15958_v5 = vadd.f32 %v7903_v61, %v18520_v35  ;;  %15503 = vmatprep.mubr.msk.f32.mxu1 %vm8325_vm2, %v18960_v19 }
 0x464   : > { %v8155_v20 = vmax.f32 %v8119_v31, 0.0  ;;  %v8078_v9 = vmul.f32 %v15957_v0, %v18891_v4 }
 0x465   : > { %v8154_v2 = vmax.f32 %v8118_v10, 0.0  ;;  %v8077_v34 = vmul.f32 %v15958_v5, %v18891_v4  ;;  %v15464_v21 = vpop.f32.mrb[14].mxu0  ;;  %v18985_v42 = vld [vmem:[#allocation2 + $0x51] sm:$0xff] }
 0x466   : > { %8392 = vst.msk [vmem:[#allocation2 + $0x81] sm:$0xff] %vm8325_vm2, %v8155_v20  ;;  %v8121_v15 = vadd.f32 %v18897_v13, %v8078_v9  ;;  %v15959_v29 = vadd.f32 %v15464_v21, %v18526_v38  ;;  %v7913_v32 = vpop.f32.mrb[15].mxu0  ;;  %15504 = vmatmul.mubr.msk.f32.gmra.mrb[40].mxu1 %vm8325_vm2, %v18969_v26  ;;  %v18976_v35 = vld [vmem:[#allocation2 + $0x49] sm:$0xff] }
 0x467   : > { %8391 = vst.msk [vmem:[#allocation2 + $0x79] sm:$0xff] %vm8325_vm2, %v8154_v2  ;;  %v8120_v23 = vadd.f32 %v18897_v13, %v8077_v34  ;;  %v15960_v33 = vadd.f32 %v7913_v32, %v18528_v39  ;;  %15506 = vmatprep.mubr.msk.f32.mxu1 %vm8325_vm2, %v18976_v35 }
 0x468   : > { %v8157_v11 = vmax.f32 %v8121_v15, 0.0  ;;  %v8080_v24 = vmul.f32 %v15959_v29, %v18891_v4 }
 0x469   : > { %v8156_v36 = vmax.f32 %v8120_v23, 0.0  ;;  %v8079_v38 = vmul.f32 %v15960_v33, %v18891_v4  ;;  %v15467_v37 = vpop.f32.mrb[16].mxu0  ;;  %v19001_v53 = vld [vmem:[#allocation2 + $0x69] sm:$0xff] }
 0x46a   : > { %8394 = vst.msk [vmem:[#allocation2 + $0x99] sm:$0xff] %vm8325_vm2, %v8157_v11  ;;  %v8123_v40 = vadd.f32 %v18897_v13, %v8080_v24  ;;  %v15961_v12 = vadd.f32 %v15467_v37, %v18534_v41  ;;  %v7923_v44 = vpop.f32.mrb[17].mxu0  ;;  %15507 = vmatmul.mubr.msk.f32.gmra.mrb[42].mxu1 %vm8325_vm2, %v18985_v42  ;;  %v18992_v39 = vld [vmem:[#allocation2 + $0x61] sm:$0xff] }
 0x46b   : > { %8393 = vst.msk [vmem:[#allocation2 + $0x91] sm:$0xff] %vm8325_vm2, %v8156_v36  ;;  %v8122_v7 = vadd.f32 %v18897_v13, %v8079_v38  ;;  %v15962_v28 = vadd.f32 %v7923_v44, %v18536_v43  ;;  %15509 = vmatprep.mubr.msk.f32.mxu1 %vm8325_vm2, %v18992_v39 }
 0x46c   : > { %v8159_v45 = vmax.f32 %v8123_v40, 0.0  ;;  %v8082_v48 = vmul.f32 %v15961_v12, %v18891_v4 }
 0x46d   : > { %v8158_v52 = vmax.f32 %v8122_v7, 0.0  ;;  %v8081_v41 = vmul.f32 %v15962_v28, %v18891_v4  ;;  %v15470_v14 = vpop.f32.mrb[18].mxu0  ;;  %v19017_v20 = vld [vmem:[#allocation2 + $0x81] sm:$0xff] }
 0x46e   : > { %8396 = vst.msk [vmem:[#allocation2 + $0xb1] sm:$0xff] %vm8325_vm2, %v8159_v45  ;;  %v8125_v16 = vadd.f32 %v18897_v13, %v8082_v48  ;;  %v15963_v30 = vadd.f32 %v15470_v14, %v18542_v46  ;;  %v7933_v56 = vpop.f32.mrb[19].mxu0  ;;  %15510 = vmatmul.mubr.msk.f32.gmra.mrb[44].mxu1 %vm8325_vm2, %v19001_v53  ;;  %v19008_v43 = vld [vmem:[#allocation2 + $0x79] sm:$0xff] }
 0x46f   : > { %8395 = vst.msk [vmem:[#allocation2 + $0xa9] sm:$0xff] %vm8325_vm2, %v8158_v52  ;;  %v8124_v57 = vadd.f32 %v18897_v13, %v8081_v41  ;;  %v15964_v31 = vadd.f32 %v7933_v56, %v18544_v47  ;;  %15512 = vmatprep.mubr.msk.f32.mxu1 %vm8325_vm2, %v19008_v43 }
 0x470   : > { %v8161_v0 = vmax.f32 %v8125_v16, 0.0  ;;  %v8084_v61 = vmul.f32 %v15963_v30, %v18891_v4 }
 0x471   : > { %v8160_v10 = vmax.f32 %v8124_v57, 0.0  ;;  %v8083_v46 = vmul.f32 %v15964_v31, %v18891_v4  ;;  %v15473_v5 = vpop.f32.mrb[20].mxu0  ;;  %v19033_v11 = vld [vmem:[#allocation2 + $0x99] sm:$0xff] }
 0x472   : > { %8398 = vst.msk [vmem:[#allocation2 + $0xc9] sm:$0xff] %vm8325_vm2, %v8161_v0  ;;  %v8127_v9 = vadd.f32 %v18897_v13, %v8084_v61  ;;  %v15965_v2 = vadd.f32 %v15473_v5, %v18550_v50  ;;  %v7943_v34 = vpop.f32.mrb[21].mxu0  ;;  %15513 = vmatmul.mubr.msk.f32.gmra.mrb[46].mxu1 %vm8325_vm2, %v19017_v20  ;;  %v19024_v47 = vld [vmem:[#allocation2 + $0x91] sm:$0xff] }
 0x473   : > { %8397 = vst.msk [vmem:[#allocation2 + $0xc1] sm:$0xff] %vm8325_vm2, %v8160_v10  ;;  %v8126_v21 = vadd.f32 %v18897_v13, %v8083_v46  ;;  %v15966_v15 = vadd.f32 %v7943_v34, %v18552_v51  ;;  %15515 = vmatprep.mubr.msk.f32.mxu1 %vm8325_vm2, %v19024_v47 }
 0x474   : > { %v8163_v29 = vmax.f32 %v8127_v9, 0.0  ;;  %v8086_v32 = vmul.f32 %v15965_v2, %v18891_v4 }
 0x475   : > { %v8162_v23 = vmax.f32 %v8126_v21, 0.0  ;;  %v8085_v50 = vmul.f32 %v15966_v15, %v18891_v4  ;;  %v15476_v33 = vpop.f32.mrb[22].mxu0  ;;  %v19049_v45 = vld [vmem:[#allocation2 + $0xb1] sm:$0xff] }
 0x476   : > { %8400 = vst.msk [vmem:[#allocation2 + $0xe1] sm:$0xff] %vm8325_vm2, %v8163_v29  ;;  %v8129_v24 = vadd.f32 %v18897_v13, %v8086_v32  ;;  %v15967_v36 = vadd.f32 %v15476_v33, %v18558_v54  ;;  %v7953_v38 = vpop.f32.mrb[23].mxu0  ;;  %15516 = vmatmul.mubr.msk.f32.gmra.mrb[48].mxu1 %vm8325_vm2, %v19033_v11  ;;  %v19040_v51 = vld [vmem:[#allocation2 + $0xa9] sm:$0xff] }
 0x477   : > { %8399 = vst.msk [vmem:[#allocation2 + $0xd9] sm:$0xff] %vm8325_vm2, %v8162_v23  ;;  %v8128_v37 = vadd.f32 %v18897_v13, %v8085_v50  ;;  %v15968_v40 = vadd.f32 %v7953_v38, %v18560_v55  ;;  %15518 = vmatprep.mubr.msk.f32.mxu1 %vm8325_vm2, %v19040_v51 }
 0x478   : > { %v8165_v12 = vmax.f32 %v8129_v24, 0.0  ;;  %v8088_v44 = vmul.f32 %v15967_v36, %v18891_v4 }
 0x479   : > { %v8164_v7 = vmax.f32 %v8128_v37, 0.0  ;;  %v8087_v54 = vmul.f32 %v15968_v40, %v18891_v4  ;;  %v15479_v28 = vpop.f32.mrb[24].mxu0  ;;  %v19065_v0 = vld [vmem:[#allocation2 + $0xc9] sm:$0xff] }
 0x47a   : > { %8402 = vst.msk [vmem:[#allocation2 + $0xf9] sm:$0xff] %vm8325_vm2, %v8165_v12  ;;  %v8131_v48 = vadd.f32 %v18897_v13, %v8088_v44  ;;  %v15969_v52 = vadd.f32 %v15479_v28, %v18566_v58  ;;  %v7963_v41 = vpop.f32.mrb[25].mxu0  ;;  %15519 = vmatmul.mubr.msk.f32.gmra.mrb[50].mxu1 %vm8325_vm2, %v19049_v45  ;;  %v19056_v55 = vld [vmem:[#allocation2 + $0xc1] sm:$0xff] }
 0x47b   : > { %8401 = vst.msk [vmem:[#allocation2 + $0xf1] sm:$0xff] %vm8325_vm2, %v8164_v7  ;;  %v8130_v14 = vadd.f32 %v18897_v13, %v8087_v54  ;;  %v15970_v16 = vadd.f32 %v7963_v41, %v18568_v59  ;;  %15521 = vmatprep.mubr.msk.f32.mxu1 %vm8325_vm2, %v19056_v55 }
 0x47c   : > { %v8167_v30 = vmax.f32 %v8131_v48, 0.0  ;;  %v8090_v56 = vmul.f32 %v15969_v52, %v18891_v4 }
 0x47d   : > { %v8166_v57 = vmax.f32 %v8130_v14, 0.0  ;;  %v8089_v58 = vmul.f32 %v15970_v16, %v18891_v4  ;;  %v15482_v31 = vpop.f32.mrb[26].mxu0  ;;  %v19081_v29 = vld [vmem:[#allocation2 + $0xe1] sm:$0xff] }
 0x47e   : > { %8404 = vst.msk [vmem:[#allocation2 + $0x111] sm:$0xff] %vm8325_vm2, %v8167_v30  ;;  %v8133_v61 = vadd.f32 %v18897_v13, %v8090_v56  ;;  %v15971_v10 = vadd.f32 %v15482_v31, %v18574_v62  ;;  %v7973_v46 = vpop.f32.mrb[27].mxu0  ;;  %15522 = vmatmul.mubr.msk.f32.gmra.mrb[52].mxu1 %vm8325_vm2, %v19065_v0  ;;  %v19072_v59 = vld [vmem:[#allocation2 + $0xd9] sm:$0xff] }
 0x47f   : > { %8403 = vst.msk [vmem:[#allocation2 + $0x109] sm:$0xff] %vm8325_vm2, %v8166_v57  ;;  %v8132_v5 = vadd.f32 %v18897_v13, %v8089_v58  ;;  %v15972_v9 = vadd.f32 %v7973_v46, %v18576_v63  ;;  %15524 = vmatprep.mubr.msk.f32.mxu1 %vm8325_vm2, %v19072_v59 }
 0x480   : > { %v8169_v2 = vmax.f32 %v8133_v61, 0.0  ;;  %v8092_v34 = vmul.f32 %v15971_v10, %v18891_v4 }
 0x481   : > { %v8168_v21 = vmax.f32 %v8132_v5, 0.0  ;;  %v8091_v62 = vmul.f32 %v15972_v9, %v18891_v4  ;;  %v15485_v15 = vpop.f32.mrb[28].mxu0  ;;  %v19097_v12 = vld [vmem:[#allocation2 + $0xf9] sm:$0xff] }
 0x482   : > { %8406 = vst.msk [vmem:[#allocation2 + $0x129] sm:$0xff] %vm8325_vm2, %v8169_v2  ;;  %v8135_v32 = vadd.f32 %v18897_v13, %v8092_v34  ;;  %v15973_v23 = vadd.f32 %v15485_v15, %v18582_v1  ;;  %v7983_v50 = vpop.f32.mrb[29].mxu0  ;;  %15525 = vmatmul.mubr.msk.f32.gmra.mrb[54].mxu1 %vm8325_vm2, %v19081_v29  ;;  %v19088_v63 = vld [vmem:[#allocation2 + $0xf1] sm:$0xff] }
 0x483   : > { %8405 = vst.msk [vmem:[#allocation2 + $0x121] sm:$0xff] %vm8325_vm2, %v8168_v21  ;;  %v8134_v33 = vadd.f32 %v18897_v13, %v8091_v62  ;;  %v15974_v24 = vadd.f32 %v7983_v50, %v18584_v3  ;;  %15527 = vmatprep.mubr.msk.f32.mxu1 %vm8325_vm2, %v19088_v63 }
 0x484   : > { %v8171_v36 = vmax.f32 %v8135_v32, 0.0  ;;  %v8094_v38 = vmul.f32 %v15973_v23, %v18891_v4 }
 0x485   : > { %v8170_v37 = vmax.f32 %v8134_v33, 0.0  ;;  %v8093_v1 = vmul.f32 %v15974_v24, %v18891_v4  ;;  %v15488_v40 = vpop.f32.mrb[30].mxu0  ;;  %v19113_v30 = vld [vmem:[#allocation2 + $0x111] sm:$0xff] }
 0x486   : > { %8408 = vst.msk [vmem:[#allocation2 + $0x141] sm:$0xff] %vm8325_vm2, %v8171_v36  ;;  %v8137_v44 = vadd.f32 %v18897_v13, %v8094_v38  ;;  %v15975_v7 = vadd.f32 %v15488_v40, %v18590_v6  ;;  %v7993_v54 = vpop.f32.mrb[31].mxu0  ;;  %15528 = vmatmul.mubr.msk.f32.gmra.mrb[56].mxu1 %vm8325_vm2, %v19097_v12  ;;  %v19104_v3 = vld [vmem:[#allocation2 + $0x109] sm:$0xff] }
 0x487   : > { %8407 = vst.msk [vmem:[#allocation2 + $0x139] sm:$0xff] %vm8325_vm2, %v8170_v37  ;;  %v8136_v28 = vadd.f32 %v18897_v13, %v8093_v1  ;;  %v15976_v48 = vadd.f32 %v7993_v54, %v18597_v8  ;;  %15530 = vmatprep.mubr.msk.f32.mxu1 %vm8325_vm2, %v19104_v3  ;;  %v8417_v54 = vld [vmem:[#allocation2] sm:$0xff] }
 0x488   : > { %v8173_v52 = vmax.f32 %v8137_v44, 0.0  ;;  %v8096_v41 = vmul.f32 %v15975_v7, %v18891_v4 }
 0x489   : > { %v8172_v14 = vmax.f32 %v8136_v28, 0.0  ;;  %v8095_v6 = vmul.f32 %v15976_v48, %v18891_v4  ;;  %v15491_v16 = vpop.f32.mrb[32].mxu0  ;;  %v19129_v2 = vld [vmem:[#allocation2 + $0x129] sm:$0xff]  ;;  %v19175_v48 = vld [vmem:[%s19978_s6 + $0x18] sm:$0xff] }
 0x48a   : > { %8410 = vst.msk [vmem:[#allocation2 + $0x159] sm:$0xff] %vm8325_vm2, %v8173_v52  ;;  %v8139_v56 = vadd.f32 %v18897_v13, %v8096_v41  ;;  %v15977_v57 = vadd.f32 %v15491_v16, %v18607_v17  ;;  %v8003_v58 = vpop.f32.mrb[33].mxu0  ;;  %15531 = vmatmul.mubr.msk.f32.gmra.mrb[58].mxu1 %vm8325_vm2, %v19113_v30  ;;  %v19120_v8 = vld [vmem:[#allocation2 + $0x121] sm:$0xff]  ;;  %v19178_v52 = vld [vmem:[#allocation2 + $0x18] sm:$0xff]  ;;  %v19200_v16 = vld [vmem:[#allocation2 + $0x50] sm:$0xff] }
 0x48b   : > { %8409 = vst.msk [vmem:[#allocation2 + $0x151] sm:$0xff] %vm8325_vm2, %v8172_v14  ;;  %v8138_v31 = vadd.f32 %v18897_v13, %v8095_v6  ;;  %v15978_v61 = vadd.f32 %v8003_v58, %v18609_v18  ;;  %15533 = vmatprep.mubr.msk.f32.mxu1 %vm8325_vm2, %v19120_v8  ;;  %v8418_v28 = vld [vmem:[#allocation2 + $0x8] sm:$0xff]  ;;  %v19184_v41 = vld [vmem:[#allocation2 + $0x20] sm:$0xff]  ;;  %v19188_v14 = vld [vmem:[#allocation2 + $0x30] sm:$0xff] }
 0x48c   : > { %v8175_v10 = vmax.f32 %v8139_v56, 0.0  ;;  %v8098_v46 = vmul.f32 %v15977_v57, %v18891_v4  ;;  %v19192_v6 = vld [vmem:[#allocation2 + $0x38] sm:$0xff]  ;;  %v19204_v56 = vld [vmem:[#allocation2 + $0x60] sm:$0xff]  ;;  %v19208_v57 = vld [vmem:[#allocation2 + $0x68] sm:$0xff] }
 0x48d   : > { %v8174_v5 = vmax.f32 %v8138_v31, 0.0  ;;  %v8097_v17 = vmul.f32 %v15978_v61, %v18891_v4  ;;  %v15494_v9 = vpop.f32.mrb[34].mxu0  ;;  %v19145_v24 = vld [vmem:[#allocation2 + $0x141] sm:$0xff]  ;;  %v19212_v58 = vld [vmem:[#allocation2 + $0x78] sm:$0xff]  ;;  %v19220_v61 = vld [vmem:[#allocation2 + $0x90] sm:$0xff] }
 0x48e   : > { %8412 = vst.msk [vmem:[#allocation2 + $0x171] sm:$0xff] %vm8325_vm2, %v8175_v10  ;;  %v8141_v34 = vadd.f32 %v18897_v13, %v8098_v46  ;;  %v15979_v21 = vadd.f32 %v15494_v9, %v18615_v22  ;;  %v8013_v62 = vpop.f32.mrb[35].mxu0  ;;  %15534 = vmatmul.mubr.msk.f32.gmra.mrb[60].mxu1 %vm8325_vm2, %v19129_v2  ;;  %v19136_v18 = vld [vmem:[#allocation2 + $0x139] sm:$0xff]  ;;  %v19228_v46 = vld [vmem:[#allocation2 + $0xa8] sm:$0xff] }
 0x48f   : > { %8411 = vst.msk [vmem:[#allocation2 + $0x169] sm:$0xff] %vm8325_vm2, %v8174_v5  ;;  %v8140_v15 = vadd.f32 %v18897_v13, %v8097_v17  ;;  %v15980_v32 = vadd.f32 %v8013_v62, %v18617_v25  ;;  %15536 = vmatprep.mubr.msk.f32.mxu1 %vm8325_vm2, %v19136_v18  ;;  %v19216_v31 = vld [vmem:[#allocation2 + $0x80] sm:$0xff]  ;;  %v19224_v10 = vld [vmem:[#allocation2 + $0x98] sm:$0xff]  ;;  %v19232_v5 = vld [vmem:[#allocation2 + $0xb0] sm:$0xff] }
 0x490   : > { %v8177_v23 = vmax.f32 %v8141_v34, 0.0  ;;  %v8100_v50 = vmul.f32 %v15979_v21, %v18891_v4  ;;  %v19236_v17 = vld [vmem:[#allocation2 + $0xc0] sm:$0xff]  ;;  %v19240_v9 = vld [vmem:[#allocation2 + $0xc8] sm:$0xff]  ;;  %v19244_v34 = vld [vmem:[#allocation2 + $0xd8] sm:$0xff] }
 0x491   : > { %v8176_v33 = vmax.f32 %v8140_v15, 0.0  ;;  %v8099_v22 = vmul.f32 %v15980_v32, %v18891_v4  ;;  %v19157_v1 = vld [vmem:[#allocation2 + $0x159] sm:$0xff]  ;;  %v19252_v62 = vld [vmem:[#allocation2 + $0xf0] sm:$0xff]  ;;  %v19260_v32 = vld [vmem:[#allocation2 + $0x108] sm:$0xff] }
 0x492   : > { %8414 = vst.msk [vmem:[#allocation2 + $0x189] sm:$0xff] %vm8325_vm2, %v8177_v23  ;;  %v8143_v36 = vadd.f32 %v18897_v13, %v8100_v50  ;;  %15537 = vmatmul.mubr.msk.f32.gmra.mrb[62].mxu1 %vm8325_vm2, %v19145_v24  ;;  %v19151_v38 = vld [vmem:[#allocation2 + $0x151] sm:$0xff]  ;;  %v19248_v21 = vld [vmem:[#allocation2 + $0xe0] sm:$0xff] }
 0x493   : > { %8413 = vst.msk [vmem:[#allocation2 + $0x181] sm:$0xff] %vm8325_vm2, %v8176_v33  ;;  %v8142_v25 = vadd.f32 %v18897_v13, %v8099_v22  ;;  %15539 = vmatprep.mubr.msk.f32.mxu1 %vm8325_vm2, %v19151_v38  ;;  %v19256_v15 = vld [vmem:[#allocation2 + $0xf8] sm:$0xff]  ;;  %v19264_v23 = vld [vmem:[#allocation2 + $0x110] sm:$0xff]  ;;  %v19268_v50 = vld [vmem:[#allocation2 + $0x120] sm:$0xff] }
 0x494   : > { %v8179_v37 = vmax.f32 %v8143_v36, 0.0  ;;  %v19272_v33 = vld [vmem:[#allocation2 + $0x128] sm:$0xff]  ;;  %v19276_v22 = vld [vmem:[#allocation2 + $0x138] sm:$0xff]  ;;  %v19280_v36 = vld [vmem:[#allocation2 + $0x140] sm:$0xff] }
 0x495   : > { %v8178_v4 = vmax.f32 %v8142_v25, 0.0  ;;  %v19167_v13 = vld [vmem:[#allocation2 + $0x171] sm:$0xff] }
 0x496   : > { %v8324_v40 = vmul.f32 0.0, %v8179_v37  ;;  %15540 = vmatmul.mubr.msk.f32.gmra.mrb[64].mxu1 %vm8325_vm2, %v19157_v1  ;;  %v19161_v44 = vld [vmem:[#allocation2 + $0x169] sm:$0xff]  ;;  %20038 = vst [vmem:[#allocation4_spill] sm:$0xff] %v19167_v13  ;;  %v19288_v37 = vld [vmem:[#allocation2 + $0x158] sm:$0xff] }
 0x497   : > { %20037 = vst [vmem:[#allocation3_spill] sm:$0xff] %v19161_v44  ;;  %v8323_v7 = vmul.f32 0.0, %v8178_v4  ;;  %15542 = vmatprep.mubr.msk.f32.mxu1 %vm8325_vm2, %v19161_v44  ;;  %v19284_v25 = vld [vmem:[#allocation2 + $0x150] sm:$0xff]  ;;  %v19292_v4 = vld [vmem:[#allocation2 + $0x168] sm:$0xff] }
 0x498   : > { %8416 = vst.msk [vmem:[#allocation2 + $0x1a1] sm:$0xff] %vm8325_vm2, %v8324_v40  ;;  %v19296_v40 = vld [vmem:[#allocation2 + $0x170] sm:$0xff]  ;;  %v19313_v44 = vld [vmem:[#allocation2 + $0x22] sm:$0xff] }
 0x499   : > { %8415 = vst.msk [vmem:[#allocation2 + $0x199] sm:$0xff] %vm8325_vm2, %v8323_v7  ;;  %v9126_v7 = vld [vmem:[#allocation2 + $0x2] sm:$0xff]  ;;  %20040 = vst [vmem:[#allocation6_spill] sm:$0xff] %v19313_v44 }
 0x49a   : > { %15543 = vmatmul.mubr.msk.f32.gmra.mrb[66].mxu1 %vm8325_vm2, %v19167_v13  ;;  %v19307_v13 = vld [vmem:[#allocation2 + $0x1a] sm:$0xff] }
 0x49b   : > { %15547 = vmatprep.mubr.msk.f32.mxu1 %vm8325_vm2, %v8417_v54  ;;  %v9127_v54 = vld [vmem:[#allocation2 + $0xa] sm:$0xff]  ;;  %20039 = vst [vmem:[#allocation5_spill] sm:$0xff] %v19307_v13 }
 0x49e   : > { %15548 = vmatmul.mubr.msk.f32.vlgmr.msra.gmra.mrb[36].mxu1 %vm8325_vm2, %v8418_v28  ;;  %v19304_v28 = vld [vmem:[%s19978_s6 + $0x20] sm:$0xff] }
 0x49f   : > { %15596 = vmatpush3.msra.mxu1 %v18936_v27  ;;  %15550 = vmatprep.mubr.msk.f32.mxu1 %vm8325_vm2, %v19178_v52  ;;  %v19196_v27 = vld [vmem:[#allocation2 + $0x48] sm:$0xff] }
 0x4a0   : > { %15645 = vmatprep.subr.mxu1 %v19175_v48 }
 0x4a2   : > { %15551 = vmatmul.mubr.msk.f32.gmra.mrb[38].mxu1 %vm8325_vm2, %v19184_v41 }
 0x4a3   : > { %15553 = vmatprep.mubr.msk.f32.mxu1 %vm8325_vm2, %v19188_v14 }
 0x4a6   : > { %15554 = vmatmul.mubr.msk.f32.gmra.mrb[40].mxu1 %vm8325_vm2, %v19192_v6 }
 0x4a7   : > { %15556 = vmatprep.mubr.msk.f32.mxu1 %vm8325_vm2, %v19196_v27 }
 0x4aa   : > { %15557 = vmatmul.mubr.msk.f32.gmra.mrb[42].mxu1 %vm8325_vm2, %v19200_v16 }
 0x4ab   : > { %15559 = vmatprep.mubr.msk.f32.mxu1 %vm8325_vm2, %v19204_v56 }
 0x4ae   : > { %15560 = vmatmul.mubr.msk.f32.gmra.mrb[44].mxu1 %vm8325_vm2, %v19208_v57 }
 0x4af   : > { %15562 = vmatprep.mubr.msk.f32.mxu1 %vm8325_vm2, %v19212_v58 }
 0x4b2   : > { %15563 = vmatmul.mubr.msk.f32.gmra.mrb[46].mxu1 %vm8325_vm2, %v19216_v31 }
 0x4b3   : > { %15565 = vmatprep.mubr.msk.f32.mxu1 %vm8325_vm2, %v19220_v61 }
 0x4b6   : > { %15566 = vmatmul.mubr.msk.f32.gmra.mrb[48].mxu1 %vm8325_vm2, %v19224_v10 }
 0x4b7   : > { %15568 = vmatprep.mubr.msk.f32.mxu1 %vm8325_vm2, %v19228_v46 }
 0x4ba   : > { %15569 = vmatmul.mubr.msk.f32.gmra.mrb[50].mxu1 %vm8325_vm2, %v19232_v5 }
 0x4bb   : > { %15571 = vmatprep.mubr.msk.f32.mxu1 %vm8325_vm2, %v19236_v17 }
 0x4be   : > { %15572 = vmatmul.mubr.msk.f32.gmra.mrb[52].mxu1 %vm8325_vm2, %v19240_v9 }
 0x4bf   : > { %15574 = vmatprep.mubr.msk.f32.mxu1 %vm8325_vm2, %v19244_v34 }
 0x4c2   : > { %15575 = vmatmul.mubr.msk.f32.gmra.mrb[54].mxu1 %vm8325_vm2, %v19248_v21 }
 0x4c3   : > { %15577 = vmatprep.mubr.msk.f32.mxu1 %vm8325_vm2, %v19252_v62 }
 0x4c6   : > { %15578 = vmatmul.mubr.msk.f32.gmra.mrb[56].mxu1 %vm8325_vm2, %v19256_v15 }
 0x4c7   : > { %15580 = vmatprep.mubr.msk.f32.mxu1 %vm8325_vm2, %v19260_v32 }
 0x4ca   : > { %15581 = vmatmul.mubr.msk.f32.gmra.mrb[58].mxu1 %vm8325_vm2, %v19264_v23 }
 0x4cb   : > { %15583 = vmatprep.mubr.msk.f32.mxu1 %vm8325_vm2, %v19268_v50 }
 0x4ce   : > { %15584 = vmatmul.mubr.msk.f32.gmra.mrb[60].mxu1 %vm8325_vm2, %v19272_v33 }
 0x4cf   : > { %15586 = vmatprep.mubr.msk.f32.mxu1 %vm8325_vm2, %v19276_v22 }
 0x4d2   : > { %15587 = vmatmul.mubr.msk.f32.gmra.mrb[62].mxu1 %vm8325_vm2, %v19280_v36 }
 0x4d3   : > { %15589 = vmatprep.mubr.msk.f32.mxu1 %vm8325_vm2, %v19284_v25 }
 0x4d6   : > { %15590 = vmatmul.mubr.msk.f32.gmra.mrb[64].mxu1 %vm8325_vm2, %v19288_v37 }
 0x4d7   : > { %15592 = vmatprep.mubr.msk.f32.mxu1 %vm8325_vm2, %v19292_v4 }
 0x4da   : > { %15593 = vmatmul.mubr.msk.f32.gmra.mrb[66].mxu1 %vm8325_vm2, %v19296_v40 }
 0x4db   : > { %15597 = vmatprep.mubr.msk.f32.mxu1 %vm8325_vm2, %v9126_v7  ;;  %v19317_v7 = vld [vmem:[#allocation2 + $0x32] sm:$0xff] }
 0x4dc   : > { %20041 = vst [vmem:[#allocation7_spill] sm:$0xff] %v19317_v7 }
 0x4de   : > { %15598 = vmatmul.mubr.msk.f32.vlgmr.msra.gmra.mrb[36].mxu1 %vm8325_vm2, %v9127_v54  ;;  %v19321_v54 = vld [vmem:[#allocation2 + $0x3a] sm:$0xff] }
 0x4df   : > { %15646 = vmatpush3.msra.mxu1 %v19175_v48  ;;  %15600 = vmatprep.mubr.msk.f32.mxu1 %vm8325_vm2, %v19307_v13  ;;  %20042 = vst [vmem:[#allocation8_spill] sm:$0xff] %v19321_v54  ;;  %v19325_v48 = vld [vmem:[#allocation2 + $0x4a] sm:$0xff]  ;;  %v19329_v13 = vld [vmem:[#allocation2 + $0x52] sm:$0xff] }
 0x4e0   : > { %15695 = vmatprep.subr.mxu1 %v19304_v28  ;;  %20043 = vst [vmem:[#allocation9_spill] sm:$0xff] %v19325_v48  ;;  %20044 = vst [vmem:[#allocation10_spill] sm:$0xff] %v19329_v13 }
 0x4e2   : > { %15601 = vmatmul.mubr.msk.f32.gmra.mrb[38].mxu1 %vm8325_vm2, %v19313_v44  ;;  %v19333_v44 = vld [vmem:[#allocation2 + $0x62] sm:$0xff] }
 0x4e3   : > { %15603 = vmatprep.mubr.msk.f32.mxu1 %vm8325_vm2, %v19317_v7  ;;  %20045 = vst [vmem:[#allocation11_spill] sm:$0xff] %v19333_v44  ;;  %v19337_v7 = vld [vmem:[#allocation2 + $0x6a] sm:$0xff] }
 0x4e4   : > { %20046 = vst [vmem:[#allocation12_spill] sm:$0xff] %v19337_v7 }
 0x4e6   : > { %15604 = vmatmul.mubr.msk.f32.gmra.mrb[40].mxu1 %vm8325_vm2, %v19321_v54  ;;  %v19341_v54 = vld [vmem:[#allocation2 + $0x7a] sm:$0xff] }
 0x4e7   : > { %15606 = vmatprep.mubr.msk.f32.mxu1 %vm8325_vm2, %v19325_v48  ;;  %20047 = vst [vmem:[#allocation13_spill] sm:$0xff] %v19341_v54  ;;  %v19345_v48 = vld [vmem:[#allocation2 + $0x82] sm:$0xff] }
 0x4e8   : > { %20048 = vst [vmem:[#allocation14_spill] sm:$0xff] %v19345_v48 }
 0x4ea   : > { %15607 = vmatmul.mubr.msk.f32.gmra.mrb[42].mxu1 %vm8325_vm2, %v19329_v13  ;;  %v19349_v13 = vld [vmem:[#allocation2 + $0x92] sm:$0xff] }
 0x4eb   : > { %15609 = vmatprep.mubr.msk.f32.mxu1 %vm8325_vm2, %v19333_v44  ;;  %20049 = vst [vmem:[#allocation15_spill] sm:$0xff] %v19349_v13  ;;  %v19353_v44 = vld [vmem:[#allocation2 + $0x9a] sm:$0xff] }
 0x4ec   : > { %20050 = vst [vmem:[#allocation16_spill] sm:$0xff] %v19353_v44 }
 0x4ee   : > { %15610 = vmatmul.mubr.msk.f32.gmra.mrb[44].mxu1 %vm8325_vm2, %v19337_v7  ;;  %v19357_v7 = vld [vmem:[#allocation2 + $0xaa] sm:$0xff] }
 0x4ef   : > { %15612 = vmatprep.mubr.msk.f32.mxu1 %vm8325_vm2, %v19341_v54  ;;  %20051 = vst [vmem:[#allocation17_spill] sm:$0xff] %v19357_v7  ;;  %v19361_v54 = vld [vmem:[#allocation2 + $0xb2] sm:$0xff] }
 0x4f0   : > { %20052 = vst [vmem:[#allocation18_spill] sm:$0xff] %v19361_v54 }
 0x4f2   : > { %15613 = vmatmul.mubr.msk.f32.gmra.mrb[46].mxu1 %vm8325_vm2, %v19345_v48  ;;  %v19365_v48 = vld [vmem:[#allocation2 + $0xc2] sm:$0xff] }
 0x4f3   : > { %15615 = vmatprep.mubr.msk.f32.mxu1 %vm8325_vm2, %v19349_v13  ;;  %20053 = vst [vmem:[#allocation19_spill] sm:$0xff] %v19365_v48  ;;  %v19369_v13 = vld [vmem:[#allocation2 + $0xca] sm:$0xff] }
 0x4f4   : > { %20054 = vst [vmem:[#allocation20_spill] sm:$0xff] %v19369_v13 }
 0x4f6   : > { %15616 = vmatmul.mubr.msk.f32.gmra.mrb[48].mxu1 %vm8325_vm2, %v19353_v44  ;;  %v19373_v44 = vld [vmem:[#allocation2 + $0xda] sm:$0xff] }
 0x4f7   : > { %15618 = vmatprep.mubr.msk.f32.mxu1 %vm8325_vm2, %v19357_v7  ;;  %20055 = vst [vmem:[#allocation21_spill] sm:$0xff] %v19373_v44  ;;  %v19377_v7 = vld [vmem:[#allocation2 + $0xe2] sm:$0xff] }
 0x4f8   : > { %20056 = vst [vmem:[#allocation22_spill] sm:$0xff] %v19377_v7 }
 0x4fa   : > { %15619 = vmatmul.mubr.msk.f32.gmra.mrb[50].mxu1 %vm8325_vm2, %v19361_v54  ;;  %v19381_v54 = vld [vmem:[#allocation2 + $0xf2] sm:$0xff] }
 0x4fb   : > { %15621 = vmatprep.mubr.msk.f32.mxu1 %vm8325_vm2, %v19365_v48  ;;  %20057 = vst [vmem:[#allocation23_spill] sm:$0xff] %v19381_v54  ;;  %v19385_v48 = vld [vmem:[#allocation2 + $0xfa] sm:$0xff] }
 0x4fc   : > { %20058 = vst [vmem:[#allocation24_spill] sm:$0xff] %v19385_v48 }
 0x4fe   : > { %15622 = vmatmul.mubr.msk.f32.gmra.mrb[52].mxu1 %vm8325_vm2, %v19369_v13  ;;  %v19389_v13 = vld [vmem:[#allocation2 + $0x10a] sm:$0xff] }
 0x4ff   : > { %15624 = vmatprep.mubr.msk.f32.mxu1 %vm8325_vm2, %v19373_v44  ;;  %20059 = vst [vmem:[#allocation25_spill] sm:$0xff] %v19389_v13  ;;  %v19393_v44 = vld [vmem:[#allocation2 + $0x112] sm:$0xff] }
 0x500   : > { %20060 = vst [vmem:[#allocation26_spill] sm:$0xff] %v19393_v44 }
 0x502   : > { %15625 = vmatmul.mubr.msk.f32.gmra.mrb[54].mxu1 %vm8325_vm2, %v19377_v7  ;;  %v19397_v7 = vld [vmem:[#allocation2 + $0x122] sm:$0xff] }
 0x503   : > { %15627 = vmatprep.mubr.msk.f32.mxu1 %vm8325_vm2, %v19381_v54  ;;  %20061 = vst [vmem:[#allocation27_spill] sm:$0xff] %v19397_v7  ;;  %v19401_v54 = vld [vmem:[#allocation2 + $0x12a] sm:$0xff] }
 0x504   : > { %20062 = vst [vmem:[#allocation28_spill] sm:$0xff] %v19401_v54 }
 0x506   : > { %15628 = vmatmul.mubr.msk.f32.gmra.mrb[56].mxu1 %vm8325_vm2, %v19385_v48  ;;  %v19405_v48 = vld [vmem:[#allocation2 + $0x13a] sm:$0xff] }
 0x507   : > { %15630 = vmatprep.mubr.msk.f32.mxu1 %vm8325_vm2, %v19389_v13  ;;  %20063 = vst [vmem:[#allocation29_spill] sm:$0xff] %v19405_v48  ;;  %v19409_v13 = vld [vmem:[#allocation2 + $0x142] sm:$0xff] }
 0x50a   : > { %15631 = vmatmul.mubr.msk.f32.gmra.mrb[58].mxu1 %vm8325_vm2, %v19393_v44  ;;  %v19413_v44 = vld [vmem:[#allocation2 + $0x152] sm:$0xff] }
 0x50b   : > { %15633 = vmatprep.mubr.msk.f32.mxu1 %vm8325_vm2, %v19397_v7  ;;  %20064 = vst [vmem:[#allocation30_spill] sm:$0xff] %v19413_v44  ;;  %v19417_v7 = vld [vmem:[#allocation2 + $0x15a] sm:$0xff] }
 0x50e   : > { %15634 = vmatmul.mubr.msk.f32.gmra.mrb[60].mxu1 %vm8325_vm2, %v19401_v54  ;;  %v19421_v54 = vld [vmem:[#allocation2 + $0x16a] sm:$0xff] }
 0x50f   : > { %15636 = vmatprep.mubr.msk.f32.mxu1 %vm8325_vm2, %v19405_v48  ;;  %20065 = vst [vmem:[#allocation31_spill] sm:$0xff] %v19421_v54  ;;  %v19425_v48 = vld [vmem:[#allocation2 + $0x172] sm:$0xff] }
 0x512   : > { %15637 = vmatmul.mubr.msk.f32.gmra.mrb[62].mxu1 %vm8325_vm2, %v19409_v13 }
 0x513   : > { %15639 = vmatprep.mubr.msk.f32.mxu1 %vm8325_vm2, %v19413_v44  ;;  %v13387_v44 = vld [vmem:[%s19978_s6 + $0x28] sm:$0xff] }
 0x516   : > { %15640 = vmatmul.mubr.msk.f32.gmra.mrb[64].mxu1 %vm8325_vm2, %v19417_v7 }
 0x517   : > { %15642 = vmatprep.mubr.msk.f32.mxu1 %vm8325_vm2, %v19421_v54 }
 0x51a   : > { %15643 = vmatmul.mubr.msk.f32.gmra.mrb[66].mxu1 %vm8325_vm2, %v19425_v48 }
 0x51b   : > { %15647 = vmatprep.mubr.msk.f32.mxu1 %vm8325_vm2, %v19178_v52  ;;  %v19493_v52 = vld [vmem:[#allocation2 + $0x180] sm:$0xff] }
 0x51e   : > { %15648 = vmatmul.mubr.msk.f32.vlgmr.msra.gmra.mrb[36].mxu1 %vm8325_vm2, %v19184_v41  ;;  %v19497_v41 = vld [vmem:[#allocation2 + $0x188] sm:$0xff] }
 0x51f   : > { %15696 = vmatpush3.msra.mxu1 %v19304_v28  ;;  %15650 = vmatprep.mubr.msk.f32.mxu1 %vm8325_vm2, %v19188_v14  ;;  %v13420_v28 = vld [vmem:[%s19978_s6 + $0x30] sm:$0xff] }
 0x520   : > { %15745 = vmatprep.subr.mxu1 %v13387_v44 }
 0x522   : > { %15651 = vmatmul.mubr.msk.f32.gmra.mrb[38].mxu1 %vm8325_vm2, %v19192_v6 }
 0x523   : > { %15653 = vmatprep.mubr.msk.f32.mxu1 %vm8325_vm2, %v19196_v27 }
 0x526   : > { %15654 = vmatmul.mubr.msk.f32.gmra.mrb[40].mxu1 %vm8325_vm2, %v19200_v16 }
 0x527   : > { %15656 = vmatprep.mubr.msk.f32.mxu1 %vm8325_vm2, %v19204_v56 }
 0x52a   : > { %15657 = vmatmul.mubr.msk.f32.gmra.mrb[42].mxu1 %vm8325_vm2, %v19208_v57 }
 0x52b   : > { %15659 = vmatprep.mubr.msk.f32.mxu1 %vm8325_vm2, %v19212_v58 }
 0x52e   : > { %15660 = vmatmul.mubr.msk.f32.gmra.mrb[44].mxu1 %vm8325_vm2, %v19216_v31 }
 0x52f   : > { %15662 = vmatprep.mubr.msk.f32.mxu1 %vm8325_vm2, %v19220_v61 }
 0x532   : > { %15663 = vmatmul.mubr.msk.f32.gmra.mrb[46].mxu1 %vm8325_vm2, %v19224_v10 }
 0x533   : > { %15665 = vmatprep.mubr.msk.f32.mxu1 %vm8325_vm2, %v19228_v46 }
 0x536   : > { %15666 = vmatmul.mubr.msk.f32.gmra.mrb[48].mxu1 %vm8325_vm2, %v19232_v5 }
 0x537   : > { %15668 = vmatprep.mubr.msk.f32.mxu1 %vm8325_vm2, %v19236_v17 }
 0x53a   : > { %15669 = vmatmul.mubr.msk.f32.gmra.mrb[50].mxu1 %vm8325_vm2, %v19240_v9 }
 0x53b   : > { %15671 = vmatprep.mubr.msk.f32.mxu1 %vm8325_vm2, %v19244_v34 }
 0x53e   : > { %15672 = vmatmul.mubr.msk.f32.gmra.mrb[52].mxu1 %vm8325_vm2, %v19248_v21 }
 0x53f   : > { %15674 = vmatprep.mubr.msk.f32.mxu1 %vm8325_vm2, %v19252_v62 }
 0x542   : > { %15675 = vmatmul.mubr.msk.f32.gmra.mrb[54].mxu1 %vm8325_vm2, %v19256_v15 }
 0x543   : > { %15677 = vmatprep.mubr.msk.f32.mxu1 %vm8325_vm2, %v19260_v32 }
 0x546   : > { %15678 = vmatmul.mubr.msk.f32.gmra.mrb[56].mxu1 %vm8325_vm2, %v19264_v23 }
 0x547   : > { %15680 = vmatprep.mubr.msk.f32.mxu1 %vm8325_vm2, %v19268_v50 }
 0x54a   : > { %15681 = vmatmul.mubr.msk.f32.gmra.mrb[58].mxu1 %vm8325_vm2, %v19272_v33 }
 0x54b   : > { %15683 = vmatprep.mubr.msk.f32.mxu1 %vm8325_vm2, %v19276_v22 }
 0x54e   : > { %15684 = vmatmul.mubr.msk.f32.gmra.mrb[60].mxu1 %vm8325_vm2, %v19280_v36 }
 0x54f   : > { %15686 = vmatprep.mubr.msk.f32.mxu1 %vm8325_vm2, %v19284_v25 }
 0x552   : > { %15687 = vmatmul.mubr.msk.f32.gmra.mrb[62].mxu1 %vm8325_vm2, %v19288_v37 }
 0x553   : > { %15689 = vmatprep.mubr.msk.f32.mxu1 %vm8325_vm2, %v19292_v4 }
 0x556   : > { %15690 = vmatmul.mubr.msk.f32.gmra.mrb[64].mxu1 %vm8325_vm2, %v19296_v40 }
 0x557   : > { %15692 = vmatprep.mubr.msk.f32.mxu1 %vm8325_vm2, %v19493_v52 }
 0x55a   : > { %15693 = vmatmul.mubr.msk.f32.gmra.mrb[66].mxu1 %vm8325_vm2, %v19497_v41 }
 0x55b   : > { %15697 = vmatprep.mubr.msk.f32.mxu1 %vm8325_vm2, %v18942_v49  ;;  %v20066_v49 = vld [vmem:[#allocation3_spill] sm:$0xff] }
 0x55e   : > { %15698 = vmatmul.mubr.msk.f32.vlgmr.msra.gmra.mrb[36].mxu1 %vm8325_vm2, %v18953_v60  ;;  %v20067_v60 = vld [vmem:[#allocation4_spill] sm:$0xff] }
 0x55f   : > { %15746 = vmatpush3.msra.mxu1 %v13387_v44  ;;  %15700 = vmatprep.mubr.msk.f32.mxu1 %vm8325_vm2, %v18960_v19  ;;  %v19564_v19 = vld [vmem:[#allocation2 + $0x181] sm:$0xff]  ;;  %v20078_v44 = vld [vmem:[#allocation15_spill] sm:$0xff] }
 0x560   : > { %15795 = vmatprep.subr.mxu1 %v13420_v28 }
 0x562   : > { %15701 = vmatmul.mubr.msk.f32.gmra.mrb[38].mxu1 %vm8325_vm2, %v18969_v26  ;;  %v19568_v26 = vld [vmem:[#allocation2 + $0x189] sm:$0xff] }
 0x563   : > { %15703 = vmatprep.mubr.msk.f32.mxu1 %vm8325_vm2, %v18976_v35  ;;  %v20068_v35 = vld [vmem:[#allocation5_spill] sm:$0xff] }
 0x566   : > { %15704 = vmatmul.mubr.msk.f32.gmra.mrb[40].mxu1 %vm8325_vm2, %v18985_v42  ;;  %v13453_v42 = vld [vmem:[%s19978_s6 + $0x38] sm:$0xff] }
 0x567   : > { %15706 = vmatprep.mubr.msk.f32.mxu1 %vm8325_vm2, %v18992_v39  ;;  %v20069_v39 = vld [vmem:[#allocation6_spill] sm:$0xff] }
 0x56a   : > { %15707 = vmatmul.mubr.msk.f32.gmra.mrb[42].mxu1 %vm8325_vm2, %v19001_v53  ;;  %v20070_v53 = vld [vmem:[#allocation7_spill] sm:$0xff] }
 0x56b   : > { %15709 = vmatprep.mubr.msk.f32.mxu1 %vm8325_vm2, %v19008_v43  ;;  %v20071_v43 = vld [vmem:[#allocation8_spill] sm:$0xff] }
 0x56e   : > { %15710 = vmatmul.mubr.msk.f32.gmra.mrb[44].mxu1 %vm8325_vm2, %v19017_v20  ;;  %v20072_v20 = vld [vmem:[#allocation9_spill] sm:$0xff] }
 0x56f   : > { %15712 = vmatprep.mubr.msk.f32.mxu1 %vm8325_vm2, %v19024_v47  ;;  %v20073_v47 = vld [vmem:[#allocation10_spill] sm:$0xff] }
 0x572   : > { %15713 = vmatmul.mubr.msk.f32.gmra.mrb[46].mxu1 %vm8325_vm2, %v19033_v11  ;;  %v20074_v11 = vld [vmem:[#allocation11_spill] sm:$0xff] }
 0x573   : > { %15715 = vmatprep.mubr.msk.f32.mxu1 %vm8325_vm2, %v19040_v51  ;;  %v20075_v51 = vld [vmem:[#allocation12_spill] sm:$0xff] }
 0x576   : > { %15716 = vmatmul.mubr.msk.f32.gmra.mrb[48].mxu1 %vm8325_vm2, %v19049_v45  ;;  %v20076_v45 = vld [vmem:[#allocation13_spill] sm:$0xff] }
 0x577   : > { %15718 = vmatprep.mubr.msk.f32.mxu1 %vm8325_vm2, %v19056_v55  ;;  %v20077_v55 = vld [vmem:[#allocation14_spill] sm:$0xff] }
 0x57a   : > { %15719 = vmatmul.mubr.msk.f32.gmra.mrb[50].mxu1 %vm8325_vm2, %v19065_v0 }
 0x57b   : > { %15721 = vmatprep.mubr.msk.f32.mxu1 %vm8325_vm2, %v19072_v59 }
 0x57e   : > { %15722 = vmatmul.mubr.msk.f32.gmra.mrb[52].mxu1 %vm8325_vm2, %v19081_v29 }
 0x57f   : > { %15724 = vmatprep.mubr.msk.f32.mxu1 %vm8325_vm2, %v19088_v63 }
 0x582   : > { %15725 = vmatmul.mubr.msk.f32.gmra.mrb[54].mxu1 %vm8325_vm2, %v19097_v12 }
 0x583   : > { %15727 = vmatprep.mubr.msk.f32.mxu1 %vm8325_vm2, %v19104_v3 }
 0x586   : > { %15728 = vmatmul.mubr.msk.f32.gmra.mrb[56].mxu1 %vm8325_vm2, %v19113_v30 }
 0x587   : > { %15730 = vmatprep.mubr.msk.f32.mxu1 %vm8325_vm2, %v19120_v8 }
 0x58a   : > { %15731 = vmatmul.mubr.msk.f32.gmra.mrb[58].mxu1 %vm8325_vm2, %v19129_v2 }
 0x58b   : > { %15733 = vmatprep.mubr.msk.f32.mxu1 %vm8325_vm2, %v19136_v18 }
 0x58e   : > { %15734 = vmatmul.mubr.msk.f32.gmra.mrb[60].mxu1 %vm8325_vm2, %v19145_v24 }
 0x58f   : > { %15736 = vmatprep.mubr.msk.f32.mxu1 %vm8325_vm2, %v19151_v38 }
 0x592   : > { %15737 = vmatmul.mubr.msk.f32.gmra.mrb[62].mxu1 %vm8325_vm2, %v19157_v1 }
 0x593   : > { %15739 = vmatprep.mubr.msk.f32.mxu1 %vm8325_vm2, %v20066_v49 }
 0x596   : > { %15740 = vmatmul.mubr.msk.f32.gmra.mrb[64].mxu1 %vm8325_vm2, %v20067_v60 }
 0x597   : > { %15742 = vmatprep.mubr.msk.f32.mxu1 %vm8325_vm2, %v19564_v19 }
 0x59a   : > { %15743 = vmatmul.mubr.msk.f32.gmra.mrb[66].mxu1 %vm8325_vm2, %v19568_v26 }
 0x59b   : > { %15747 = vmatprep.mubr.msk.f32.mxu1 %vm8325_vm2, %v20068_v35  ;;  %v20080_v35 = vld [vmem:[#allocation17_spill] sm:$0xff] }
 0x59e   : > { %15748 = vmatmul.mubr.msk.f32.vlgmr.msra.gmra.mrb[36].mxu1 %vm8325_vm2, %v20069_v39  ;;  %v20081_v39 = vld [vmem:[#allocation18_spill] sm:$0xff] }
 0x59f   : > { %15796 = vmatpush3.msra.mxu1 %v13420_v28  ;;  %15750 = vmatprep.mubr.msk.f32.mxu1 %vm8325_vm2, %v20070_v53  ;;  %v20079_v28 = vld [vmem:[#allocation16_spill] sm:$0xff] }
 0x5a0   : > { %15845 = vmatprep.subr.mxu1 %v13453_v42 }
 0x5a2   : > { %15751 = vmatmul.mubr.msk.f32.gmra.mrb[38].mxu1 %vm8325_vm2, %v20071_v43 }
 0x5a3   : > { %15753 = vmatprep.mubr.msk.f32.mxu1 %vm8325_vm2, %v20072_v20 }
 0x5a6   : > { %15754 = vmatmul.mubr.msk.f32.gmra.mrb[40].mxu1 %vm8325_vm2, %v20073_v47 }
 0x5a7   : > { %15756 = vmatprep.mubr.msk.f32.mxu1 %vm8325_vm2, %v20074_v11  ;;  %v20082_v11 = vld [vmem:[#allocation19_spill] sm:$0xff] }
 0x5aa   : > { %15757 = vmatmul.mubr.msk.f32.gmra.mrb[42].mxu1 %vm8325_vm2, %v20075_v51  ;;  %v20083_v51 = vld [vmem:[#allocation20_spill] sm:$0xff] }
 0x5ab   : > { %15759 = vmatprep.mubr.msk.f32.mxu1 %vm8325_vm2, %v20076_v45  ;;  %v20084_v45 = vld [vmem:[#allocation21_spill] sm:$0xff] }
 0x5ae   : > { %15760 = vmatmul.mubr.msk.f32.gmra.mrb[44].mxu1 %vm8325_vm2, %v20077_v55  ;;  %v20085_v55 = vld [vmem:[#allocation22_spill] sm:$0xff] }
 0x5af   : > { %15762 = vmatprep.mubr.msk.f32.mxu1 %vm8325_vm2, %v20078_v44  ;;  %v20086_v44 = vld [vmem:[#allocation23_spill] sm:$0xff] }
 0x5b2   : > { %15763 = vmatmul.mubr.msk.f32.gmra.mrb[46].mxu1 %vm8325_vm2, %v20079_v28  ;;  %v20087_v28 = vld [vmem:[#allocation24_spill] sm:$0xff] }
 0x5b3   : > { %15765 = vmatprep.mubr.msk.f32.mxu1 %vm8325_vm2, %v20080_v35  ;;  %v20088_v35 = vld [vmem:[#allocation25_spill] sm:$0xff] }
 0x5b6   : > { %15766 = vmatmul.mubr.msk.f32.gmra.mrb[48].mxu1 %vm8325_vm2, %v20081_v39  ;;  %v20089_v39 = vld [vmem:[#allocation26_spill] sm:$0xff] }
 0x5b7   : > { %15768 = vmatprep.mubr.msk.f32.mxu1 %vm8325_vm2, %v20082_v11  ;;  %v20090_v11 = vld [vmem:[#allocation27_spill] sm:$0xff] }
 0x5ba   : > { %15769 = vmatmul.mubr.msk.f32.gmra.mrb[50].mxu1 %vm8325_vm2, %v20083_v51  ;;  %v20091_v51 = vld [vmem:[#allocation28_spill] sm:$0xff] }
 0x5bb   : > { %15771 = vmatprep.mubr.msk.f32.mxu1 %vm8325_vm2, %v20084_v45  ;;  %v20092_v45 = vld [vmem:[#allocation29_spill] sm:$0xff] }
 0x5be   : > { %15772 = vmatmul.mubr.msk.f32.gmra.mrb[52].mxu1 %vm8325_vm2, %v20085_v55 }
 0x5bf   : > { %15774 = vmatprep.mubr.msk.f32.mxu1 %vm8325_vm2, %v20086_v44  ;;  %v20093_v44 = vld [vmem:[#allocation30_spill] sm:$0xff] }
 0x5c2   : > { %15775 = vmatmul.mubr.msk.f32.gmra.mrb[54].mxu1 %vm8325_vm2, %v20087_v28 }
 0x5c3   : > { %15777 = vmatprep.mubr.msk.f32.mxu1 %vm8325_vm2, %v20088_v35 }
 0x5c6   : > { %15778 = vmatmul.mubr.msk.f32.gmra.mrb[56].mxu1 %vm8325_vm2, %v20089_v39 }
 0x5c7   : > { %15780 = vmatprep.mubr.msk.f32.mxu1 %vm8325_vm2, %v20090_v11  ;;  %v19635_v11 = vld [vmem:[#allocation2 + $0x182] sm:$0xff] }
 0x5ca   : > { %15781 = vmatmul.mubr.msk.f32.gmra.mrb[58].mxu1 %vm8325_vm2, %v20091_v51 }
 0x5cb   : > { %15783 = vmatprep.mubr.msk.f32.mxu1 %vm8325_vm2, %v20092_v45  ;;  %v19639_v45 = vld [vmem:[#allocation2 + $0x18a] sm:$0xff] }
 0x5ce   : > { %15784 = vmatmul.mubr.msk.f32.gmra.mrb[60].mxu1 %vm8325_vm2, %v19409_v13 }
 0x5cf   : > { %15786 = vmatprep.mubr.msk.f32.mxu1 %vm8325_vm2, %v20093_v44 }
 0x5d2   : > { %15787 = vmatmul.mubr.msk.f32.gmra.mrb[62].mxu1 %vm8325_vm2, %v19417_v7 }
 0x5d3   : > { %15789 = vmatprep.mubr.msk.f32.mxu1 %vm8325_vm2, %v19421_v54  ;;  %v13486_v54 = vld [vmem:[%s19978_s6 + $0x40] sm:$0xff] }
 0x5d6   : > { %15790 = vmatmul.mubr.msk.f32.gmra.mrb[64].mxu1 %vm8325_vm2, %v19425_v48 }
 0x5d7   : > { %15792 = vmatprep.mubr.msk.f32.mxu1 %vm8325_vm2, %v19635_v11 }
 0x5da   : > { %15793 = vmatmul.mubr.msk.f32.gmra.mrb[66].mxu1 %vm8325_vm2, %v19639_v45 }
 0x5db   : > { %15797 = vmatprep.mubr.msk.f32.mxu1 %vm8325_vm2, %v19188_v14  ;;  %v10706_v14 = vld [vmem:[#allocation2 + $0x198] sm:$0xff] }
 0x5de   : > { %15798 = vmatmul.mubr.msk.f32.vlgmr.msra.gmra.mrb[36].mxu1 %vm8325_vm2, %v19192_v6  ;;  %v10707_v6 = vld [vmem:[#allocation2 + $0x1a0] sm:$0xff] }
 0x5df   : > { %15846 = vmatpush3.msra.mxu1 %v13453_v42  ;;  %15800 = vmatprep.mubr.msk.f32.mxu1 %vm8325_vm2, %v19196_v27  ;;  %v11063_v27 = vld [vmem:[#allocation2 + $0x31] sm:$0xff] }
 0x5e0   : > { %15895 = vmatprep.subr.mxu1 %v13486_v54 }
 0x5e2   : > { %15801 = vmatmul.mubr.msk.f32.gmra.mrb[38].mxu1 %vm8325_vm2, %v19200_v16  ;;  %v11064_v16 = vld [vmem:[#allocation2 + $0x39] sm:$0xff] }
 0x5e3   : > { %15803 = vmatprep.mubr.msk.f32.mxu1 %vm8325_vm2, %v19204_v56  ;;  %v11065_v56 = vld [vmem:[#allocation2 + $0x49] sm:$0xff] }
 0x5e6   : > { %15804 = vmatmul.mubr.msk.f32.gmra.mrb[40].mxu1 %vm8325_vm2, %v19208_v57  ;;  %v11066_v57 = vld [vmem:[#allocation2 + $0x51] sm:$0xff] }
 0x5e7   : > { %15806 = vmatprep.mubr.msk.f32.mxu1 %vm8325_vm2, %v19212_v58  ;;  %v11067_v58 = vld [vmem:[#allocation2 + $0x61] sm:$0xff] }
 0x5ea   : > { %15807 = vmatmul.mubr.msk.f32.gmra.mrb[42].mxu1 %vm8325_vm2, %v19216_v31  ;;  %v11068_v31 = vld [vmem:[#allocation2 + $0x69] sm:$0xff] }
 0x5eb   : > { %15809 = vmatprep.mubr.msk.f32.mxu1 %vm8325_vm2, %v19220_v61  ;;  %v11069_v61 = vld [vmem:[#allocation2 + $0x79] sm:$0xff] }
 0x5ee   : > { %15810 = vmatmul.mubr.msk.f32.gmra.mrb[44].mxu1 %vm8325_vm2, %v19224_v10  ;;  %v11070_v10 = vld [vmem:[#allocation2 + $0x81] sm:$0xff] }
 0x5ef   : > { %15812 = vmatprep.mubr.msk.f32.mxu1 %vm8325_vm2, %v19228_v46  ;;  %v11071_v46 = vld [vmem:[#allocation2 + $0x91] sm:$0xff] }
 0x5f2   : > { %15813 = vmatmul.mubr.msk.f32.gmra.mrb[46].mxu1 %vm8325_vm2, %v19232_v5  ;;  %v11072_v5 = vld [vmem:[#allocation2 + $0x99] sm:$0xff] }
 0x5f3   : > { %15815 = vmatprep.mubr.msk.f32.mxu1 %vm8325_vm2, %v19236_v17  ;;  %v11073_v17 = vld [vmem:[#allocation2 + $0xa9] sm:$0xff] }
 0x5f6   : > { %15816 = vmatmul.mubr.msk.f32.gmra.mrb[48].mxu1 %vm8325_vm2, %v19240_v9  ;;  %v11074_v9 = vld [vmem:[#allocation2 + $0xb1] sm:$0xff] }
 0x5f7   : > { %15818 = vmatprep.mubr.msk.f32.mxu1 %vm8325_vm2, %v19244_v34  ;;  %v11075_v34 = vld [vmem:[#allocation2 + $0xc1] sm:$0xff] }
 0x5fa   : > { %15819 = vmatmul.mubr.msk.f32.gmra.mrb[50].mxu1 %vm8325_vm2, %v19248_v21  ;;  %v20105_v21 = vld [vmem:[#allocation23_spill] sm:$0xff] }
 0x5fb   : > { %15821 = vmatprep.mubr.msk.f32.mxu1 %vm8325_vm2, %v19252_v62  ;;  %v20106_v62 = vld [vmem:[#allocation27_spill] sm:$0xff] }
 0x5fe   : > { %15822 = vmatmul.mubr.msk.f32.gmra.mrb[52].mxu1 %vm8325_vm2, %v19256_v15  ;;  %v20107_v15 = vld [vmem:[#allocation29_spill] sm:$0xff] }
 0x5ff   : > { %15824 = vmatprep.mubr.msk.f32.mxu1 %vm8325_vm2, %v19260_v32  ;;  %v20108_v32 = vld [vmem:[#allocation31_spill] sm:$0xff] }
 0x602   : > { %15825 = vmatmul.mubr.msk.f32.gmra.mrb[54].mxu1 %vm8325_vm2, %v19264_v23  ;;  %v11480_v23 = vld [vmem:[#allocation2 + $0x19a] sm:$0xff] }
 0x603   : > { %15827 = vmatprep.mubr.msk.f32.mxu1 %vm8325_vm2, %v19268_v50  ;;  %v19822_v50 = vld [vmem:[%s19979_s7] ss:$0 sm:$0xff] }
 0x606   : > { %15828 = vmatmul.mubr.msk.f32.gmra.mrb[56].mxu1 %vm8325_vm2, %v19272_v33 }
 0x607   : > { %15830 = vmatprep.mubr.msk.f32.mxu1 %vm8325_vm2, %v19276_v22  ;;  %v19827_v22 = vld [vmem:[%s19980_s8] ss:$0 sm:$0xff] }
 0x60a   : > { %15831 = vmatmul.mubr.msk.f32.gmra.mrb[58].mxu1 %vm8325_vm2, %v19280_v36 }
 0x60b   : > { %15833 = vmatprep.mubr.msk.f32.mxu1 %vm8325_vm2, %v19284_v25 }
 0x60e   : > { %15834 = vmatmul.mubr.msk.f32.gmra.mrb[60].mxu1 %vm8325_vm2, %v19288_v37 }
 0x60f   : > { %15836 = vmatprep.mubr.msk.f32.mxu1 %vm8325_vm2, %v19292_v4 }
 0x612   : > { %15837 = vmatmul.mubr.msk.f32.gmra.mrb[62].mxu1 %vm8325_vm2, %v19296_v40 }
 0x613   : > { %15839 = vmatprep.mubr.msk.f32.mxu1 %vm8325_vm2, %v19493_v52 }
 0x616   : > { %15840 = vmatmul.mubr.msk.f32.gmra.mrb[64].mxu1 %vm8325_vm2, %v19497_v41 }
 0x617   : > { %15842 = vmatprep.mubr.msk.f32.mxu1 %vm8325_vm2, %v10706_v14 }
 0x61a   : > { %15843 = vmatmul.mubr.msk.f32.gmra.mrb[66].mxu1 %vm8325_vm2, %v10707_v6 }
 0x61b   : > { %15847 = vmatprep.mubr.msk.f32.mxu1 %vm8325_vm2, %v11063_v27 }
 0x61e   : > { %15848 = vmatmul.mubr.msk.f32.vlgmr.msra.gmra.mrb[36].mxu1 %vm8325_vm2, %v11064_v16 }
 0x61f   : > { %15896 = vmatpush3.msra.mxu1 %v13486_v54  ;;  %15850 = vmatprep.mubr.msk.f32.mxu1 %vm8325_vm2, %v11065_v56 }
 0x622   : > { %15851 = vmatmul.mubr.msk.f32.gmra.mrb[38].mxu1 %vm8325_vm2, %v11066_v57 }
 0x623   : > { %15853 = vmatprep.mubr.msk.f32.mxu1 %vm8325_vm2, %v11067_v58 }
 0x626   : > { %15854 = vmatmul.mubr.msk.f32.gmra.mrb[40].mxu1 %vm8325_vm2, %v11068_v31 }
 0x627   : > { %15856 = vmatprep.mubr.msk.f32.mxu1 %vm8325_vm2, %v11069_v61 }
 0x62a   : > { %15857 = vmatmul.mubr.msk.f32.gmra.mrb[42].mxu1 %vm8325_vm2, %v11070_v10 }
 0x62b   : > { %15859 = vmatprep.mubr.msk.f32.mxu1 %vm8325_vm2, %v11071_v46 }
 0x62e   : > { %15860 = vmatmul.mubr.msk.f32.gmra.mrb[44].mxu1 %vm8325_vm2, %v11072_v5 }
 0x62f   : > { %15862 = vmatprep.mubr.msk.f32.mxu1 %vm8325_vm2, %v11073_v17 }
 0x632   : > { %15863 = vmatmul.mubr.msk.f32.gmra.mrb[46].mxu1 %vm8325_vm2, %v11074_v9 }
 0x633   : > { %15865 = vmatprep.mubr.msk.f32.mxu1 %vm8325_vm2, %v11075_v34 }
 0x636   : > { %15866 = vmatmul.mubr.msk.f32.gmra.mrb[48].mxu1 %vm8325_vm2, %v19065_v0  ;;  %v11093_v0 = vld [vmem:[#allocation2 + $0x199] sm:$0xff] }
 0x637   : > { %15868 = vmatprep.mubr.msk.f32.mxu1 %vm8325_vm2, %v19072_v59  ;;  %v11094_v59 = vld [vmem:[#allocation2 + $0x1a1] sm:$0xff] }
 0x63a   : > { %15869 = vmatmul.mubr.msk.f32.gmra.mrb[50].mxu1 %vm8325_vm2, %v19081_v29  ;;  %v20094_v29 = vld [vmem:[#allocation11_spill] sm:$0xff] }
 0x63b   : > { %15871 = vmatprep.mubr.msk.f32.mxu1 %vm8325_vm2, %v19088_v63  ;;  %v20095_v63 = vld [vmem:[#allocation12_spill] sm:$0xff] }
 0x63e   : > { %15872 = vmatmul.mubr.msk.f32.gmra.mrb[52].mxu1 %vm8325_vm2, %v19097_v12  ;;  %v20096_v12 = vld [vmem:[#allocation13_spill] sm:$0xff] }
 0x63f   : > { %15874 = vmatprep.mubr.msk.f32.mxu1 %vm8325_vm2, %v19104_v3  ;;  %v20097_v3 = vld [vmem:[#allocation14_spill] sm:$0xff] }
 0x642   : > { %15875 = vmatmul.mubr.msk.f32.gmra.mrb[54].mxu1 %vm8325_vm2, %v19113_v30  ;;  %v20098_v30 = vld [vmem:[#allocation15_spill] sm:$0xff] }
 0x643   : > { %15877 = vmatprep.mubr.msk.f32.mxu1 %vm8325_vm2, %v19120_v8  ;;  %v20099_v8 = vld [vmem:[#allocation16_spill] sm:$0xff] }
 0x646   : > { %15878 = vmatmul.mubr.msk.f32.gmra.mrb[56].mxu1 %vm8325_vm2, %v19129_v2  ;;  %v20100_v2 = vld [vmem:[#allocation17_spill] sm:$0xff] }
 0x647   : > { %15880 = vmatprep.mubr.msk.f32.mxu1 %vm8325_vm2, %v19136_v18  ;;  %v20101_v18 = vld [vmem:[#allocation18_spill] sm:$0xff] }
 0x64a   : > { %15881 = vmatmul.mubr.msk.f32.gmra.mrb[58].mxu1 %vm8325_vm2, %v19145_v24  ;;  %v20102_v24 = vld [vmem:[#allocation19_spill] sm:$0xff] }
 0x64b   : > { %15883 = vmatprep.mubr.msk.f32.mxu1 %vm8325_vm2, %v19151_v38  ;;  %v20103_v38 = vld [vmem:[#allocation20_spill] sm:$0xff] }
 0x64e   : > { %15884 = vmatmul.mubr.msk.f32.gmra.mrb[60].mxu1 %vm8325_vm2, %v19157_v1  ;;  %v20104_v1 = vld [vmem:[#allocation21_spill] sm:$0xff] }
 0x64f   : > { %15886 = vmatprep.mubr.msk.f32.mxu1 %vm8325_vm2, %v20066_v49 }
 0x652   : > { %15887 = vmatmul.mubr.msk.f32.gmra.mrb[62].mxu1 %vm8325_vm2, %v20067_v60 }
 0x653   : > { %15889 = vmatprep.mubr.msk.f32.mxu1 %vm8325_vm2, %v19564_v19 }
 0x656   : > { %15890 = vmatmul.mubr.msk.f32.gmra.mrb[64].mxu1 %vm8325_vm2, %v19568_v26 }
 0x657   : > { %15892 = vmatprep.mubr.msk.f32.mxu1 %vm8325_vm2, %v11093_v0 }
 0x65a   : > { %15893 = vmatmul.mubr.msk.f32.gmra.mrb[66].mxu1 %vm8325_vm2, %v11094_v59 }
 0x65b   : > { %15897 = vmatprep.mubr.msk.f32.mxu1 %vm8325_vm2, %v20070_v53 }
 0x65e   : > { %15898 = vmatmul.mubr.msk.f32.vlgmr.msra.gmra.mrb[36].mxu1 %vm8325_vm2, %v20071_v43 }
 0x65f   : > { %15900 = vmatprep.mubr.msk.f32.mxu1 %vm8325_vm2, %v20072_v20 }
 0x662   : > { %15901 = vmatmul.mubr.msk.f32.gmra.mrb[38].mxu1 %vm8325_vm2, %v20073_v47 }
 0x663   : > { %15903 = vmatprep.mubr.msk.f32.mxu1 %vm8325_vm2, %v20094_v29 }
 0x666   : > { %15904 = vmatmul.mubr.msk.f32.gmra.mrb[40].mxu1 %vm8325_vm2, %v20095_v63 }
 0x667   : > { %15906 = vmatprep.mubr.msk.f32.mxu1 %vm8325_vm2, %v20096_v12 }
 0x66a   : > { %15907 = vmatmul.mubr.msk.f32.gmra.mrb[42].mxu1 %vm8325_vm2, %v20097_v3 }
 0x66b   : > { %15909 = vmatprep.mubr.msk.f32.mxu1 %vm8325_vm2, %v20098_v30 }
 0x66e   : > { %15910 = vmatmul.mubr.msk.f32.gmra.mrb[44].mxu1 %vm8325_vm2, %v20099_v8 }
 0x66f   : > { %15912 = vmatprep.mubr.msk.f32.mxu1 %vm8325_vm2, %v20100_v2 }
 0x672   : > { %15913 = vmatmul.mubr.msk.f32.gmra.mrb[46].mxu1 %vm8325_vm2, %v20101_v18 }
 0x673   : > { %15915 = vmatprep.mubr.msk.f32.mxu1 %vm8325_vm2, %v20102_v24 }
 0x676   : > { %15916 = vmatmul.mubr.msk.f32.gmra.mrb[48].mxu1 %vm8325_vm2, %v20103_v38 }
 0x677   : > { %15918 = vmatprep.mubr.msk.f32.mxu1 %vm8325_vm2, %v20104_v1 }
 0x67a   : > { %15919 = vmatmul.mubr.msk.f32.gmra.mrb[50].mxu1 %vm8325_vm2, %v20085_v55 }
 0x67b   : > { %15921 = vmatprep.mubr.msk.f32.mxu1 %vm8325_vm2, %v20105_v21 }
 0x67e   : > { %15922 = vmatmul.mubr.msk.f32.gmra.mrb[52].mxu1 %vm8325_vm2, %v20087_v28 }
 0x67f   : > { %15924 = vmatprep.mubr.msk.f32.mxu1 %vm8325_vm2, %v20088_v35 }
 0x682   : > { %15925 = vmatmul.mubr.msk.f32.gmra.mrb[54].mxu1 %vm8325_vm2, %v20089_v39 }
 0x683   : > { %15927 = vmatprep.mubr.msk.f32.mxu1 %vm8325_vm2, %v20106_v62 }
 0x686   : > { %15928 = vmatmul.mubr.msk.f32.gmra.mrb[56].mxu1 %vm8325_vm2, %v20091_v51 }
 0x687   : > { %15930 = vmatprep.mubr.msk.f32.mxu1 %vm8325_vm2, %v20107_v15 }
 0x68a   : > { %15931 = vmatmul.mubr.msk.f32.gmra.mrb[58].mxu1 %vm8325_vm2, %v19409_v13  ;;  %v11481_v13 = vld [vmem:[#allocation2 + $0x1a2] sm:$0xff] }
 0x68b   : > { %15933 = vmatprep.mubr.msk.f32.mxu1 %vm8325_vm2, %v20093_v44 }
 0x68e   : > { %15934 = vmatmul.mubr.msk.f32.gmra.mrb[60].mxu1 %vm8325_vm2, %v19417_v7 }
 0x68f   : > { %15936 = vmatprep.mubr.msk.f32.mxu1 %vm8325_vm2, %v20108_v32 }
 0x692   : > { %15937 = vmatmul.mubr.msk.f32.gmra.mrb[62].mxu1 %vm8325_vm2, %v19425_v48 }
 0x693   : > { %15939 = vmatprep.mubr.msk.f32.mxu1 %vm8325_vm2, %v19635_v11 }
 0x696   : > { %15940 = vmatmul.mubr.msk.f32.gmra.mrb[64].mxu1 %vm8325_vm2, %v19639_v45 }
 0x697   : > { %15942 = vmatprep.mubr.msk.f32.mxu1 %vm8325_vm2, %v11480_v23 }
 0x69a   : > { %15943 = vmatmul.mubr.msk.f32.gmra.mrb[66].mxu1 %vm8325_vm2, %v11481_v13 }
 0x731   : > { %v15899_v33 = vpop.f32.mrb[36].mxu1 }
 0x732   : > { %v11845_v36 = vmul.f32 %v15899_v33, %v19822_v50  ;;  %v11646_v25 = vpop.f32.mrb[37].mxu1 }
 0x733   : > { %v11844_v37 = vmul.f32 %v19822_v50, %v11646_v25 }
 0x734   : > { %v11884_v4 = vadd.f32 %v19827_v22, %v11845_v36 }
 0x735   : > { %v11883_v40 = vadd.f32 %v19827_v22, %v11844_v37  ;;  %v15902_v7 = vpop.f32.mrb[38].mxu1 }
 0x736   : > { %v11916_v54 = vmax.f32 %v11884_v4, 0.0  ;;  %v11847_v48 = vmul.f32 %v15902_v7, %v19822_v50  ;;  %v11656_v52 = vpop.f32.mrb[39].mxu1 }
 0x737   : > { %v11915_v41 = vmax.f32 %v11883_v40, 0.0  ;;  %v11846_v49 = vmul.f32 %v19822_v50, %v11656_v52 }
 0x738   : > { %11948 = vst.msk [vmem:[%s19836_s19 + $0x8] sm:$0xff] %vm8325_vm2, %v11916_v54  ;;  %v11886_v60 = vadd.f32 %v19827_v22, %v11847_v48 }
 0x739   : > { %11947 = vst.msk [vmem:[%s19836_s19] sm:$0xff] %vm8325_vm2, %v11915_v41  ;;  %v11885_v19 = vadd.f32 %v19827_v22, %v11846_v49  ;;  %v15905_v26 = vpop.f32.mrb[40].mxu1 }
 0x73a   : > { %v11918_v42 = vmax.f32 %v11886_v60, 0.0  ;;  %v11849_v53 = vmul.f32 %v15905_v26, %v19822_v50  ;;  %v11666_v43 = vpop.f32.mrb[41].mxu1 }
 0x73b   : > { %v11917_v20 = vmax.f32 %v11885_v19, 0.0  ;;  %v11848_v47 = vmul.f32 %v19822_v50, %v11666_v43 }
 0x73c   : > { %11950 = vst.msk [vmem:[%s19836_s19 + $0x18] sm:$0xff] %vm8325_vm2, %v11918_v42  ;;  %v11888_v11 = vadd.f32 %v19827_v22, %v11849_v53 }
 0x73d   : > { %11949 = vst.msk [vmem:[%s19836_s19 + $0x10] sm:$0xff] %vm8325_vm2, %v11917_v20  ;;  %v11887_v51 = vadd.f32 %v19827_v22, %v11848_v47  ;;  %v15908_v45 = vpop.f32.mrb[42].mxu1 }
 0x73e   : > { %v11920_v55 = vmax.f32 %v11888_v11, 0.0  ;;  %v11851_v44 = vmul.f32 %v15908_v45, %v19822_v50  ;;  %v11676_v28 = vpop.f32.mrb[43].mxu1 }
 0x73f   : > { %v11919_v35 = vmax.f32 %v11887_v51, 0.0  ;;  %v11850_v39 = vmul.f32 %v19822_v50, %v11676_v28 }
 0x740   : > { %11952 = vst.msk [vmem:[%s19836_s19 + $0x28] sm:$0xff] %vm8325_vm2, %v11920_v55  ;;  %v11890_v14 = vadd.f32 %v19827_v22, %v11851_v44 }
 0x741   : > { %11951 = vst.msk [vmem:[%s19836_s19 + $0x20] sm:$0xff] %vm8325_vm2, %v11919_v35  ;;  %v11889_v6 = vadd.f32 %v19827_v22, %v11850_v39  ;;  %v15911_v27 = vpop.f32.mrb[44].mxu1 }
 0x742   : > { %v11922_v16 = vmax.f32 %v11890_v14, 0.0  ;;  %v11853_v56 = vmul.f32 %v15911_v27, %v19822_v50  ;;  %v11686_v57 = vpop.f32.mrb[45].mxu1 }
 0x743   : > { %v11921_v58 = vmax.f32 %v11889_v6, 0.0  ;;  %v11852_v31 = vmul.f32 %v19822_v50, %v11686_v57 }
 0x744   : > { %11954 = vst.msk [vmem:[%s19836_s19 + $0x38] sm:$0xff] %vm8325_vm2, %v11922_v16  ;;  %v11892_v61 = vadd.f32 %v19827_v22, %v11853_v56 }
 0x745   : > { %11953 = vst.msk [vmem:[%s19836_s19 + $0x30] sm:$0xff] %vm8325_vm2, %v11921_v58  ;;  %v11891_v10 = vadd.f32 %v19827_v22, %v11852_v31  ;;  %v15914_v46 = vpop.f32.mrb[46].mxu1 }
 0x746   : > { %v11924_v5 = vmax.f32 %v11892_v61, 0.0  ;;  %v11855_v17 = vmul.f32 %v15914_v46, %v19822_v50  ;;  %v11696_v9 = vpop.f32.mrb[47].mxu1 }
 0x747   : > { %v11923_v34 = vmax.f32 %v11891_v10, 0.0  ;;  %v11854_v0 = vmul.f32 %v19822_v50, %v11696_v9 }
 0x748   : > { %11956 = vst.msk [vmem:[%s19836_s19 + $0x48] sm:$0xff] %vm8325_vm2, %v11924_v5  ;;  %v11894_v59 = vadd.f32 %v19827_v22, %v11855_v17 }
 0x749   : > { %11955 = vst.msk [vmem:[%s19836_s19 + $0x40] sm:$0xff] %vm8325_vm2, %v11923_v34  ;;  %v11893_v29 = vadd.f32 %v19827_v22, %v11854_v0  ;;  %v15917_v63 = vpop.f32.mrb[48].mxu1 }
 0x74a   : > { %v11926_v12 = vmax.f32 %v11894_v59, 0.0  ;;  %v11857_v3 = vmul.f32 %v15917_v63, %v19822_v50  ;;  %v11706_v30 = vpop.f32.mrb[49].mxu1 }
 0x74b   : > { %v11925_v8 = vmax.f32 %v11893_v29, 0.0  ;;  %v11856_v2 = vmul.f32 %v19822_v50, %v11706_v30 }
 0x74c   : > { %11958 = vst.msk [vmem:[%s19836_s19 + $0x58] sm:$0xff] %vm8325_vm2, %v11926_v12  ;;  %v11896_v18 = vadd.f32 %v19827_v22, %v11857_v3 }
 0x74d   : > { %11957 = vst.msk [vmem:[%s19836_s19 + $0x50] sm:$0xff] %vm8325_vm2, %v11925_v8  ;;  %v11895_v24 = vadd.f32 %v19827_v22, %v11856_v2  ;;  %v15920_v38 = vpop.f32.mrb[50].mxu1 }
 0x74e   : > { %v11928_v1 = vmax.f32 %v11896_v18, 0.0  ;;  %v11859_v21 = vmul.f32 %v15920_v38, %v19822_v50  ;;  %v11716_v62 = vpop.f32.mrb[51].mxu1 }
 0x74f   : > { %v11927_v15 = vmax.f32 %v11895_v24, 0.0  ;;  %v11858_v32 = vmul.f32 %v19822_v50, %v11716_v62 }
 0x750   : > { %11960 = vst.msk [vmem:[%s19836_s19 + $0x68] sm:$0xff] %vm8325_vm2, %v11928_v1  ;;  %v11898_v23 = vadd.f32 %v19827_v22, %v11859_v21 }
 0x751   : > { %11959 = vst.msk [vmem:[%s19836_s19 + $0x60] sm:$0xff] %vm8325_vm2, %v11927_v15  ;;  %v11897_v13 = vadd.f32 %v19827_v22, %v11858_v32  ;;  %v15923_v33 = vpop.f32.mrb[52].mxu1 }
 0x752   : > { %v11930_v36 = vmax.f32 %v11898_v23, 0.0  ;;  %v11861_v25 = vmul.f32 %v15923_v33, %v19822_v50  ;;  %v11726_v37 = vpop.f32.mrb[53].mxu1 }
 0x753   : > { %v11929_v4 = vmax.f32 %v11897_v13, 0.0  ;;  %v11860_v40 = vmul.f32 %v19822_v50, %v11726_v37 }
 0x754   : > { %11962 = vst.msk [vmem:[%s19836_s19 + $0x78] sm:$0xff] %vm8325_vm2, %v11930_v36  ;;  %v11900_v7 = vadd.f32 %v19827_v22, %v11861_v25 }
 0x755   : > { %11961 = vst.msk [vmem:[%s19836_s19 + $0x70] sm:$0xff] %vm8325_vm2, %v11929_v4  ;;  %v11899_v54 = vadd.f32 %v19827_v22, %v11860_v40  ;;  %v15926_v48 = vpop.f32.mrb[54].mxu1 }
 0x756   : > { %v11932_v52 = vmax.f32 %v11900_v7, 0.0  ;;  %v11863_v41 = vmul.f32 %v15926_v48, %v19822_v50  ;;  %v11736_v49 = vpop.f32.mrb[55].mxu1 }
 0x757   : > { %v11931_v60 = vmax.f32 %v11899_v54, 0.0  ;;  %v11862_v19 = vmul.f32 %v19822_v50, %v11736_v49 }
 0x758   : > { %11964 = vst.msk [vmem:[%s19836_s19 + $0x88] sm:$0xff] %vm8325_vm2, %v11932_v52  ;;  %v11902_v26 = vadd.f32 %v19827_v22, %v11863_v41 }
 0x759   : > { %11963 = vst.msk [vmem:[%s19836_s19 + $0x80] sm:$0xff] %vm8325_vm2, %v11931_v60  ;;  %v11901_v42 = vadd.f32 %v19827_v22, %v11862_v19  ;;  %v15929_v53 = vpop.f32.mrb[56].mxu1 }
 0x75a   : > { %v11934_v43 = vmax.f32 %v11902_v26, 0.0  ;;  %v11865_v20 = vmul.f32 %v15929_v53, %v19822_v50  ;;  %v11746_v47 = vpop.f32.mrb[57].mxu1 }
 0x75b   : > { %v11933_v11 = vmax.f32 %v11901_v42, 0.0  ;;  %v11864_v51 = vmul.f32 %v19822_v50, %v11746_v47 }
 0x75c   : > { %11966 = vst.msk [vmem:[%s19836_s19 + $0x98] sm:$0xff] %vm8325_vm2, %v11934_v43  ;;  %v11904_v45 = vadd.f32 %v19827_v22, %v11865_v20 }
 0x75d   : > { %11965 = vst.msk [vmem:[%s19836_s19 + $0x90] sm:$0xff] %vm8325_vm2, %v11933_v11  ;;  %v11903_v55 = vadd.f32 %v19827_v22, %v11864_v51  ;;  %v15932_v44 = vpop.f32.mrb[58].mxu1 }
 0x75e   : > { %v11936_v28 = vmax.f32 %v11904_v45, 0.0  ;;  %v11867_v35 = vmul.f32 %v15932_v44, %v19822_v50  ;;  %v11756_v39 = vpop.f32.mrb[59].mxu1 }
 0x75f   : > { %v11935_v14 = vmax.f32 %v11903_v55, 0.0  ;;  %v11866_v6 = vmul.f32 %v19822_v50, %v11756_v39 }
 0x760   : > { %11968 = vst.msk [vmem:[%s19836_s19 + $0xa8] sm:$0xff] %vm8325_vm2, %v11936_v28  ;;  %v11906_v27 = vadd.f32 %v19827_v22, %v11867_v35 }
 0x761   : > { %11967 = vst.msk [vmem:[%s19836_s19 + $0xa0] sm:$0xff] %vm8325_vm2, %v11935_v14  ;;  %v11905_v16 = vadd.f32 %v19827_v22, %v11866_v6  ;;  %v15935_v56 = vpop.f32.mrb[60].mxu1 }
 0x762   : > { %v11938_v57 = vmax.f32 %v11906_v27, 0.0  ;;  %v11869_v58 = vmul.f32 %v15935_v56, %v19822_v50  ;;  %v11766_v31 = vpop.f32.mrb[61].mxu1 }
 0x763   : > { %v11937_v61 = vmax.f32 %v11905_v16, 0.0  ;;  %v11868_v10 = vmul.f32 %v19822_v50, %v11766_v31 }
 0x764   : > { %11970 = vst.msk [vmem:[%s19836_s19 + $0xb8] sm:$0xff] %vm8325_vm2, %v11938_v57  ;;  %v11908_v46 = vadd.f32 %v19827_v22, %v11869_v58 }
 0x765   : > { %11969 = vst.msk [vmem:[%s19836_s19 + $0xb0] sm:$0xff] %vm8325_vm2, %v11937_v61  ;;  %v11907_v5 = vadd.f32 %v19827_v22, %v11868_v10  ;;  %v15938_v17 = vpop.f32.mrb[62].mxu1 }
 0x766   : > { %v11940_v9 = vmax.f32 %v11908_v46, 0.0  ;;  %v11871_v34 = vmul.f32 %v15938_v17, %v19822_v50  ;;  %v11776_v0 = vpop.f32.mrb[63].mxu1 }
 0x767   : > { %v11939_v59 = vmax.f32 %v11907_v5, 0.0  ;;  %v11870_v29 = vmul.f32 %v19822_v50, %v11776_v0 }
 0x768   : > { %11972 = vst.msk [vmem:[%s19836_s19 + $0xc8] sm:$0xff] %vm8325_vm2, %v11940_v9  ;;  %v11910_v63 = vadd.f32 %v19827_v22, %v11871_v34 }
 0x769   : > { %11971 = vst.msk [vmem:[%s19836_s19 + $0xc0] sm:$0xff] %vm8325_vm2, %v11939_v59  ;;  %v11909_v12 = vadd.f32 %v19827_v22, %v11870_v29  ;;  %v15941_v3 = vpop.f32.mrb[64].mxu1 }
 0x76a   : > { %v11942_v30 = vmax.f32 %v11910_v63, 0.0  ;;  %v11873_v8 = vmul.f32 %v15941_v3, %v19822_v50  ;;  %v11786_v2 = vpop.f32.mrb[65].mxu1 }
 0x76b   : > { %v11941_v18 = vmax.f32 %v11909_v12, 0.0  ;;  %v11872_v24 = vmul.f32 %v19822_v50, %v11786_v2 }
 0x76c   : > { %11974 = vst.msk [vmem:[%s19836_s19 + $0xd8] sm:$0xff] %vm8325_vm2, %v11942_v30  ;;  %v11912_v38 = vadd.f32 %v19827_v22, %v11873_v8 }
 0x76d   : > { %11973 = vst.msk [vmem:[%s19836_s19 + $0xd0] sm:$0xff] %vm8325_vm2, %v11941_v18  ;;  %v11911_v1 = vadd.f32 %v19827_v22, %v11872_v24  ;;  %v15944_v21 = vpop.f32.mrb[66].mxu1 }
 0x76e   : > { %v11944_v62 = vmax.f32 %v11912_v38, 0.0  ;;  %v11875_v15 = vmul.f32 %v15944_v21, %v19822_v50  ;;  %v11796_v32 = vpop.f32.mrb[67].mxu1 }
 0x76f   : > { %v11943_v23 = vmax.f32 %v11911_v1, 0.0  ;;  %v11874_v13 = vmul.f32 %v19822_v50, %v11796_v32 }
 0x770   : > { %11976 = vst.msk [vmem:[%s19836_s19 + $0xe8] sm:$0xff] %vm8325_vm2, %v11944_v62  ;;  %v11914_v33 = vadd.f32 %v19827_v22, %v11875_v15 }
 0x771   : > { %11975 = vst.msk [vmem:[%s19836_s19 + $0xe0] sm:$0xff] %vm8325_vm2, %v11943_v23  ;;  %v11913_v36 = vadd.f32 %v19827_v22, %v11874_v13 }
 0x772   : > { %v11946_v25 = vmax.f32 %v11914_v33, 0.0 }
 0x773   : > { %v11945_v37 = vmax.f32 %v11913_v36, 0.0 }
 0x774   : > { %11978 = vst.msk [vmem:[%s19836_s19 + $0xf8] sm:$0xff] %vm8325_vm2, %v11946_v25 }
 0x775   : > { %11977 = vst.msk [vmem:[%s19836_s19 + $0xf0] sm:$0xff] %vm8325_vm2, %v11945_v37 }
 0x776 PF: > { %s19_s11 = sadd.s32 1, %s16861_s11   ;;  %s20109_s30 = smov %s16857_s10 }
 0x777   : > { %p16_p5 = scmp.ge.s32.totalorder %s19_s11, 4   ;;  %s20110_s10 = smov %s20112_s12 }
 0x779   :  { %18 = sbr.rel (!%p16_p5) target bundleno = 2 (0x2), region = 121 }

</bundles_post_ra>
